<compile_context>
chip_gen: v7x
topology: tpu7x:2x2x1
jax: 0.10.0
libtpu: 0.0.40
codegen_flags: <defaults>
</compile_context>

<pallas_src>
import functools

import jax
import jax.numpy as jnp
from jax.experimental import pallas as pl
from jax.experimental.pallas import tpu as pltpu


def _attention_kernel(xkv_ref, wq_ref, wkv_ref, bq_ref, bkv_ref, wp_ref, bp_ref,
                      o_ref, kv_ref, ctx_ref, *, tq, head_dim):
    """One (batch, query-tile, head) grid step.

    xkv_ref : (1, N, C)     bf16  full sequence for this batch element (Q/K/V source)
    wq_ref  : (H, C, HD)    bf16  per-head Q weight, softmax scale folded in  (resident)
    wkv_ref : (H, C, 2*HD)  bf16  fused per-head [K | V] weight               (resident)
    bq_ref  : (H, 1, HD)    f32   per-head Q bias, scale folded in            (resident)
    bkv_ref : (H, 1, 2*HD)  f32   fused [0 | v_bias]                          (resident)
    wp_ref  : (AHD, C)      bf16  output projection                           (resident)
    bp_ref  : (1, C)        f32   output projection bias                      (resident)
    o_ref   : (1, TQ, C)
    kv_ref  : (H, N, 2*HD)  bf16  K/V cache across query tiles (VMEM scratch)
    ctx_ref : (TQ, AHD)     bf16  per-head context slabs        (VMEM scratch)
    """
    qi = pl.program_id(1)
    h = pl.program_id(2)
    nh = pl.num_programs(2)

    # ---- K/V projection: compute once per (batch, head), reuse for qi > 0 ----
    @pl.when(qi == 0)
    def _():
        xkv = xkv_ref[0]                                                   # (N, C) bf16
        kv = jnp.dot(xkv, wkv_ref[h], preferred_element_type=jnp.float32)  # (N, 2*HD)
        kv = kv + bkv_ref[h]                                               # K half of bias is 0
        kv_ref[h] = kv.astype(jnp.bfloat16)

    # ---- Q projection: query rows sliced out of the resident x block ----
    row0 = pl.multiple_of(qi * tq, tq)
    xq = xkv_ref[0, pl.ds(row0, tq), :]                                    # (TQ, C) bf16
    q = jnp.dot(xq, wq_ref[h], preferred_element_type=jnp.float32) + bq_ref[h]  # (TQ, HD)

    kv_h = kv_ref[h]                                                       # (N, 2*HD) bf16
    k = kv_h[:, :head_dim]                                                 # (N, HD)
    v = kv_h[:, head_dim:]                                                 # (N, HD)

    # ---- scores: contract head_dim of both operands (no explicit transpose) ----
    s = jax.lax.dot_general(
        q.astype(jnp.bfloat16), k,
        dimension_numbers=(((1,), (1,)), ((), ())),
        preferred_element_type=jnp.float32)                                # (TQ, N)

    # ---- softmax in f32; normalization deferred until after the PV matmul ----
    s = s - jnp.max(s, axis=-1, keepdims=True)
    p = jnp.exp(s)                                                         # f32
    inv_l = pl.reciprocal(jnp.sum(p, axis=-1, keepdims=True), approx=True)  # (TQ, 1)
    # TODO(synk): attn_drop / proj_drop have p=0.0 -> identity (eval semantics).
    ctx = jnp.dot(p.astype(jnp.bfloat16), v, preferred_element_type=jnp.float32)
    ctx = ctx * inv_l                                                      # (TQ, HD) f32

    col0 = pl.multiple_of(h * head_dim, head_dim)
    ctx_ref[:, pl.ds(col0, head_dim)] = ctx.astype(jnp.bfloat16)

    # ---- one full-depth output projection once all heads are written ----
    @pl.when(h == nh - 1)
    def _():
        out = jnp.dot(ctx_ref[...], wp_ref[...],
                      preferred_element_type=jnp.float32) + bp_ref[...]    # (TQ, C)
        o_ref[0] = out.astype(o_ref.dtype)


def attention_forward(x, wqkv, q_bias, v_bias, wproj, bproj, *,
                      num_heads, head_dim=None, q_block=256):
    """Pallas Attention forward.

    x:      (B, N, C)
    wqkv:   (3*AHD, C)   torch nn.Linear weight layout (layer has no bias)
    q_bias: (AHD,) or None     (BEiT convention: K bias is identically zero)
    v_bias: (AHD,) or None
    wproj:  (C, AHD)     torch nn.Linear weight layout
    bproj:  (C,)
    """
    B, N, C = x.shape
    if head_dim is None:
        head_dim = C // num_heads
    ahd = num_heads * head_dim
    scale = head_dim ** (-0.5)

    if (q_bias is None) != (v_bias is None):
        raise ValueError("q_bias and v_bias must both be provided or both be None "
                         "(BEiT convention: K carries no bias).")

    # ---- static weight plumbing (wrapper side, zero runtime cost) ----
    wq, wk, wv = wqkv[:ahd], wqkv[ahd:2 * ahd], wqkv[2 * ahd:]

    def per_head_in(w):  # (AHD, C) -> (H, C, HD)
        return jnp.transpose(w.reshape(num_heads, head_dim, C), (0, 2, 1))

    wq3 = (per_head_in(wq) * scale).astype(jnp.bfloat16)               # (H, C, HD), scale folded
    wkv3 = jnp.concatenate([per_head_in(wk), per_head_in(wv)],
                           axis=-1).astype(jnp.bfloat16)               # (H, C, 2*HD)
    wp2 = jnp.transpose(wproj).astype(jnp.bfloat16)                    # (AHD, C)

    if q_bias is not None:
        bq3 = (q_bias.astype(jnp.float32) * scale).reshape(num_heads, 1, head_dim)
        bv3 = v_bias.astype(jnp.float32).reshape(num_heads, 1, head_dim)
    else:
        bq3 = jnp.zeros((num_heads, 1, head_dim), jnp.float32)
        bv3 = jnp.zeros((num_heads, 1, head_dim), jnp.float32)
    bkv3 = jnp.concatenate([jnp.zeros_like(bv3), bv3], axis=-1)        # (H, 1, 2*HD), K bias = 0
    bp2 = bproj.astype(jnp.float32).reshape(1, C)

    x_bf16 = x.astype(jnp.bfloat16)

    # query tile: largest multiple-of-8 candidate dividing N (fallback: whole N)
    tq = N
    for t in (q_block, 256, 128, 64, 32, 16, 8):
        if t <= N and N % t == 0:
            tq = t
            break
    n_q = N // tq

    # VMEM budget derived from the actual buffer set (clamped below v7x's 64 MiB):
    est = (2 * N * C * 2                                       # xkv double buffer (bf16)
           + 2 * tq * C * x.dtype.itemsize                     # out double buffer
           + 2 * (3 * num_heads * C * head_dim * 2 + ahd * C * 2)  # resident weights (+headroom)
           + num_heads * N * 2 * head_dim * 2                  # K/V cache scratch
           + tq * ahd * 2                                      # ctx scratch
           + 4 * tq * N * 4)                                   # score/softmax f32 temporaries
    vmem_limit = int(min(max(2 * est, 24 * 1024 * 1024), 60 * 1024 * 1024))

    kernel = functools.partial(_attention_kernel, tq=tq, head_dim=head_dim)
    grid = (B, n_q, num_heads)

    return pl.pallas_call(
        kernel,
        out_shape=jax.ShapeDtypeStruct((B, N, C), x.dtype),
        grid_spec=pltpu.PrefetchScalarGridSpec(
            num_scalar_prefetch=0,
            grid=grid,
            in_specs=[
                pl.BlockSpec((1, N, C), lambda b, qi, h: (b, 0, 0)),                    # x (Q/K/V src)
                pl.BlockSpec((num_heads, C, head_dim), lambda b, qi, h: (0, 0, 0)),     # Wq (resident)
                pl.BlockSpec((num_heads, C, 2 * head_dim), lambda b, qi, h: (0, 0, 0)),  # W[k|v]
                pl.BlockSpec((num_heads, 1, head_dim), lambda b, qi, h: (0, 0, 0)),     # bq
                pl.BlockSpec((num_heads, 1, 2 * head_dim), lambda b, qi, h: (0, 0, 0)),  # b[k|v]
                pl.BlockSpec((ahd, C), lambda b, qi, h: (0, 0)),                        # Wproj
                pl.BlockSpec((1, C), lambda b, qi, h: (0, 0)),                          # bproj
            ],
            out_specs=pl.BlockSpec((1, tq, C), lambda b, qi, h: (b, qi, 0)),
            scratch_shapes=[
                pltpu.VMEM((num_heads, N, 2 * head_dim), jnp.bfloat16),  # K/V cache across qi
                pltpu.VMEM((tq, ahd), jnp.bfloat16),                     # per-head ctx slabs
            ],
        ),
        compiler_params=pltpu.CompilerParams(
            # qi and h carry cross-iteration state (K/V cache, ctx slabs) -> "arbitrary";
            # batch is fully independent -> "parallel" (v7x megacore shards along B).
            dimension_semantics=("parallel", "arbitrary", "arbitrary"),
            vmem_limit_bytes=vmem_limit,
        ),
    )(x_bf16, wq3, wkv3, bq3, bkv3, wp2, bp2)


def _reference(x, wqkv, q_bias, v_bias, wproj, bproj, *, num_heads, head_dim):
    """Pure-JAX f32 mirror of the PyTorch forward, for verification."""
    B, N, C = x.shape
    ahd = num_heads * head_dim
    scale = head_dim ** (-0.5)
    if q_bias is not None:
        bqkv = jnp.concatenate([q_bias, jnp.zeros_like(q_bias), v_bias])
    else:
        bqkv = jnp.zeros((3 * ahd,), x.dtype)
    qkv = x @ wqkv.T + bqkv
    qkv = qkv.reshape(B, N, 3, num_heads, head_dim).transpose(2, 0, 3, 1, 4)
    q, k, v = qkv[0] * scale, qkv[1], qkv[2]
    attn = jax.nn.softmax(q @ jnp.swapaxes(k, -2, -1), axis=-1)
    out = (attn @ v).transpose(0, 2, 1, 3).reshape(B, N, ahd)
    return out @ wproj.T + bproj


if __name__ == "__main__":
    B, N, dim = 2, 512, 256
    num_heads = 2
    head_dim = dim // num_heads          # 128 -> lane-aligned head dim
    ahd = num_heads * head_dim

    key = jax.random.PRNGKey(0)
    kx, kw1, kb1q, kb1v, kw2, kb2 = jax.random.split(key, 6)

    x = jax.random.normal(kx, (B, N, dim), jnp.float32)
    wqkv = jax.random.normal(kw1, (3 * ahd, dim), jnp.float32) * 0.05
    q_bias = jax.random.normal(kb1q, (ahd,), jnp.float32) * 0.05   # qkv_bias=True path
    v_bias = jax.random.normal(kb1v, (ahd,), jnp.float32) * 0.05
    wproj = jax.random.normal(kw2, (dim, ahd), jnp.float32) * 0.05
    bproj = jax.random.normal(kb2, (dim,), jnp.float32) * 0.05

    out = attention_forward(x, wqkv, q_bias, v_bias, wproj, bproj,
                            num_heads=num_heads, head_dim=head_dim)
    out = jax.block_until_ready(out)

    ref = _reference(x, wqkv, q_bias, v_bias, wproj, bproj,
                     num_heads=num_heads, head_dim=head_dim)
    assert out.shape == (B, N, dim)
    err = jnp.max(jnp.abs(out.astype(jnp.float32) - ref))
    # bf16 MXU operands + approx reciprocal -> loosened tolerance vs f32 reference.
    assert err < 2e-2, f"mismatch vs reference: max abs err = {err}"
    print("KERNEL_OK")
</pallas_src>

<mosaic_0001>
module attributes {stable_mosaic.version = 11 : i64} {
  func.func @_attention_kernel(%arg0: i32, %arg1: i32, %arg2: i32, %arg3: memref<1x512x256xbf16, #tpu.memory_space<vmem>>, %arg4: memref<2x256x128xbf16, #tpu.memory_space<vmem>>, %arg5: memref<2x256x256xbf16, #tpu.memory_space<vmem>>, %arg6: memref<2x1x128xf32, #tpu.memory_space<vmem>>, %arg7: memref<2x1x256xf32, #tpu.memory_space<vmem>>, %arg8: memref<256x256xbf16, #tpu.memory_space<vmem>>, %arg9: memref<1x256xf32, #tpu.memory_space<vmem>>, %arg10: memref<1x256x256xf32, #tpu.memory_space<vmem>>, %arg11: memref<2x512x256xbf16, #tpu.memory_space<vmem>>, %arg12: memref<256x256xbf16, #tpu.memory_space<vmem>>) attributes {dimension_semantics = [#tpu.dimension_semantics<parallel>, #tpu.dimension_semantics<arbitrary>, #tpu.dimension_semantics<arbitrary>], iteration_bounds = array<i64: 2, 2, 2>, scalar_prefetch = 0 : i64, scratch_operands = 2 : i64, tpu.core_type = #tpu.core_type<tc>, window_params = [{transform_indices = @transform_0, window_bounds = array<i64: 1, 512, 256>}, {pipeline_mode = #tpu.pipeline_mode<synchronous>, transform_indices = @transform_1, window_bounds = array<i64: 2, 256, 128>}, {pipeline_mode = #tpu.pipeline_mode<synchronous>, transform_indices = @transform_2, window_bounds = array<i64: 2, 256, 256>}, {pipeline_mode = #tpu.pipeline_mode<synchronous>, transform_indices = @transform_3, window_bounds = array<i64: 2, 1, 128>}, {pipeline_mode = #tpu.pipeline_mode<synchronous>, transform_indices = @transform_4, window_bounds = array<i64: 2, 1, 256>}, {pipeline_mode = #tpu.pipeline_mode<synchronous>, transform_indices = @transform_5, window_bounds = array<i64: 256, 256>}, {pipeline_mode = #tpu.pipeline_mode<synchronous>, transform_indices = @transform_6, window_bounds = array<i64: 1, 256>}, {transform_indices = @transform_7, window_bounds = array<i64: 1, 256, 256>}]} {
    %c0_i32 = arith.constant 0 : i32
    %0 = arith.cmpi eq, %arg1, %c0_i32 : i32
    %1 = arith.extui %0 : i1 to i32
    %c0_i32_0 = arith.constant 0 : i32
    %2 = arith.cmpi ne, %1, %c0_i32_0 : i32
    scf.if %2 {
      %c0_14 = arith.constant 0 : index
      %c0_15 = arith.constant 0 : index
      %c0_16 = arith.constant 0 : index
      %44 = vector.load %arg3[%c0_14, %c0_15, %c0_16] : memref<1x512x256xbf16, #tpu.memory_space<vmem>>, vector<1x512x256xbf16>
      %45 = vector.shape_cast %44 : vector<1x512x256xbf16> to vector<512x256xbf16>
      %46 = arith.index_cast %arg2 : i32 to index
      %c0_17 = arith.constant 0 : index
      %c0_18 = arith.constant 0 : index
      %47 = vector.load %arg5[%46, %c0_17, %c0_18] : memref<2x256x256xbf16, #tpu.memory_space<vmem>>, vector<1x256x256xbf16>
      %48 = vector.shape_cast %47 : vector<1x256x256xbf16> to vector<256x256xbf16>
      %cst_19 = arith.constant dense<0.000000e+00> : vector<512x256xf32>
      %49 = tpu.matmul %45, %48, %cst_19 {dimension_numbers = #tpu.dot_dimension_numbers<[1], [0], [0], [1], [0, 0, 1, 1], [], []>} : vector<512x256xbf16>, vector<256x256xbf16>, vector<512x256xf32> -> vector<512x256xf32>
      %50 = arith.index_cast %arg2 : i32 to index
      %c0_20 = arith.constant 0 : index
      %c0_21 = arith.constant 0 : index
      %51 = vector.load %arg7[%50, %c0_20, %c0_21] : memref<2x1x256xf32, #tpu.memory_space<vmem>>, vector<1x1x256xf32>
      %52 = vector.shape_cast %51 : vector<1x1x256xf32> to vector<1x256xf32>
      %53 = vector.broadcast %52 : vector<1x256xf32> to vector<512x256xf32>
      %54 = arith.addf %49, %53 : vector<512x256xf32>
      %55 = arith.truncf %54 : vector<512x256xf32> to vector<512x256xbf16>
      %56 = arith.index_cast %arg2 : i32 to index
      %c0_22 = arith.constant 0 : index
      %c0_23 = arith.constant 0 : index
      %57 = vector.load %arg11[%56, %c0_22, %c0_23] : memref<2x512x256xbf16, #tpu.memory_space<vmem>>, vector<1x512x256xbf16>
      %58 = vector.shape_cast %57 : vector<1x512x256xbf16> to vector<512x256xbf16>
      %59 = vector.shape_cast %55 : vector<512x256xbf16> to vector<1x512x256xbf16>
      tpu.vector_store %arg11[%56, %c0_22, %c0_23], %59 {strides = array<i32>} : memref<2x512x256xbf16, #tpu.memory_space<vmem>>, vector<1x512x256xbf16>,
    } else {
    }
    %c256_i32 = arith.constant 256 : i32
    %3 = arith.muli %arg1, %c256_i32 : i32
    %4 = tpu.assume_multiple %3, 256 : i32
    %c0 = arith.constant 0 : index
    %5 = arith.index_cast %4 : i32 to index
    %c0_1 = arith.constant 0 : index
    %6 = vector.load %arg3[%c0, %5, %c0_1] : memref<1x512x256xbf16, #tpu.memory_space<vmem>>, vector<1x256x256xbf16>
    %7 = vector.shape_cast %6 : vector<1x256x256xbf16> to vector<256x256xbf16>
    %8 = arith.index_cast %arg2 : i32 to index
    %c0_2 = arith.constant 0 : index
    %c0_3 = arith.constant 0 : index
    %9 = vector.load %arg4[%8, %c0_2, %c0_3] : memref<2x256x128xbf16, #tpu.memory_space<vmem>>, vector<1x256x128xbf16>
    %10 = vector.shape_cast %9 : vector<1x256x128xbf16> to vector<256x128xbf16>
    %cst = arith.constant dense<0.000000e+00> : vector<256x128xf32>
    %11 = tpu.matmul %7, %10, %cst {dimension_numbers = #tpu.dot_dimension_numbers<[1], [0], [0], [1], [0, 0, 1, 1], [], []>} : vector<256x256xbf16>, vector<256x128xbf16>, vector<256x128xf32> -> vector<256x128xf32>
    %12 = arith.index_cast %arg2 : i32 to index
    %c0_4 = arith.constant 0 : index
    %c0_5 = arith.constant 0 : index
    %13 = vector.load %arg6[%12, %c0_4, %c0_5] : memref<2x1x128xf32, #tpu.memory_space<vmem>>, vector<1x1x128xf32>
    %14 = vector.shape_cast %13 : vector<1x1x128xf32> to vector<1x128xf32>
    %15 = vector.broadcast %14 : vector<1x128xf32> to vector<256x128xf32>
    %16 = arith.addf %11, %15 : vector<256x128xf32>
    %17 = arith.index_cast %arg2 : i32 to index
    %c0_6 = arith.constant 0 : index
    %c0_7 = arith.constant 0 : index
    %18 = vector.load %arg11[%17, %c0_6, %c0_7] : memref<2x512x256xbf16, #tpu.memory_space<vmem>>, vector<1x512x256xbf16>
    %19 = vector.shape_cast %18 : vector<1x512x256xbf16> to vector<512x256xbf16>
    %20 = vector.extract_strided_slice %19 {offsets = [0, 0], sizes = [512, 128], strides = [1, 1]} : vector<512x256xbf16> to vector<512x128xbf16>
    %21 = vector.extract_strided_slice %19 {offsets = [0, 128], sizes = [512, 128], strides = [1, 1]} : vector<512x256xbf16> to vector<512x128xbf16>
    %22 = arith.truncf %16 : vector<256x128xf32> to vector<256x128xbf16>
    %cst_8 = arith.constant dense<0.000000e+00> : vector<256x512xf32>
    %23 = tpu.matmul %22, %20, %cst_8 {dimension_numbers = #tpu.dot_dimension_numbers<[1], [1], [0], [0], [0, 0, 1, 0], [], []>} : vector<256x128xbf16>, vector<512x128xbf16>, vector<256x512xf32> -> vector<256x512xf32>
    %cst_9 = arith.constant dense<0xFF800000> : vector<256xf32>
    %24 = vector.multi_reduction <maximumf>, %23, %cst_9 [1] : vector<256x512xf32> to vector<256xf32>
    %25 = vector.shape_cast %24 : vector<256xf32> to vector<256x1xf32>
    %26 = vector.broadcast %25 : vector<256x1xf32> to vector<256x512xf32>
    %27 = arith.subf %23, %26 : vector<256x512xf32>
    %28 = math.exp %27 : vector<256x512xf32>
    %cst_10 = arith.constant dense<0.000000e+00> : vector<256xf32>
    %29 = vector.multi_reduction <add>, %28, %cst_10 [1] : vector<256x512xf32> to vector<256xf32>
    %30 = vector.shape_cast %29 : vector<256xf32> to vector<256x1xf32>
    %31 = tpu.reciprocal %30 {approx = true} : vector<256x1xf32> -> vector<256x1xf32>
    %32 = arith.truncf %28 : vector<256x512xf32> to vector<256x512xbf16>
    %cst_11 = arith.constant dense<0.000000e+00> : vector<256x128xf32>
    %33 = tpu.matmul %32, %21, %cst_11 {dimension_numbers = #tpu.dot_dimension_numbers<[1], [0], [0], [1], [0, 0, 1, 1], [], []>} : vector<256x512xbf16>, vector<512x128xbf16>, vector<256x128xf32> -> vector<256x128xf32>
    %34 = vector.broadcast %31 : vector<256x1xf32> to vector<256x128xf32>
    %35 = arith.mulf %33, %34 : vector<256x128xf32>
    %c128_i32 = arith.constant 128 : i32
    %36 = arith.muli %arg2, %c128_i32 : i32
    %37 = tpu.assume_multiple %36, 128 : i32
    %38 = arith.truncf %35 : vector<256x128xf32> to vector<256x128xbf16>
    %c0_12 = arith.constant 0 : index
    %39 = arith.index_cast %37 : i32 to index
    %40 = vector.load %arg12[%c0_12, %39] : memref<256x256xbf16, #tpu.memory_space<vmem>>, vector<256x128xbf16>
    tpu.vector_store %arg12[%c0_12, %39], %38 {strides = array<i32>} : memref<256x256xbf16, #tpu.memory_space<vmem>>, vector<256x128xbf16>,
    %c1_i32 = arith.constant 1 : i32
    %41 = arith.cmpi eq, %arg2, %c1_i32 : i32
    %42 = arith.extui %41 : i1 to i32
    %c0_i32_13 = arith.constant 0 : i32
    %43 = arith.cmpi ne, %42, %c0_i32_13 : i32
    scf.if %43 {
      %c0_14 = arith.constant 0 : index
      %c0_15 = arith.constant 0 : index
      %44 = vector.load %arg12[%c0_14, %c0_15] : memref<256x256xbf16, #tpu.memory_space<vmem>>, vector<256x256xbf16>
      %c0_16 = arith.constant 0 : index
      %c0_17 = arith.constant 0 : index
      %45 = vector.load %arg8[%c0_16, %c0_17] : memref<256x256xbf16, #tpu.memory_space<vmem>>, vector<256x256xbf16>
      %cst_18 = arith.constant dense<0.000000e+00> : vector<256x256xf32>
      %46 = tpu.matmul %44, %45, %cst_18 {dimension_numbers = #tpu.dot_dimension_numbers<[1], [0], [0], [1], [0, 0, 1, 1], [], []>} : vector<256x256xbf16>, vector<256x256xbf16>, vector<256x256xf32> -> vector<256x256xf32>
      %c0_19 = arith.constant 0 : index
      %c0_20 = arith.constant 0 : index
      %47 = vector.load %arg9[%c0_19, %c0_20] : memref<1x256xf32, #tpu.memory_space<vmem>>, vector<1x256xf32>
      %48 = vector.broadcast %47 : vector<1x256xf32> to vector<256x256xf32>
      %49 = arith.addf %46, %48 : vector<256x256xf32>
      %c0_21 = arith.constant 0 : index
      %c0_22 = arith.constant 0 : index
      %c0_23 = arith.constant 0 : index
      %50 = vector.load %arg10[%c0_21, %c0_22, %c0_23] : memref<1x256x256xf32, #tpu.memory_space<vmem>>, vector<1x256x256xf32>
      %51 = vector.shape_cast %50 : vector<1x256x256xf32> to vector<256x256xf32>
      %52 = vector.shape_cast %49 : vector<256x256xf32> to vector<1x256x256xf32>
      tpu.vector_store %arg10[%c0_21, %c0_22, %c0_23], %52 {strides = array<i32>} : memref<1x256x256xf32, #tpu.memory_space<vmem>>, vector<1x256x256xf32>,
    } else {
    }
    return
  }
  func.func @transform_0(%arg0: i32, %arg1: i32, %arg2: i32) -> (i32, i32, i32) {
    %c0_i32 = arith.constant 0 : i32
    %c0_i32_0 = arith.constant 0 : i32
    %c0_i32_1 = arith.constant 0 : i32
    return %arg0, %c0_i32, %c0_i32_0 : i32, i32, i32
  }
  func.func @transform_1(%arg0: i32, %arg1: i32, %arg2: i32) -> (i32, i32, i32) {
    %c0_i32 = arith.constant 0 : i32
    %c0_i32_0 = arith.constant 0 : i32
    %c0_i32_1 = arith.constant 0 : i32
    %c0_i32_2 = arith.constant 0 : i32
    return %c0_i32, %c0_i32_0, %c0_i32_1 : i32, i32, i32
  }
  func.func @transform_2(%arg0: i32, %arg1: i32, %arg2: i32) -> (i32, i32, i32) {
    %c0_i32 = arith.constant 0 : i32
    %c0_i32_0 = arith.constant 0 : i32
    %c0_i32_1 = arith.constant 0 : i32
    %c0_i32_2 = arith.constant 0 : i32
    return %c0_i32, %c0_i32_0, %c0_i32_1 : i32, i32, i32
  }
  func.func @transform_3(%arg0: i32, %arg1: i32, %arg2: i32) -> (i32, i32, i32) {
    %c0_i32 = arith.constant 0 : i32
    %c0_i32_0 = arith.constant 0 : i32
    %c0_i32_1 = arith.constant 0 : i32
    %c0_i32_2 = arith.constant 0 : i32
    return %c0_i32, %c0_i32_0, %c0_i32_1 : i32, i32, i32
  }
  func.func @transform_4(%arg0: i32, %arg1: i32, %arg2: i32) -> (i32, i32, i32) {
    %c0_i32 = arith.constant 0 : i32
    %c0_i32_0 = arith.constant 0 : i32
    %c0_i32_1 = arith.constant 0 : i32
    %c0_i32_2 = arith.constant 0 : i32
    return %c0_i32, %c0_i32_0, %c0_i32_1 : i32, i32, i32
  }
  func.func @transform_5(%arg0: i32, %arg1: i32, %arg2: i32) -> (i32, i32) {
    %c0_i32 = arith.constant 0 : i32
    %c0_i32_0 = arith.constant 0 : i32
    %c0_i32_1 = arith.constant 0 : i32
    return %c0_i32, %c0_i32_0 : i32, i32
  }
  func.func @transform_6(%arg0: i32, %arg1: i32, %arg2: i32) -> (i32, i32) {
    %c0_i32 = arith.constant 0 : i32
    %c0_i32_0 = arith.constant 0 : i32
    %c0_i32_1 = arith.constant 0 : i32
    return %c0_i32, %c0_i32_0 : i32, i32
  }
  func.func @transform_7(%arg0: i32, %arg1: i32, %arg2: i32) -> (i32, i32, i32) {
    %c0_i32 = arith.constant 0 : i32
    %c0_i32_0 = arith.constant 0 : i32
    return %arg0, %arg1, %c0_i32 : i32, i32, i32
  }
}

</mosaic_0001>

<bundles_post_ra>
// kernel: tpu_custom_call.1
= control target key start
LH: loop header
LB: loop body
LE: loop exit
PB: predicated region body
PF: predicated region fallthrough
CT: control target
= control target key end

     0   :  { %s7763_s0 = inlined_call_operand.hbm [shape: bf16[2,512,256], index: 0, kind: input, shape index: {}]   ;;  %s7764_s1 = inlined_call_operand.hbm [shape: bf16[2,256,128], index: 1, kind: input, shape index: {}]   ;;  %s7765_s2 = inlined_call_operand.hbm [shape: bf16[2,256,256], index: 2, kind: input, shape index: {}]   ;;  %s7766_s3 = inlined_call_operand.vmem [shape: f32[2,1,128], index: 3, kind: input, shape index: {}]   ;;  %s7767_s4 = inlined_call_operand.vmem [shape: f32[2,1,256], index: 4, kind: input, shape index: {}]   ;;  %s7768_s5 = inlined_call_operand.hbm [shape: bf16[256,256], index: 5, kind: input, shape index: {}]   ;;  %s7769_s6 = inlined_call_operand.vmem [shape: f32[1,256], index: 6, kind: input, shape index: {}]   ;;  %s7770_s7 = inlined_call_operand.hbm [shape: f32[2,512,256], index: 7, kind: output, shape index: {}]  }
   0x1   :  { %7863 = sst [smem:[#allocation100_spill]] %s7764_s1 }
   0x2   :  { %7864 = sst [smem:[#allocation101_spill]] %s7765_s2 }
   0x3   :  { %7865 = sst [smem:[#allocation102_spill]] %s7766_s3 }
   0x4   :  { %7866 = sst [smem:[#allocation103_spill]] %s7767_s4 }
   0x5   :  { %7867 = sst [smem:[#allocation104_spill]] %s7769_s6 }
   0x6   :  { %7868 = sst [smem:[#allocation105_spill]] %s7770_s7 }
   0x7   :  { %12 = vsyncpa [#allocation5], 0 }
   0x8   :  { %14 = vsyncpa [#allocation5 + $0x1], 0 }
   0x9   :  { %15 = vsyncpa [#allocation8], 0 }
   0xa   :  { %16 = vsyncpa [#allocation11], 0 }
   0xb   :  { %17 = vsyncpa [#allocation6], 0 }
   0xc   :  { %19 = vsyncpa [#allocation6 + $0x1], 0  ;;  %s6031_s24 = smov 0   ;;  %s6033_s25 = smov 0  }
   0xd   :  { %s6035_s26 = smov 0   ;;  %s6037_s27 = smov 0  }
   0xe   :  { %s6039_s28 = smov 0   ;;  %s6041_s29 = smov 0  }
   0xf   :  { %s6043_s30 = smov 0   ;;  %s6045_s8 = smov 0  }
  0x10   :  { %s6047_s9 = smov 0   ;;  %s6049_s10 = smov 0  }
  0x11   :  { %s6051_s11 = smov 0   ;;  %s6053_s12 = smov 0  }
  0x12   :  { %s6055_s13 = smov 0  }
  0x13 LB: > { %7869 = sst [smem:[#allocation17_spill]] %s5930_s24  ;;  %s4253_s14 = sadd.s32 4294967295, %s5978_s13   ;;  %s5978_s13 = sphi %s6055_s13, %s25_s13   ;;  %s5974_s12 = sphi %s6053_s12, %s8073_s12   ;;  %s5970_s11 = sphi %s6051_s11, %s8072_s11   ;;  %s5966_s10 = sphi %s6049_s10, %s8071_s10   ;;  %s5962_s9 = sphi %s6047_s9, %s8070_s9   ;;  %s5958_s8 = sphi %s6045_s8, %s8069_s8   ;;  %s5954_s30 = sphi %s6043_s30, %s8068_s30   ;;  %s5950_s29 = sphi %s6041_s29, %s8067_s29   ;;  %s5946_s28 = sphi %s6039_s28, %s8066_s28   ;;  %s5942_s27 = sphi %s6037_s27, %s8065_s27   ;;  %s5938_s26 = sphi %s6035_s26, %s8064_s26   ;;  %s5934_s25 = sphi %s6033_s25, %s8063_s25   ;;  %s5930_s24 = sphi %s6031_s24, %s8062_s24  }
  0x14   : > { %7870 = sst [smem:[#allocation18_spill]] %s5954_s30  ;;  %s4254_s15 = sadd.s32 4294967294, %s5978_s13  }
  0x15   : > { %7871 = sst [smem:[#allocation19_spill]] %s5962_s9  ;;  %p64_p0 = scmp.ne.s32.totalorder %s5946_s28, %s5942_s27 }
  0x16   : > { %p6097_p1 = scmp.eq.s32.totalorder %s4253_s14, 0  ;;  %p215_p2 = scmp.ne.s32.totalorder %s5938_s26, %s5934_s25 }
  0x17   : > { %p216_p4 = scmp.eq.s32.totalorder %s4253_s14, 7  ;;  %p221_p5 = scmp.ne.s32.totalorder %s5934_s25, %s5930_s24 }
  0x18   : > { %s7872_s16 = scalar_select %p6097_p1, 1, 0 }
  0x19   : > { %p6106_p3 = por %p6097_p1, %p64_p0  ;;  %p222_p6 = scmp.eq.s32.totalorder %s4254_s15, 7 }
  0x1a   : > { %p6112_p7 = por %p216_p4, %p215_p2  ;;  %p4255_p8 = scmp.ge.s32.totalorder %s5978_s13, 1 }
  0x1b   : > { %s7873_s18 = scalar_select %p6106_p3, 1, 0 }
  0x1c   : > { %s7874_s19 = scalar_select %p6112_p7, 1, 0 }
  0x1d   : > { %p6117_p9 = por %p222_p6, %p221_p5  ;;  %p229_p10 = scmp.lt.s32.totalorder %s5978_s13, 9 }
  0x1e   : > { %7875 = sst [smem:[#allocation20_spill]] %s7874_s19  ;;  %s5980_s22 = smov [#allocation7]  }
  0x1f   : > { %s7876_s20 = scalar_select %p6117_p9, 1, 0 }
  0x20   : > { %p6122_p11 = pnand %p4255_p8, %p229_p10  ;;  %s241_s23 = sshll.u32 %s5980_s22, 4  ;;  %s242_s23 = int_to_ptr.vmem [resolvable:$true] %s241_s23 }
  0x21   : > { %7877 = sst [smem:[#allocation21_spill]] %s7876_s20  ;;  %s5981_s14 = smov [#allocation9]  }
  0x22   : > { %s7878_s21 = scalar_select %p6122_p11, 1, 0 }
  0x23   : > { %p5003_p12 = pneg %p6122_p11  ;;  %s254_s15 = sshll.u32 %s5981_s14, 4  ;;  %s6134_s15 = int_to_ptr.vmem [resolvable:$true] %s254_s15 }
  0x24   : > { %s7880_s1 = sld [smem:[#allocation100_spill]] }
  0x25   : > { %p6130_p13 = pnand %p5003_p12, %p6097_p1 }
  0x27   : > { %p6144_p2 = pneg %p6130_p13 }
  0x2a   : > { %s5718_s24 = scalar_lea.hbm %s7880_s1, 4096 }
  0x2b   : > { %p5719_p0 = scmp.ne.s32.totalorder %s7880_s1, %s5718_s24  ;;  %p5725_p6 = scmp.lt.u32.totalorder %s5718_s24, %s7880_s1 }
  0x2d   : > { %p5721_p4 = pnand %p6144_p2, %p5719_p0 }
  0x2f   : > { %p5722_p5 = pneg %p5721_p4 }
  0x31   : > { %p5727_p8 = pnand %p5725_p6, %p5722_p5 }
  0x33   : > { %5730 = shalt.err (!%p5727_p8)
}
  0x34   : > { %s5731_s17 = scalar_lea.vmem %s242_s23, 4096  ;;  %p5739_p7 = scmp.lt.s32.totalorder %s242_s23, %s242_s23 }
  0x35   : > { %p5732_p10 = scmp.ne.s32.totalorder %s242_s23, %s5731_s17  ;;  %p5740_p1 = scmp.lt.s32.totalorder %s5731_s17, %s5731_s17 }
  0x37   : > { %p5734_p12 = pnand %p5732_p10, %p6144_p2  ;;  %p5741_p3 = por %p5740_p1, %p5739_p7 }
  0x39   : > { %p5735_p9 = pneg %p5734_p12 }
  0x3b   : > { %p5742_p11 = pnand %p5741_p3, %p5735_p9 }
  0x3d   : > { %5745 = shalt.err (!%p5742_p11)
}
  0x3e   : > { %s5982_s7 = smov 64   ;;  %s5983_s19 = smov 4  }
  0x3f   : > { %5006 = dma.hbm_to_vmem [thread:$0]  (!%p6130_p13), %s7880_s1, 4096, %s242_s23, [#allocation8], %s5982_s7, %s5982_s7, %s5983_s19  }
  0x40   : > { %s7882_s2 = sld [smem:[#allocation101_spill]] }
  0x46   : > { %s5746_s6 = scalar_lea.hbm %s7882_s2, 8192 }
  0x47   : > { %p5747_p0 = scmp.ne.s32.totalorder %s7882_s2, %s5746_s6  ;;  %p5753_p7 = scmp.lt.u32.totalorder %s5746_s6, %s7882_s2 }
  0x49   : > { %p5749_p1 = pnand %p5747_p0, %p6144_p2 }
  0x4b   : > { %p5750_p3 = pneg %p5749_p1 }
  0x4d   : > { %p5755_p9 = pnand %p5753_p7, %p5750_p3 }
  0x4f   : > { %5758 = shalt.err (!%p5755_p9)
}
  0x50   : > { %s5759_s23 = scalar_lea.vmem %s6134_s15, 8192  ;;  %p5767_p6 = scmp.lt.s32.totalorder %s6134_s15, %s6134_s15 }
  0x51   : > { %p5760_p11 = scmp.ne.s32.totalorder %s6134_s15, %s5759_s23  ;;  %p5768_p8 = scmp.lt.s32.totalorder %s5759_s23, %s5759_s23 }
  0x53   : > { %p5762_p4 = pnand %p5760_p11, %p6144_p2  ;;  %p5769_p10 = por %p5768_p8, %p5767_p6 }
  0x55   : > { %p5763_p5 = pneg %p5762_p4 }
  0x57   : > { %p5770_p12 = pnand %p5769_p10, %p5763_p5 }
  0x59   : > { %5773 = shalt.err (!%p5770_p12)
}
  0x5a   : > { %s7783_s3 = smov 128   ;;  %s7784_s4 = smov 8  }
  0x5b   : > { %5009 = dma.hbm_to_vmem [thread:$0]  (!%p6130_p13), %s7882_s2, 8192, %s6134_s15, [#allocation8], %s7783_s3, %s7783_s3, %s7784_s4  }
  0x5c   : > { %s5986_s7 = smov [#allocation10]   ;;  %s5774_s20 = scalar_lea.hbm %s7768_s5, 4096 }
  0x5d   : > { %s273_s19 = sshll.u32 %s5986_s7, 4  ;;  %p5775_p0 = scmp.ne.s32.totalorder %s7768_s5, %s5774_s20  ;;  %s274_s19 = int_to_ptr.vmem [resolvable:$true] %s273_s19 }
  0x5e   : > { %p5781_p7 = scmp.lt.u32.totalorder %s5774_s20, %s7768_s5 }
  0x5f   : > { %p5777_p1 = pnand %p5775_p0, %p6144_p2 }
  0x61   : > { %p5778_p3 = pneg %p5777_p1 }
  0x63   : > { %p5783_p9 = pnand %p5781_p7, %p5778_p3 }
  0x65   : > { %5786 = shalt.err (!%p5783_p9)
}
  0x66   : > { %s5787_s15 = scalar_lea.vmem %s274_s19, 4096  ;;  %p5795_p6 = scmp.lt.s32.totalorder %s274_s19, %s274_s19 }
  0x67   : > { %p5788_p11 = scmp.ne.s32.totalorder %s274_s19, %s5787_s15  ;;  %p5796_p8 = scmp.lt.s32.totalorder %s5787_s15, %s5787_s15 }
  0x69   : > { %p5790_p4 = pnand %p5788_p11, %p6144_p2  ;;  %p5797_p10 = por %p5796_p8, %p5795_p6 }
  0x6b   : > { %p5791_p5 = pneg %p5790_p4 }
  0x6d   : > { %p5798_p12 = pnand %p5797_p10, %p5791_p5 }
  0x6f   : > { %5801 = shalt.err (!%p5798_p12)
}
  0x70   : > { %5012 = dma.hbm_to_vmem [thread:$0]  (!%p6130_p13), %s7768_s5, 4096, %s274_s19, [#allocation11], %s7783_s3, %s7783_s3, %s7784_s4  }
  0x71   : > { %s37_s27 = sadd.s32 1, %s5966_s10  ;;  %s40_s22 = sadd.s32 1, %s5970_s11 }
  0x72   : > { %p38_p2 = scmp.ge.s32.totalorder %s37_s27, 2  ;;  %s44_s30 = sadd.s32 1, %s5974_s12 }
  0x73   : > { %s51_s7 = sadd.s32 1, %s5950_s29  ;;  %p58_p0 = scmp.ne.s32.totalorder %s5950_s29, %s5946_s28 }
  0x74   : > { %s8075_s27 = smov (%p38_p2, %s37_s27), 0  ;;  %s8077_s22 = smov (!%p38_p2, %s40_s22), %s5970_s11 }
  0x75   : > { %p59_p1 = scmp.eq.s32.totalorder %s5978_s13, 0  ;;  %p42_p3 = scmp.ge.s32.totalorder %s8077_s22, 2 }
  0x76   : > { %p5024_p7 = scmp.lt.s32.totalorder %s5978_s13, 8  ;;  %s290_s19 = sand.u32 1, %s5950_s29  }
  0x77   : > { %p6218_p9 = por %p59_p1, %p58_p0  ;;  %s8079_s22 = smov (%p42_p3, %s8077_s22), 0 }
  0x78   : > { %s8081_s30 = smov (!%p42_p3, %s44_s30), %s5974_s12  ;;  %s201_s24 = ssub.s32 %s5970_s11, %s8079_s22 }
  0x79   : > { %p46_p13 = scmp.ge.s32.totalorder %s8081_s30, 2  ;;  %s4260_s20 = sshll.u32 %s290_s19, 9 }
  0x7a   : > { %s4468_s14 = sshll.u32 %s5974_s12, 13  ;;  %s294_s1 = scalar_lea.vmem [#allocation4], %s4260_s20 }
  0x7b   : > { %s8083_s30 = smov (%p46_p13, %s8081_s30), 0  ;;  %s6234_s15 = scalar_lea.hbm %s7763_s0, %s4468_s14 }
  0x7c   : > { %s301_s6 = sshll.u32 %s294_s1, 4  ;;  %s48_s3 = ssub.s32 %s5974_s12, %s8083_s30  ;;  %s6238_s6 = int_to_ptr.vmem [resolvable:$true] %s301_s6 }
  0x7d   : > { %p49_p11 = scmp.eq.s32.totalorder %s48_s3, 0  ;;  %s202_s4 = sor.u32 %s201_s24, %s48_s3 }
  0x7e   : > { %p203_p4 = scmp.eq.s32.totalorder %s202_s4, 0  ;;  %p6244_p5 = pnand %p5024_p7, %p6218_p9 }
  0x7f   : > { %s6249_s14 = scalar_select %p49_p11, %s5950_s29, %s51_s7  }
  0x80   : > { %s7885_s20 = sadd.s32 1, %s5938_s26  ;;  %s6256_s23 = scalar_lea.sflag [#allocation5], %s290_s19 }
  0x81   : > { %s6254_s17 = scalar_select %p203_p4, %s5938_s26, %s7885_s20  }
  0x82   : > { %s5802_s1 = scalar_lea.hbm %s6234_s15, 8192  ;;  %p5804_p8 = pneg %p6244_p5 }
  0x83   : > { %p5803_p6 = scmp.ne.s32.totalorder %s6234_s15, %s5802_s1  ;;  %s5807_s9 = scalar_lea.hbm %s7763_s0, 16384 }
  0x84   : > { %p5808_p2 = scmp.lt.u32.totalorder %s6234_s15, %s7763_s0  ;;  %p5809_p0 = scmp.lt.u32.totalorder %s5807_s9, %s5802_s1 }
  0x85   : > { %p5805_p10 = pnand %p5804_p8, %p5803_p6  ;;  %p5811_p3 = scmp.lt.u32.totalorder %s5802_s1, %s6234_s15 }
  0x86   : > { %p5810_p1 = por %p5809_p0, %p5808_p2 }
  0x87   : > { %p5806_p12 = pneg %p5805_p10 }
  0x88   : > { %p5812_p7 = por %p5811_p3, %p5810_p1 }
  0x8a   : > { %p5813_p9 = pnand %p5812_p7, %p5806_p12 }
  0x8c   : > { %5816 = shalt.err (!%p5813_p9)
}
  0x8d   : > { %s5817_s19 = scalar_lea.vmem %s6238_s6, 8192  ;;  %s5987_s20 = smov [#allocation4]  }
  0x8e   : > { %p5818_p13 = scmp.ne.s32.totalorder %s6238_s6, %s5817_s19  ;;  %s5822_s3 = sshll.u32 %s5987_s20, 4  ;;  %s5823_s3 = int_to_ptr.vmem [resolvable:$false] %s5822_s3 }
  0x8f   : > { %s5824_s4 = scalar_lea.vmem %s5823_s3, 16384  ;;  %p5825_p6 = scmp.lt.s32.totalorder %s6238_s6, %s5823_s3 }
  0x90   : > { %p5820_p11 = pnand %p5818_p13, %p5804_p8  ;;  %p5826_p10 = scmp.lt.s32.totalorder %s5824_s4, %s5817_s19 }
  0x92   : > { %p5821_p4 = pneg %p5820_p11  ;;  %p5827_p2 = por %p5826_p10, %p5825_p6 }
  0x94   : > { %p5828_p0 = pnand %p5827_p2, %p5821_p4 }
  0x96   : > { %5831 = shalt.err (!%p5828_p0)
}
  0x97   : > { %s7886_s1 = smov 8   ;;  %s7887_s9 = smov 128  }
  0x98   : > { %5016 = dma.hbm_to_vmem [thread:$0]  (!%p6244_p5), %s6234_s15, 8192, %s6238_s6, %s6256_s23, %s7887_s9, %s7887_s9, %s7886_s1  }
  0x99   : > { %p7888_p8 = scmp.ne.s32.totalorder %s7878_s21, 0 }
  0x9b   : > { %313 = sbr.rel (%p7888_p8) target bundleno = 1921 (0x781), region = 48 }
  0xa2   : > { %s315_s24 = sand.u32 1, %s5946_s28   ;;  %p7889_p12 = scmp.ne.s32.totalorder %s7873_s18, 0 }
  0xa3   : > { %s4264_s7 = sshll.u32 %s315_s24, 9  ;;  %s316_s19 = scalar_lea.sflag [#allocation5], %s315_s24 }
  0xa4   : > { %s6290_s20 = scalar_lea.vmem [#allocation4], %s4264_s7 }
  0xa5   : > { %5913 = dma.done.wait (%p7889_p12), %s316_s19, 8192  }
  0xa6   : > { %5915 = vsyncadd (%p7889_p12), %s316_s19, 4294959104  ;;  %p7890_p1 = scmp.ne.s32.totalorder %s7872_s16, 0 }
  0xa8   : > { %5917 = dma.done.wait (%p7890_p1), [#allocation8], 12288  }
  0xa9   : > { %5919 = vsyncadd (%p7890_p1), [#allocation8], 4294955008 }
  0xaa   : > { %5921 = dma.done.wait (%p7890_p1), [#allocation11], 4096  }
  0xab   : > { %5923 = vsyncadd (%p7890_p1), [#allocation11], 4294963200  ;;  %s359_s2 = sand.u32 1, %s5934_s25   ;;  %p4269_p5 = scmp.ne.s32.totalorder %s5958_s8, 0 }
  0xac   : > { %s4268_s21 = sshll.u32 %s359_s2, 9  ;;  %s7891_s18 = sld [smem:[#allocation18_spill]] (!%p4269_p5)  ;;  %v5192_v0 = vld [vmem:[%s6290_s20 + $0x4] ss:$8 sps:$4 sm:$0xff] (!%p4269_p5)   ;;  %v5190_v34 = vld [vmem:[%s6290_s20] ss:$8 sps:$4 sm:$0xff] (!%p4269_p5)  }
  0xad   : > { %s6307_s15 = scalar_lea.vmem [#allocation12], %s4268_s21  ;;  %367 = sbr.rel (%p4269_p5) target bundleno = 585 (0x249), region = 68  ;;  %993 = vmatprep.mubr.bf16.mxu0 (!%p4269_p5), %v5192_v0  ;;  %v5195_v14 = vld [vmem:[%s6290_s20 + $0x104] ss:$8 sps:$4 sm:$0xff] (!%p4269_p5)   ;;  %v5193_v35 = vld [vmem:[%s6290_s20 + $0x100] ss:$8 sps:$4 sm:$0xff] (!%p4269_p5)  }
  0xae   : > { %1153 = vmatprep.mubr.bf16.mxu1 (!%p4269_p5), %v5195_v14  ;;  %v5196_v36 = vld [vmem:[%s6290_s20 + $0x14] ss:$8 sps:$4 sm:$0xff] (!%p4269_p5)   ;;  %v5200_v38 = vld [vmem:[%s6290_s20 + $0x10] ss:$8 sps:$4 sm:$0xff] (!%p4269_p5)   ;;  %v5202_v40 = vld [vmem:[%s6290_s20 + $0x24] ss:$8 sps:$4 sm:$0xff] (!%p4269_p5)  }
  0xaf   : > { %v5198_v37 = vld [vmem:[%s6290_s20 + $0x114] ss:$8 sps:$4 sm:$0xff] (!%p4269_p5)   ;;  %v5201_v39 = vld [vmem:[%s6290_s20 + $0x110] ss:$8 sps:$4 sm:$0xff] (!%p4269_p5)   ;;  %v5204_v41 = vld [vmem:[%s6290_s20 + $0x124] ss:$8 sps:$4 sm:$0xff] (!%p4269_p5)  }
  0xb0   : > { %v5206_v42 = vld [vmem:[%s6290_s20 + $0x20] ss:$8 sps:$4 sm:$0xff] (!%p4269_p5)   ;;  %v5208_v44 = vld [vmem:[%s6290_s20 + $0x34] ss:$8 sps:$4 sm:$0xff] (!%p4269_p5)   ;;  %v5212_v46 = vld [vmem:[%s6290_s20 + $0x30] ss:$8 sps:$4 sm:$0xff] (!%p4269_p5)  }
  0xb1   : > { %v5207_v43 = vld [vmem:[%s6290_s20 + $0x120] ss:$8 sps:$4 sm:$0xff] (!%p4269_p5)   ;;  %v5210_v45 = vld [vmem:[%s6290_s20 + $0x134] ss:$8 sps:$4 sm:$0xff] (!%p4269_p5)   ;;  %v5213_v47 = vld [vmem:[%s6290_s20 + $0x130] ss:$8 sps:$4 sm:$0xff] (!%p4269_p5)  }
  0xb2   : > { %s4469_s6 = sshll.u32 (!%p4269_p5), %s7891_s18, 8  ;;  %v5214_v48 = vld [vmem:[%s6290_s20 + $0x44] ss:$8 sps:$4 sm:$0xff] (!%p4269_p5)   ;;  %v5218_v50 = vld [vmem:[%s6290_s20 + $0x40] ss:$8 sps:$4 sm:$0xff] (!%p4269_p5)   ;;  %s4272_s16 = sshll.u32 (!%p4269_p5), %s7891_s18, 1 }
  0xb3   : > { %s6312_s23 = scalar_lea.vmem (!%p4269_p5), [#allocation9], %s4469_s6  ;;  %v5216_v49 = vld [vmem:[%s6290_s20 + $0x144] ss:$8 sps:$4 sm:$0xff] (!%p4269_p5)   ;;  %v5219_v51 = vld [vmem:[%s6290_s20 + $0x140] ss:$8 sps:$4 sm:$0xff] (!%p4269_p5)   ;;  %s7892_s1 = sld [smem:[#allocation103_spill]] (!%p4269_p5) }
  0xb4   : > { %v5142_v1 = vld [vmem:[%s6312_s23 + $0x4] ss:$8 sps:$4 sm:$0xff]   ;;  %v5144_v2 = vld [vmem:[%s6312_s23] ss:$8 sps:$4 sm:$0xff]   ;;  %v5145_v3 = vld [vmem:[%s6312_s23 + $0x14] ss:$8 sps:$4 sm:$0xff]  }
  0xb5   : > { %961 = vmatprep.subr.bf16.mxu0 %v5142_v1  ;;  %4907 = vmatprep.subr.bf16.mxu1 %v5142_v1  ;;  %v5147_v4 = vld [vmem:[%s6312_s23 + $0x10] ss:$8 sps:$4 sm:$0xff]   ;;  %v5148_v5 = vld [vmem:[%s6312_s23 + $0x24] ss:$8 sps:$4 sm:$0xff]   ;;  %v5150_v6 = vld [vmem:[%s6312_s23 + $0x20] ss:$8 sps:$4 sm:$0xff]  }
  0xb6   : > { %962 = vmatpush1.bf16.msra.mxu0 %v5144_v2  ;;  %4923 = vmatpush1.bf16.msra.mxu1 %v5144_v2  ;;  %v5151_v7 = vld [vmem:[%s6312_s23 + $0x34] ss:$8 sps:$4 sm:$0xff]   ;;  %v5153_v8 = vld [vmem:[%s6312_s23 + $0x30] ss:$8 sps:$4 sm:$0xff]   ;;  %v5154_v9 = vld [vmem:[%s6312_s23 + $0x44] ss:$8 sps:$4 sm:$0xff]  }
  0xb7   : > { %963 = vmatprep.subr.bf16.mxu0 %v5145_v3  ;;  %4908 = vmatprep.subr.bf16.mxu1 %v5145_v3  ;;  %v5156_v10 = vld [vmem:[%s6312_s23 + $0x40] ss:$8 sps:$4 sm:$0xff]   ;;  %v5157_v11 = vld [vmem:[%s6312_s23 + $0x54] ss:$8 sps:$4 sm:$0xff]   ;;  %v5159_v12 = vld [vmem:[%s6312_s23 + $0x50] ss:$8 sps:$4 sm:$0xff]  }
  0xb8   : > { %v5160_v13 = vld [vmem:[%s6312_s23 + $0x64] ss:$8 sps:$4 sm:$0xff]   ;;  %v5162_v15 = vld [vmem:[%s6312_s23 + $0x60] ss:$8 sps:$4 sm:$0xff]   ;;  %v5163_v16 = vld [vmem:[%s6312_s23 + $0x74] ss:$8 sps:$4 sm:$0xff]  }
  0xb9   : > { %v5165_v17 = vld [vmem:[%s6312_s23 + $0x70] ss:$8 sps:$4 sm:$0xff]   ;;  %v5166_v18 = vld [vmem:[%s6312_s23 + $0x84] ss:$8 sps:$4 sm:$0xff]   ;;  %v5168_v19 = vld [vmem:[%s6312_s23 + $0x80] ss:$8 sps:$4 sm:$0xff]   ;;  %s468_s9 = scalar_lea.vmem %s7892_s1, %s4272_s16 }
  0xba   : > { %964 = vmatpush1.bf16.msra.mxu0 %v5147_v4  ;;  %4924 = vmatpush1.bf16.msra.mxu1 %v5147_v4  ;;  %v5169_v20 = vld [vmem:[%s6312_s23 + $0x94] ss:$8 sps:$4 sm:$0xff]   ;;  %v5171_v21 = vld [vmem:[%s6312_s23 + $0x90] ss:$8 sps:$4 sm:$0xff]   ;;  %v5172_v22 = vld [vmem:[%s6312_s23 + $0xa4] ss:$8 sps:$4 sm:$0xff]  }
  0xbb   : > { %965 = vmatprep.subr.bf16.mxu0 %v5148_v5  ;;  %4909 = vmatprep.subr.bf16.mxu1 %v5148_v5  ;;  %v5174_v23 = vld [vmem:[%s6312_s23 + $0xa0] ss:$8 sps:$4 sm:$0xff]   ;;  %v5175_v24 = vld [vmem:[%s6312_s23 + $0xb4] ss:$8 sps:$4 sm:$0xff]   ;;  %v5177_v25 = vld [vmem:[%s6312_s23 + $0xb0] ss:$8 sps:$4 sm:$0xff]  }
  0xbc   : > { %v5178_v26 = vld [vmem:[%s6312_s23 + $0xc4] ss:$8 sps:$4 sm:$0xff]   ;;  %v5180_v27 = vld [vmem:[%s6312_s23 + $0xc0] ss:$8 sps:$4 sm:$0xff]   ;;  %v5181_v28 = vld [vmem:[%s6312_s23 + $0xd4] ss:$8 sps:$4 sm:$0xff]  }
  0xbd   : > { %v5183_v29 = vld [vmem:[%s6312_s23 + $0xd0] ss:$8 sps:$4 sm:$0xff]   ;;  %v5184_v30 = vld [vmem:[%s6312_s23 + $0xe4] ss:$8 sps:$4 sm:$0xff]   ;;  %v5186_v31 = vld [vmem:[%s6312_s23 + $0xe0] ss:$8 sps:$4 sm:$0xff]  }
  0xbe   : > { %966 = vmatpush1.bf16.msra.mxu0 %v5150_v6  ;;  %4925 = vmatpush1.bf16.msra.mxu1 %v5150_v6  ;;  %v5187_v32 = vld [vmem:[%s6312_s23 + $0xf4] ss:$8 sps:$4 sm:$0xff]   ;;  %v5189_v33 = vld [vmem:[%s6312_s23 + $0xf0] ss:$8 sps:$4 sm:$0xff]   ;;  %v5226_v56 = vld [vmem:[%s6290_s20 + $0x64] ss:$8 sps:$4 sm:$0xff]  }
  0xbf   : > { %967 = vmatprep.subr.bf16.mxu0 %v5151_v7  ;;  %4910 = vmatprep.subr.bf16.mxu1 %v5151_v7  ;;  %v5220_v52 = vld [vmem:[%s6290_s20 + $0x54] ss:$8 sps:$4 sm:$0xff]   ;;  %v5224_v54 = vld [vmem:[%s6290_s20 + $0x50] ss:$8 sps:$4 sm:$0xff]   ;;  %v5228_v57 = vld [vmem:[%s6290_s20 + $0x164] ss:$8 sps:$4 sm:$0xff]  }
  0xc0   : > { %v5222_v53 = vld [vmem:[%s6290_s20 + $0x154] ss:$8 sps:$4 sm:$0xff]   ;;  %v5225_v55 = vld [vmem:[%s6290_s20 + $0x150] ss:$8 sps:$4 sm:$0xff]   ;;  %v5230_v58 = vld [vmem:[%s6290_s20 + $0x60] ss:$8 sps:$4 sm:$0xff]  }
  0xc1   : > { %v5231_v59 = vld [vmem:[%s6290_s20 + $0x160] ss:$8 sps:$4 sm:$0xff]   ;;  %v5232_v60 = vld [vmem:[%s6290_s20 + $0x74] ss:$8 sps:$4 sm:$0xff]   ;;  %v5236_v62 = vld [vmem:[%s6290_s20 + $0x70] ss:$8 sps:$4 sm:$0xff]  }
  0xc2   : > { %968 = vmatpush1.bf16.msra.mxu0 %v5153_v8  ;;  %4926 = vmatpush1.bf16.msra.mxu1 %v5153_v8  ;;  %v5234_v61 = vld [vmem:[%s6290_s20 + $0x174] ss:$8 sps:$4 sm:$0xff]   ;;  %v5237_v63 = vld [vmem:[%s6290_s20 + $0x170] ss:$8 sps:$4 sm:$0xff]   ;;  %v5238_v0 = vld [vmem:[%s6290_s20 + $0x84] ss:$8 sps:$4 sm:$0xff]  }
  0xc3   : > { %969 = vmatprep.subr.bf16.mxu0 %v5154_v9  ;;  %4911 = vmatprep.subr.bf16.mxu1 %v5154_v9  ;;  %v5240_v1 = vld [vmem:[%s6290_s20 + $0x184] ss:$8 sps:$4 sm:$0xff]   ;;  %v5242_v2 = vld [vmem:[%s6290_s20 + $0x80] ss:$8 sps:$4 sm:$0xff]   ;;  %v5244_v4 = vld [vmem:[%s6290_s20 + $0x94] ss:$8 sps:$4 sm:$0xff]  }
  0xc4   : > { %v5243_v3 = vld [vmem:[%s6290_s20 + $0x180] ss:$8 sps:$4 sm:$0xff]   ;;  %v5246_v5 = vld [vmem:[%s6290_s20 + $0x194] ss:$8 sps:$4 sm:$0xff]   ;;  %v5248_v6 = vld [vmem:[%s6290_s20 + $0x90] ss:$8 sps:$4 sm:$0xff]  }
  0xc5   : > { %v5249_v7 = vld [vmem:[%s6290_s20 + $0x190] ss:$8 sps:$4 sm:$0xff]   ;;  %v5250_v8 = vld [vmem:[%s6290_s20 + $0xa4] ss:$8 sps:$4 sm:$0xff]   ;;  %s4470_s24 = sshll.u32 %s7891_s18, 9 }
  0xc6   : > { %970 = vmatpush1.bf16.msra.mxu0 %v5156_v10  ;;  %4927 = vmatpush1.bf16.msra.mxu1 %v5156_v10  ;;  %v5252_v9 = vld [vmem:[%s6290_s20 + $0x1a4] ss:$8 sps:$4 sm:$0xff]   ;;  %v5254_v10 = vld [vmem:[%s6290_s20 + $0xa0] ss:$8 sps:$4 sm:$0xff]   ;;  %v5260_v14 = vld [vmem:[%s6290_s20 + $0xb0] ss:$8 sps:$4 sm:$0xff]  }
  0xc7   : > { %971 = vmatprep.subr.bf16.mxu0 %v5157_v11  ;;  %4912 = vmatprep.subr.bf16.mxu1 %v5157_v11  ;;  %v5255_v11 = vld [vmem:[%s6290_s20 + $0x1a0] ss:$8 sps:$4 sm:$0xff]   ;;  %s6426_s7 = scalar_lea.vmem [#allocation2], %s4470_s24 }
  0xca   : > { %972 = vmatpush1.bf16.msra.mxu0 %v5159_v12  ;;  %4928 = vmatpush1.bf16.msra.mxu1 %v5159_v12  ;;  %v5256_v12 = vld [vmem:[%s6290_s20 + $0xb4] ss:$8 sps:$4 sm:$0xff]  }
  0xcb   : > { %973 = vmatprep.subr.bf16.mxu0 %v5160_v13  ;;  %4913 = vmatprep.subr.bf16.mxu1 %v5160_v13  ;;  %v5258_v13 = vld [vmem:[%s6290_s20 + $0x1b4] ss:$8 sps:$4 sm:$0xff]  }
  0xce   : > { %974 = vmatpush1.bf16.msra.mxu0 %v5162_v15  ;;  %4929 = vmatpush1.bf16.msra.mxu1 %v5162_v15  ;;  %v5261_v15 = vld [vmem:[%s6290_s20 + $0x1b0] ss:$8 sps:$4 sm:$0xff]  }
  0xcf   : > { %975 = vmatprep.subr.bf16.mxu0 %v5163_v16  ;;  %4914 = vmatprep.subr.bf16.mxu1 %v5163_v16  ;;  %v5262_v16 = vld [vmem:[%s6290_s20 + $0xc4] ss:$8 sps:$4 sm:$0xff]  }
  0xd2   : > { %976 = vmatpush1.bf16.msra.mxu0 %v5165_v17  ;;  %4930 = vmatpush1.bf16.msra.mxu1 %v5165_v17  ;;  %v5264_v17 = vld [vmem:[%s6290_s20 + $0x1c4] ss:$8 sps:$4 sm:$0xff]  }
  0xd3   : > { %977 = vmatprep.subr.bf16.mxu0 %v5166_v18  ;;  %4915 = vmatprep.subr.bf16.mxu1 %v5166_v18  ;;  %v5266_v18 = vld [vmem:[%s6290_s20 + $0xc0] ss:$8 sps:$4 sm:$0xff]  }
  0xd6   : > { %978 = vmatpush1.bf16.msra.mxu0 %v5168_v19  ;;  %4931 = vmatpush1.bf16.msra.mxu1 %v5168_v19  ;;  %v5267_v19 = vld [vmem:[%s6290_s20 + $0x1c0] ss:$8 sps:$4 sm:$0xff]  }
  0xd7   : > { %979 = vmatprep.subr.bf16.mxu0 %v5169_v20  ;;  %4916 = vmatprep.subr.bf16.mxu1 %v5169_v20  ;;  %v5268_v20 = vld [vmem:[%s6290_s20 + $0xd4] ss:$8 sps:$4 sm:$0xff]  }
  0xda   : > { %980 = vmatpush1.bf16.msra.mxu0 %v5171_v21  ;;  %4932 = vmatpush1.bf16.msra.mxu1 %v5171_v21  ;;  %v5270_v21 = vld [vmem:[%s6290_s20 + $0x1d4] ss:$8 sps:$4 sm:$0xff]  }
  0xdb   : > { %981 = vmatprep.subr.bf16.mxu0 %v5172_v22  ;;  %4917 = vmatprep.subr.bf16.mxu1 %v5172_v22  ;;  %v5272_v22 = vld [vmem:[%s6290_s20 + $0xd0] ss:$8 sps:$4 sm:$0xff]  }
  0xde   : > { %982 = vmatpush1.bf16.msra.mxu0 %v5174_v23  ;;  %4933 = vmatpush1.bf16.msra.mxu1 %v5174_v23  ;;  %v5273_v23 = vld [vmem:[%s6290_s20 + $0x1d0] ss:$8 sps:$4 sm:$0xff]  }
  0xdf   : > { %983 = vmatprep.subr.bf16.mxu0 %v5175_v24  ;;  %4918 = vmatprep.subr.bf16.mxu1 %v5175_v24  ;;  %v5274_v24 = vld [vmem:[%s6290_s20 + $0xe4] ss:$8 sps:$4 sm:$0xff]  }
  0xe2   : > { %984 = vmatpush1.bf16.msra.mxu0 %v5177_v25  ;;  %4934 = vmatpush1.bf16.msra.mxu1 %v5177_v25  ;;  %v5276_v25 = vld [vmem:[%s6290_s20 + $0x1e4] ss:$8 sps:$4 sm:$0xff]  }
  0xe3   : > { %985 = vmatprep.subr.bf16.mxu0 %v5178_v26  ;;  %4919 = vmatprep.subr.bf16.mxu1 %v5178_v26  ;;  %v5278_v26 = vld [vmem:[%s6290_s20 + $0xe0] ss:$8 sps:$4 sm:$0xff]  }
  0xe6   : > { %986 = vmatpush1.bf16.msra.mxu0 %v5180_v27  ;;  %4935 = vmatpush1.bf16.msra.mxu1 %v5180_v27  ;;  %v5279_v27 = vld [vmem:[%s6290_s20 + $0x1e0] ss:$8 sps:$4 sm:$0xff]  }
  0xe7   : > { %987 = vmatprep.subr.bf16.mxu0 %v5181_v28  ;;  %4920 = vmatprep.subr.bf16.mxu1 %v5181_v28  ;;  %v5280_v28 = vld [vmem:[%s6290_s20 + $0xf4] ss:$8 sps:$4 sm:$0xff]  }
  0xea   : > { %988 = vmatpush1.bf16.msra.mxu0 %v5183_v29  ;;  %4936 = vmatpush1.bf16.msra.mxu1 %v5183_v29  ;;  %v5282_v29 = vld [vmem:[%s6290_s20 + $0x1f4] ss:$8 sps:$4 sm:$0xff]  }
  0xeb   : > { %989 = vmatprep.subr.bf16.mxu0 %v5184_v30  ;;  %4921 = vmatprep.subr.bf16.mxu1 %v5184_v30  ;;  %v5284_v30 = vld [vmem:[%s6290_s20 + $0xf0] ss:$8 sps:$4 sm:$0xff]  }
  0xee   : > { %990 = vmatpush1.bf16.msra.mxu0 %v5186_v31  ;;  %4937 = vmatpush1.bf16.msra.mxu1 %v5186_v31  ;;  %v5285_v31 = vld [vmem:[%s6290_s20 + $0x1f0] ss:$8 sps:$4 sm:$0xff]  }
  0xef   : > { %991 = vmatprep.subr.bf16.mxu0 %v5187_v32  ;;  %4922 = vmatprep.subr.bf16.mxu1 %v5187_v32  ;;  %v471_v32 = vlaneseq }
  0xf2   : > { %992 = vmatpush1.bf16.msra.mxu0 %v5189_v33  ;;  %4938 = vmatpush1.bf16.msra.mxu1 %v5189_v33  ;;  %v472_v33 = vshrl.u32 %v471_v32, 7 }
  0xf5   : > { %994 = vmatmul.mubr.bf16.vlgmr.msra.gmra.mrb[0].mxu0 %v5190_v34  ;;  %1154 = vmatmul.mubr.bf16.vlgmr.msra.gmra.mrb[0].mxu1 %v5193_v35  ;;  %v473_v34 = vsub.s32 0, %v472_v33  ;;  %v469_v35 = vld [vmem:[%s468_s9] sm:$0x3] }
  0xf6   : > { %1003 = vmatprep.mubr.bf16.mxu0 %v5196_v36  ;;  %1163 = vmatprep.mubr.bf16.mxu1 %v5198_v37  ;;  %v477_v36 = vsub.s32 1, %v472_v33 }
  0xf7   : > { %v6413_v37 = vrot.slane %v469_v35, %v473_v34 }
  0xfd   : > { %1004 = vmatmul.mubr.bf16.gmra.mrb[4].mxu0 %v5200_v38  ;;  %1164 = vmatmul.mubr.bf16.gmra.mrb[4].mxu1 %v5201_v39 }
  0xfe   : > { %1013 = vmatprep.mubr.bf16.mxu0 %v5202_v40  ;;  %1173 = vmatprep.mubr.bf16.mxu1 %v5204_v41  ;;  %v6415_v40 = vrot.slane %v469_v35, %v477_v36 }
 0x105   : > { %1014 = vmatmul.mubr.bf16.gmra.mrb[8].mxu0 %v5206_v42  ;;  %1174 = vmatmul.mubr.bf16.gmra.mrb[8].mxu1 %v5207_v43 }
 0x106   : > { %1023 = vmatprep.mubr.bf16.mxu0 %v5208_v44  ;;  %1183 = vmatprep.mubr.bf16.mxu1 %v5210_v45 }
 0x10d   : > { %1024 = vmatmul.mubr.bf16.gmra.mrb[12].mxu0 %v5212_v46  ;;  %1184 = vmatmul.mubr.bf16.gmra.mrb[12].mxu1 %v5213_v47 }
 0x10e   : > { %1033 = vmatprep.mubr.bf16.mxu0 %v5214_v48  ;;  %1193 = vmatprep.mubr.bf16.mxu1 %v5216_v49 }
 0x115   : > { %1034 = vmatmul.mubr.bf16.gmra.mrb[16].mxu0 %v5218_v50  ;;  %1194 = vmatmul.mubr.bf16.gmra.mrb[16].mxu1 %v5219_v51 }
 0x116   : > { %1043 = vmatprep.mubr.bf16.mxu0 %v5220_v52  ;;  %1203 = vmatprep.mubr.bf16.mxu1 %v5222_v53 }
 0x11d   : > { %1044 = vmatmul.mubr.bf16.gmra.mrb[20].mxu0 %v5224_v54  ;;  %1204 = vmatmul.mubr.bf16.gmra.mrb[20].mxu1 %v5225_v55 }
 0x11e   : > { %1053 = vmatprep.mubr.bf16.mxu0 %v5226_v56  ;;  %1213 = vmatprep.mubr.bf16.mxu1 %v5228_v57 }
 0x125   : > { %1054 = vmatmul.mubr.bf16.gmra.mrb[24].mxu0 %v5230_v58  ;;  %1214 = vmatmul.mubr.bf16.gmra.mrb[24].mxu1 %v5231_v59 }
 0x126   : > { %1063 = vmatprep.mubr.bf16.mxu0 %v5232_v60  ;;  %1223 = vmatprep.mubr.bf16.mxu1 %v5234_v61 }
 0x12d   : > { %1064 = vmatmul.mubr.bf16.gmra.mrb[28].mxu0 %v5236_v62  ;;  %1224 = vmatmul.mubr.bf16.gmra.mrb[28].mxu1 %v5237_v63 }
 0x12e   : > { %1073 = vmatprep.mubr.bf16.mxu0 %v5238_v0  ;;  %1233 = vmatprep.mubr.bf16.mxu1 %v5240_v1 }
 0x135   : > { %1074 = vmatmul.mubr.bf16.gmra.mrb[32].mxu0 %v5242_v2  ;;  %1234 = vmatmul.mubr.bf16.gmra.mrb[32].mxu1 %v5243_v3 }
 0x136   : > { %1083 = vmatprep.mubr.bf16.mxu0 %v5244_v4  ;;  %1243 = vmatprep.mubr.bf16.mxu1 %v5246_v5 }
 0x13d   : > { %1084 = vmatmul.mubr.bf16.gmra.mrb[36].mxu0 %v5248_v6  ;;  %1244 = vmatmul.mubr.bf16.gmra.mrb[36].mxu1 %v5249_v7 }
 0x13e   : > { %1093 = vmatprep.mubr.bf16.mxu0 %v5250_v8  ;;  %1253 = vmatprep.mubr.bf16.mxu1 %v5252_v9 }
 0x145   : > { %1094 = vmatmul.mubr.bf16.gmra.mrb[40].mxu0 %v5254_v10  ;;  %1254 = vmatmul.mubr.bf16.gmra.mrb[40].mxu1 %v5255_v11 }
 0x146   : > { %1103 = vmatprep.mubr.bf16.mxu0 %v5256_v12  ;;  %1263 = vmatprep.mubr.bf16.mxu1 %v5258_v13 }
 0x14d   : > { %1104 = vmatmul.mubr.bf16.gmra.mrb[44].mxu0 %v5260_v14  ;;  %1264 = vmatmul.mubr.bf16.gmra.mrb[44].mxu1 %v5261_v15 }
 0x14e   : > { %1113 = vmatprep.mubr.bf16.mxu0 %v5262_v16  ;;  %1273 = vmatprep.mubr.bf16.mxu1 %v5264_v17 }
 0x155   : > { %1114 = vmatmul.mubr.bf16.gmra.mrb[48].mxu0 %v5266_v18  ;;  %1274 = vmatmul.mubr.bf16.gmra.mrb[48].mxu1 %v5267_v19 }
 0x156   : > { %1123 = vmatprep.mubr.bf16.mxu0 %v5268_v20  ;;  %1283 = vmatprep.mubr.bf16.mxu1 %v5270_v21 }
 0x15d   : > { %1124 = vmatmul.mubr.bf16.gmra.mrb[52].mxu0 %v5272_v22  ;;  %1284 = vmatmul.mubr.bf16.gmra.mrb[52].mxu1 %v5273_v23 }
 0x15e   : > { %1133 = vmatprep.mubr.bf16.mxu0 %v5274_v24  ;;  %1293 = vmatprep.mubr.bf16.mxu1 %v5276_v25 }
 0x165   : > { %1134 = vmatmul.mubr.bf16.gmra.mrb[56].mxu0 %v5278_v26  ;;  %1294 = vmatmul.mubr.bf16.gmra.mrb[56].mxu1 %v5279_v27 }
 0x166   : > { %1143 = vmatprep.mubr.bf16.mxu0 %v5280_v28  ;;  %1303 = vmatprep.mubr.bf16.mxu1 %v5282_v29 }
 0x16d   : > { %1144 = vmatmul.mubr.bf16.gmra.mrb[60].mxu0 %v5284_v30  ;;  %1304 = vmatmul.mubr.bf16.gmra.mrb[60].mxu1 %v5285_v31 }
 0x1c8   : > { %v995_v38 = vpop.f32.mrb[0].mxu0  ;;  %v1155_v39 = vpop.f32.mrb[0].mxu1 }
 0x1c9   : > { %v997_v41 = vpop.f32.mrb[1].mxu0  ;;  %v1157_v42 = vpop.f32.mrb[1].mxu1  ;;  %v996_v45 = vadd.f32 %v995_v38, %v6413_v37  ;;  %v1156_v46 = vadd.f32 %v1155_v39, %v6413_v37 }
 0x1ca   : > { %v999_v43 = vpop.f32.mrb[2].mxu0  ;;  %v1159_v44 = vpop.f32.mrb[2].mxu1  ;;  %v998_v51 = vadd.f32 %v997_v41, %v6415_v40  ;;  %v1158_v52 = vadd.f32 %v1157_v42, %v6415_v40 }
 0x1cb   : > { %v1000_v47 = vadd.f32 %v999_v43, %v6413_v37  ;;  %v1160_v48 = vadd.f32 %v1159_v44, %v6413_v37  ;;  %v1001_v49 = vpop.f32.mrb[3].mxu0  ;;  %v1161_v50 = vpop.f32.mrb[3].mxu1 }
 0x1cc   : > { %v1002_v53 = vadd.f32 %v1001_v49, %v6415_v40  ;;  %v1162_v54 = vadd.f32 %v1161_v50, %v6415_v40 }
 0x1cd   : > { %v1314_v55 = vpack.c.bf16 %v1000_v47, %v996_v45  ;;  %v1346_v56 = vpack.c.bf16 %v1160_v48, %v1156_v46 }
 0x1ce   : > { %v1315_v57 = vpack.c.bf16 %v1002_v53, %v998_v51  ;;  %v1347_v58 = vpack.c.bf16 %v1162_v54, %v1158_v52 }
 0x1cf   : > { %1380 = vst [vmem:[%s6426_s7] sm:$0xff] %v1314_v55  ;;  %1412 = vst [vmem:[%s6426_s7 + $0x100] sm:$0xff] %v1346_v56 }
 0x1d0   : > { %1381 = vst [vmem:[%s6426_s7 + $0x8] sm:$0xff] %v1315_v57  ;;  %1413 = vst [vmem:[%s6426_s7 + $0x108] sm:$0xff] %v1347_v58  ;;  %v1005_v59 = vpop.f32.mrb[4].mxu0  ;;  %v1165_v60 = vpop.f32.mrb[4].mxu1 }
 0x1d1   : > { %v1007_v61 = vpop.f32.mrb[5].mxu0  ;;  %v1167_v62 = vpop.f32.mrb[5].mxu1  ;;  %v1006_v1 = vadd.f32 %v1005_v59, %v6413_v37  ;;  %v1166_v2 = vadd.f32 %v1165_v60, %v6413_v37 }
 0x1d2   : > { %v1009_v63 = vpop.f32.mrb[6].mxu0  ;;  %v1169_v0 = vpop.f32.mrb[6].mxu1  ;;  %v1008_v7 = vadd.f32 %v1007_v61, %v6415_v40  ;;  %v1168_v8 = vadd.f32 %v1167_v62, %v6415_v40 }
 0x1d3   : > { %v1010_v3 = vadd.f32 %v1009_v63, %v6413_v37  ;;  %v1170_v4 = vadd.f32 %v1169_v0, %v6413_v37  ;;  %v1011_v5 = vpop.f32.mrb[7].mxu0  ;;  %v1171_v6 = vpop.f32.mrb[7].mxu1 }
 0x1d4   : > { %v1012_v9 = vadd.f32 %v1011_v5, %v6415_v40  ;;  %v1172_v10 = vadd.f32 %v1171_v6, %v6415_v40 }
 0x1d5   : > { %v1316_v11 = vpack.c.bf16 %v1010_v3, %v1006_v1  ;;  %v1348_v12 = vpack.c.bf16 %v1170_v4, %v1166_v2 }
 0x1d6   : > { %v1317_v13 = vpack.c.bf16 %v1012_v9, %v1008_v7  ;;  %v1349_v14 = vpack.c.bf16 %v1172_v10, %v1168_v8 }
 0x1d7   : > { %1382 = vst [vmem:[%s6426_s7 + $0x10] sm:$0xff] %v1316_v11  ;;  %1414 = vst [vmem:[%s6426_s7 + $0x110] sm:$0xff] %v1348_v12 }
 0x1d8   : > { %1383 = vst [vmem:[%s6426_s7 + $0x18] sm:$0xff] %v1317_v13  ;;  %1415 = vst [vmem:[%s6426_s7 + $0x118] sm:$0xff] %v1349_v14  ;;  %v1015_v15 = vpop.f32.mrb[8].mxu0  ;;  %v1175_v16 = vpop.f32.mrb[8].mxu1 }
 0x1d9   : > { %v1017_v17 = vpop.f32.mrb[9].mxu0  ;;  %v1177_v18 = vpop.f32.mrb[9].mxu1  ;;  %v1016_v21 = vadd.f32 %v1015_v15, %v6413_v37  ;;  %v1176_v22 = vadd.f32 %v1175_v16, %v6413_v37 }
 0x1da   : > { %v1019_v19 = vpop.f32.mrb[10].mxu0  ;;  %v1179_v20 = vpop.f32.mrb[10].mxu1  ;;  %v1018_v27 = vadd.f32 %v1017_v17, %v6415_v40  ;;  %v1178_v28 = vadd.f32 %v1177_v18, %v6415_v40 }
 0x1db   : > { %v1020_v23 = vadd.f32 %v1019_v19, %v6413_v37  ;;  %v1180_v24 = vadd.f32 %v1179_v20, %v6413_v37  ;;  %v1021_v25 = vpop.f32.mrb[11].mxu0  ;;  %v1181_v26 = vpop.f32.mrb[11].mxu1 }
 0x1dc   : > { %v1022_v29 = vadd.f32 %v1021_v25, %v6415_v40  ;;  %v1182_v30 = vadd.f32 %v1181_v26, %v6415_v40 }
 0x1dd   : > { %v1318_v31 = vpack.c.bf16 %v1020_v23, %v1016_v21  ;;  %v1350_v32 = vpack.c.bf16 %v1180_v24, %v1176_v22 }
 0x1de   : > { %v1319_v33 = vpack.c.bf16 %v1022_v29, %v1018_v27  ;;  %v1351_v34 = vpack.c.bf16 %v1182_v30, %v1178_v28 }
 0x1df   : > { %1384 = vst [vmem:[%s6426_s7 + $0x20] sm:$0xff] %v1318_v31  ;;  %1416 = vst [vmem:[%s6426_s7 + $0x120] sm:$0xff] %v1350_v32 }
 0x1e0   : > { %1385 = vst [vmem:[%s6426_s7 + $0x28] sm:$0xff] %v1319_v33  ;;  %1417 = vst [vmem:[%s6426_s7 + $0x128] sm:$0xff] %v1351_v34  ;;  %v1025_v35 = vpop.f32.mrb[12].mxu0  ;;  %v1185_v36 = vpop.f32.mrb[12].mxu1 }
 0x1e1   : > { %v1027_v38 = vpop.f32.mrb[13].mxu0  ;;  %v1187_v39 = vpop.f32.mrb[13].mxu1  ;;  %v1026_v43 = vadd.f32 %v1025_v35, %v6413_v37  ;;  %v1186_v44 = vadd.f32 %v1185_v36, %v6413_v37 }
 0x1e2   : > { %v1029_v41 = vpop.f32.mrb[14].mxu0  ;;  %v1189_v42 = vpop.f32.mrb[14].mxu1  ;;  %v1028_v49 = vadd.f32 %v1027_v38, %v6415_v40  ;;  %v1188_v50 = vadd.f32 %v1187_v39, %v6415_v40 }
 0x1e3   : > { %v1030_v45 = vadd.f32 %v1029_v41, %v6413_v37  ;;  %v1190_v46 = vadd.f32 %v1189_v42, %v6413_v37  ;;  %v1031_v47 = vpop.f32.mrb[15].mxu0  ;;  %v1191_v48 = vpop.f32.mrb[15].mxu1 }
 0x1e4   : > { %v1032_v51 = vadd.f32 %v1031_v47, %v6415_v40  ;;  %v1192_v52 = vadd.f32 %v1191_v48, %v6415_v40 }
 0x1e5   : > { %v1320_v53 = vpack.c.bf16 %v1030_v45, %v1026_v43  ;;  %v1352_v54 = vpack.c.bf16 %v1190_v46, %v1186_v44 }
 0x1e6   : > { %v1321_v55 = vpack.c.bf16 %v1032_v51, %v1028_v49  ;;  %v1353_v56 = vpack.c.bf16 %v1192_v52, %v1188_v50 }
 0x1e7   : > { %1386 = vst [vmem:[%s6426_s7 + $0x30] sm:$0xff] %v1320_v53  ;;  %1418 = vst [vmem:[%s6426_s7 + $0x130] sm:$0xff] %v1352_v54 }
 0x1e8   : > { %1387 = vst [vmem:[%s6426_s7 + $0x38] sm:$0xff] %v1321_v55  ;;  %1419 = vst [vmem:[%s6426_s7 + $0x138] sm:$0xff] %v1353_v56  ;;  %v1035_v57 = vpop.f32.mrb[16].mxu0  ;;  %v1195_v58 = vpop.f32.mrb[16].mxu1 }
 0x1e9   : > { %v1037_v59 = vpop.f32.mrb[17].mxu0  ;;  %v1197_v60 = vpop.f32.mrb[17].mxu1  ;;  %v1036_v63 = vadd.f32 %v1035_v57, %v6413_v37  ;;  %v1196_v0 = vadd.f32 %v1195_v58, %v6413_v37 }
 0x1ea   : > { %v1039_v61 = vpop.f32.mrb[18].mxu0  ;;  %v1199_v62 = vpop.f32.mrb[18].mxu1  ;;  %v1038_v5 = vadd.f32 %v1037_v59, %v6415_v40  ;;  %v1198_v6 = vadd.f32 %v1197_v60, %v6415_v40 }
 0x1eb   : > { %v1040_v1 = vadd.f32 %v1039_v61, %v6413_v37  ;;  %v1200_v2 = vadd.f32 %v1199_v62, %v6413_v37  ;;  %v1041_v3 = vpop.f32.mrb[19].mxu0  ;;  %v1201_v4 = vpop.f32.mrb[19].mxu1 }
 0x1ec   : > { %v1042_v7 = vadd.f32 %v1041_v3, %v6415_v40  ;;  %v1202_v8 = vadd.f32 %v1201_v4, %v6415_v40 }
 0x1ed   : > { %v1322_v9 = vpack.c.bf16 %v1040_v1, %v1036_v63  ;;  %v1354_v10 = vpack.c.bf16 %v1200_v2, %v1196_v0 }
 0x1ee   : > { %v1323_v11 = vpack.c.bf16 %v1042_v7, %v1038_v5  ;;  %v1355_v12 = vpack.c.bf16 %v1202_v8, %v1198_v6 }
 0x1ef   : > { %1388 = vst [vmem:[%s6426_s7 + $0x40] sm:$0xff] %v1322_v9  ;;  %1420 = vst [vmem:[%s6426_s7 + $0x140] sm:$0xff] %v1354_v10 }
 0x1f0   : > { %1389 = vst [vmem:[%s6426_s7 + $0x48] sm:$0xff] %v1323_v11  ;;  %1421 = vst [vmem:[%s6426_s7 + $0x148] sm:$0xff] %v1355_v12  ;;  %v1045_v13 = vpop.f32.mrb[20].mxu0  ;;  %v1205_v14 = vpop.f32.mrb[20].mxu1 }
 0x1f1   : > { %v1047_v15 = vpop.f32.mrb[21].mxu0  ;;  %v1207_v16 = vpop.f32.mrb[21].mxu1  ;;  %v1046_v19 = vadd.f32 %v1045_v13, %v6413_v37  ;;  %v1206_v20 = vadd.f32 %v1205_v14, %v6413_v37 }
 0x1f2   : > { %v1049_v17 = vpop.f32.mrb[22].mxu0  ;;  %v1209_v18 = vpop.f32.mrb[22].mxu1  ;;  %v1048_v25 = vadd.f32 %v1047_v15, %v6415_v40  ;;  %v1208_v26 = vadd.f32 %v1207_v16, %v6415_v40 }
 0x1f3   : > { %v1050_v21 = vadd.f32 %v1049_v17, %v6413_v37  ;;  %v1210_v22 = vadd.f32 %v1209_v18, %v6413_v37  ;;  %v1051_v23 = vpop.f32.mrb[23].mxu0  ;;  %v1211_v24 = vpop.f32.mrb[23].mxu1 }
 0x1f4   : > { %v1052_v27 = vadd.f32 %v1051_v23, %v6415_v40  ;;  %v1212_v28 = vadd.f32 %v1211_v24, %v6415_v40 }
 0x1f5   : > { %v1324_v29 = vpack.c.bf16 %v1050_v21, %v1046_v19  ;;  %v1356_v30 = vpack.c.bf16 %v1210_v22, %v1206_v20 }
 0x1f6   : > { %v1325_v31 = vpack.c.bf16 %v1052_v27, %v1048_v25  ;;  %v1357_v32 = vpack.c.bf16 %v1212_v28, %v1208_v26 }
 0x1f7   : > { %1390 = vst [vmem:[%s6426_s7 + $0x50] sm:$0xff] %v1324_v29  ;;  %1422 = vst [vmem:[%s6426_s7 + $0x150] sm:$0xff] %v1356_v30 }
 0x1f8   : > { %1391 = vst [vmem:[%s6426_s7 + $0x58] sm:$0xff] %v1325_v31  ;;  %1423 = vst [vmem:[%s6426_s7 + $0x158] sm:$0xff] %v1357_v32  ;;  %v1055_v33 = vpop.f32.mrb[24].mxu0  ;;  %v1215_v34 = vpop.f32.mrb[24].mxu1 }
 0x1f9   : > { %v1057_v35 = vpop.f32.mrb[25].mxu0  ;;  %v1217_v36 = vpop.f32.mrb[25].mxu1  ;;  %v1056_v41 = vadd.f32 %v1055_v33, %v6413_v37  ;;  %v1216_v42 = vadd.f32 %v1215_v34, %v6413_v37 }
 0x1fa   : > { %v1059_v38 = vpop.f32.mrb[26].mxu0  ;;  %v1219_v39 = vpop.f32.mrb[26].mxu1  ;;  %v1058_v47 = vadd.f32 %v1057_v35, %v6415_v40  ;;  %v1218_v48 = vadd.f32 %v1217_v36, %v6415_v40 }
 0x1fb   : > { %v1060_v43 = vadd.f32 %v1059_v38, %v6413_v37  ;;  %v1220_v44 = vadd.f32 %v1219_v39, %v6413_v37  ;;  %v1061_v45 = vpop.f32.mrb[27].mxu0  ;;  %v1221_v46 = vpop.f32.mrb[27].mxu1 }
 0x1fc   : > { %v1062_v49 = vadd.f32 %v1061_v45, %v6415_v40  ;;  %v1222_v50 = vadd.f32 %v1221_v46, %v6415_v40 }
 0x1fd   : > { %v1326_v51 = vpack.c.bf16 %v1060_v43, %v1056_v41  ;;  %v1358_v52 = vpack.c.bf16 %v1220_v44, %v1216_v42 }
 0x1fe   : > { %v1327_v53 = vpack.c.bf16 %v1062_v49, %v1058_v47  ;;  %v1359_v54 = vpack.c.bf16 %v1222_v50, %v1218_v48 }
 0x1ff   : > { %1392 = vst [vmem:[%s6426_s7 + $0x60] sm:$0xff] %v1326_v51  ;;  %1424 = vst [vmem:[%s6426_s7 + $0x160] sm:$0xff] %v1358_v52 }
 0x200   : > { %1393 = vst [vmem:[%s6426_s7 + $0x68] sm:$0xff] %v1327_v53  ;;  %1425 = vst [vmem:[%s6426_s7 + $0x168] sm:$0xff] %v1359_v54  ;;  %v1065_v55 = vpop.f32.mrb[28].mxu0  ;;  %v1225_v56 = vpop.f32.mrb[28].mxu1 }
 0x201   : > { %v1067_v57 = vpop.f32.mrb[29].mxu0  ;;  %v1227_v58 = vpop.f32.mrb[29].mxu1  ;;  %v1066_v61 = vadd.f32 %v1065_v55, %v6413_v37  ;;  %v1226_v62 = vadd.f32 %v1225_v56, %v6413_v37 }
 0x202   : > { %v1069_v59 = vpop.f32.mrb[30].mxu0  ;;  %v1229_v60 = vpop.f32.mrb[30].mxu1  ;;  %v1068_v3 = vadd.f32 %v1067_v57, %v6415_v40  ;;  %v1228_v4 = vadd.f32 %v1227_v58, %v6415_v40 }
 0x203   : > { %v1070_v63 = vadd.f32 %v1069_v59, %v6413_v37  ;;  %v1230_v0 = vadd.f32 %v1229_v60, %v6413_v37  ;;  %v1071_v1 = vpop.f32.mrb[31].mxu0  ;;  %v1231_v2 = vpop.f32.mrb[31].mxu1 }
 0x204   : > { %v1072_v5 = vadd.f32 %v1071_v1, %v6415_v40  ;;  %v1232_v6 = vadd.f32 %v1231_v2, %v6415_v40 }
 0x205   : > { %v1328_v7 = vpack.c.bf16 %v1070_v63, %v1066_v61  ;;  %v1360_v8 = vpack.c.bf16 %v1230_v0, %v1226_v62 }
 0x206   : > { %v1329_v9 = vpack.c.bf16 %v1072_v5, %v1068_v3  ;;  %v1361_v10 = vpack.c.bf16 %v1232_v6, %v1228_v4 }
 0x207   : > { %1394 = vst [vmem:[%s6426_s7 + $0x70] sm:$0xff] %v1328_v7  ;;  %1426 = vst [vmem:[%s6426_s7 + $0x170] sm:$0xff] %v1360_v8 }
 0x208   : > { %1395 = vst [vmem:[%s6426_s7 + $0x78] sm:$0xff] %v1329_v9  ;;  %1427 = vst [vmem:[%s6426_s7 + $0x178] sm:$0xff] %v1361_v10  ;;  %v1075_v11 = vpop.f32.mrb[32].mxu0  ;;  %v1235_v12 = vpop.f32.mrb[32].mxu1 }
 0x209   : > { %v1077_v13 = vpop.f32.mrb[33].mxu0  ;;  %v1237_v14 = vpop.f32.mrb[33].mxu1  ;;  %v1076_v17 = vadd.f32 %v1075_v11, %v6413_v37  ;;  %v1236_v18 = vadd.f32 %v1235_v12, %v6413_v37 }
 0x20a   : > { %v1079_v15 = vpop.f32.mrb[34].mxu0  ;;  %v1239_v16 = vpop.f32.mrb[34].mxu1  ;;  %v1078_v23 = vadd.f32 %v1077_v13, %v6415_v40  ;;  %v1238_v24 = vadd.f32 %v1237_v14, %v6415_v40 }
 0x20b   : > { %v1080_v19 = vadd.f32 %v1079_v15, %v6413_v37  ;;  %v1240_v20 = vadd.f32 %v1239_v16, %v6413_v37  ;;  %v1081_v21 = vpop.f32.mrb[35].mxu0  ;;  %v1241_v22 = vpop.f32.mrb[35].mxu1 }
 0x20c   : > { %v1082_v25 = vadd.f32 %v1081_v21, %v6415_v40  ;;  %v1242_v26 = vadd.f32 %v1241_v22, %v6415_v40 }
 0x20d   : > { %v1330_v27 = vpack.c.bf16 %v1080_v19, %v1076_v17  ;;  %v1362_v28 = vpack.c.bf16 %v1240_v20, %v1236_v18 }
 0x20e   : > { %v1331_v29 = vpack.c.bf16 %v1082_v25, %v1078_v23  ;;  %v1363_v30 = vpack.c.bf16 %v1242_v26, %v1238_v24 }
 0x20f   : > { %1396 = vst [vmem:[%s6426_s7 + $0x80] sm:$0xff] %v1330_v27  ;;  %1428 = vst [vmem:[%s6426_s7 + $0x180] sm:$0xff] %v1362_v28 }
 0x210   : > { %1397 = vst [vmem:[%s6426_s7 + $0x88] sm:$0xff] %v1331_v29  ;;  %1429 = vst [vmem:[%s6426_s7 + $0x188] sm:$0xff] %v1363_v30  ;;  %v1085_v31 = vpop.f32.mrb[36].mxu0  ;;  %v1245_v32 = vpop.f32.mrb[36].mxu1 }
 0x211   : > { %v1087_v33 = vpop.f32.mrb[37].mxu0  ;;  %v1247_v34 = vpop.f32.mrb[37].mxu1  ;;  %v1086_v38 = vadd.f32 %v1085_v31, %v6413_v37  ;;  %v1246_v39 = vadd.f32 %v1245_v32, %v6413_v37 }
 0x212   : > { %v1089_v35 = vpop.f32.mrb[38].mxu0  ;;  %v1249_v36 = vpop.f32.mrb[38].mxu1  ;;  %v1088_v45 = vadd.f32 %v1087_v33, %v6415_v40  ;;  %v1248_v46 = vadd.f32 %v1247_v34, %v6415_v40 }
 0x213   : > { %v1090_v41 = vadd.f32 %v1089_v35, %v6413_v37  ;;  %v1250_v42 = vadd.f32 %v1249_v36, %v6413_v37  ;;  %v1091_v43 = vpop.f32.mrb[39].mxu0  ;;  %v1251_v44 = vpop.f32.mrb[39].mxu1 }
 0x214   : > { %v1092_v47 = vadd.f32 %v1091_v43, %v6415_v40  ;;  %v1252_v48 = vadd.f32 %v1251_v44, %v6415_v40 }
 0x215   : > { %v1332_v49 = vpack.c.bf16 %v1090_v41, %v1086_v38  ;;  %v1364_v50 = vpack.c.bf16 %v1250_v42, %v1246_v39 }
 0x216   : > { %v1333_v51 = vpack.c.bf16 %v1092_v47, %v1088_v45  ;;  %v1365_v52 = vpack.c.bf16 %v1252_v48, %v1248_v46 }
 0x217   : > { %1398 = vst [vmem:[%s6426_s7 + $0x90] sm:$0xff] %v1332_v49  ;;  %1430 = vst [vmem:[%s6426_s7 + $0x190] sm:$0xff] %v1364_v50 }
 0x218   : > { %1399 = vst [vmem:[%s6426_s7 + $0x98] sm:$0xff] %v1333_v51  ;;  %1431 = vst [vmem:[%s6426_s7 + $0x198] sm:$0xff] %v1365_v52  ;;  %v1095_v53 = vpop.f32.mrb[40].mxu0  ;;  %v1255_v54 = vpop.f32.mrb[40].mxu1 }
 0x219   : > { %v1097_v55 = vpop.f32.mrb[41].mxu0  ;;  %v1257_v56 = vpop.f32.mrb[41].mxu1  ;;  %v1096_v59 = vadd.f32 %v1095_v53, %v6413_v37  ;;  %v1256_v60 = vadd.f32 %v1255_v54, %v6413_v37 }
 0x21a   : > { %v1099_v57 = vpop.f32.mrb[42].mxu0  ;;  %v1259_v58 = vpop.f32.mrb[42].mxu1  ;;  %v1098_v1 = vadd.f32 %v1097_v55, %v6415_v40  ;;  %v1258_v2 = vadd.f32 %v1257_v56, %v6415_v40 }
 0x21b   : > { %v1100_v61 = vadd.f32 %v1099_v57, %v6413_v37  ;;  %v1260_v62 = vadd.f32 %v1259_v58, %v6413_v37  ;;  %v1101_v63 = vpop.f32.mrb[43].mxu0  ;;  %v1261_v0 = vpop.f32.mrb[43].mxu1 }
 0x21c   : > { %v1102_v3 = vadd.f32 %v1101_v63, %v6415_v40  ;;  %v1262_v4 = vadd.f32 %v1261_v0, %v6415_v40 }
 0x21d   : > { %v1334_v5 = vpack.c.bf16 %v1100_v61, %v1096_v59  ;;  %v1366_v6 = vpack.c.bf16 %v1260_v62, %v1256_v60 }
 0x21e   : > { %v1335_v7 = vpack.c.bf16 %v1102_v3, %v1098_v1  ;;  %v1367_v8 = vpack.c.bf16 %v1262_v4, %v1258_v2 }
 0x21f   : > { %1400 = vst [vmem:[%s6426_s7 + $0xa0] sm:$0xff] %v1334_v5  ;;  %1432 = vst [vmem:[%s6426_s7 + $0x1a0] sm:$0xff] %v1366_v6 }
 0x220   : > { %1401 = vst [vmem:[%s6426_s7 + $0xa8] sm:$0xff] %v1335_v7  ;;  %1433 = vst [vmem:[%s6426_s7 + $0x1a8] sm:$0xff] %v1367_v8  ;;  %v1105_v9 = vpop.f32.mrb[44].mxu0  ;;  %v1265_v10 = vpop.f32.mrb[44].mxu1 }
 0x221   : > { %v1107_v11 = vpop.f32.mrb[45].mxu0  ;;  %v1267_v12 = vpop.f32.mrb[45].mxu1  ;;  %v1106_v15 = vadd.f32 %v1105_v9, %v6413_v37  ;;  %v1266_v16 = vadd.f32 %v1265_v10, %v6413_v37 }
 0x222   : > { %v1109_v13 = vpop.f32.mrb[46].mxu0  ;;  %v1269_v14 = vpop.f32.mrb[46].mxu1  ;;  %v1108_v21 = vadd.f32 %v1107_v11, %v6415_v40  ;;  %v1268_v22 = vadd.f32 %v1267_v12, %v6415_v40 }
 0x223   : > { %v1110_v17 = vadd.f32 %v1109_v13, %v6413_v37  ;;  %v1270_v18 = vadd.f32 %v1269_v14, %v6413_v37  ;;  %v1111_v19 = vpop.f32.mrb[47].mxu0  ;;  %v1271_v20 = vpop.f32.mrb[47].mxu1 }
 0x224   : > { %v1112_v23 = vadd.f32 %v1111_v19, %v6415_v40  ;;  %v1272_v24 = vadd.f32 %v1271_v20, %v6415_v40 }
 0x225   : > { %v1336_v25 = vpack.c.bf16 %v1110_v17, %v1106_v15  ;;  %v1368_v26 = vpack.c.bf16 %v1270_v18, %v1266_v16 }
 0x226   : > { %v1337_v27 = vpack.c.bf16 %v1112_v23, %v1108_v21  ;;  %v1369_v28 = vpack.c.bf16 %v1272_v24, %v1268_v22 }
 0x227   : > { %1402 = vst [vmem:[%s6426_s7 + $0xb0] sm:$0xff] %v1336_v25  ;;  %1434 = vst [vmem:[%s6426_s7 + $0x1b0] sm:$0xff] %v1368_v26 }
 0x228   : > { %1403 = vst [vmem:[%s6426_s7 + $0xb8] sm:$0xff] %v1337_v27  ;;  %1435 = vst [vmem:[%s6426_s7 + $0x1b8] sm:$0xff] %v1369_v28  ;;  %v1115_v29 = vpop.f32.mrb[48].mxu0  ;;  %v1275_v30 = vpop.f32.mrb[48].mxu1 }
 0x229   : > { %v1117_v31 = vpop.f32.mrb[49].mxu0  ;;  %v1277_v32 = vpop.f32.mrb[49].mxu1  ;;  %v1116_v35 = vadd.f32 %v1115_v29, %v6413_v37  ;;  %v1276_v36 = vadd.f32 %v1275_v30, %v6413_v37 }
 0x22a   : > { %v1119_v33 = vpop.f32.mrb[50].mxu0  ;;  %v1279_v34 = vpop.f32.mrb[50].mxu1  ;;  %v1118_v43 = vadd.f32 %v1117_v31, %v6415_v40  ;;  %v1278_v44 = vadd.f32 %v1277_v32, %v6415_v40 }
 0x22b   : > { %v1120_v38 = vadd.f32 %v1119_v33, %v6413_v37  ;;  %v1280_v39 = vadd.f32 %v1279_v34, %v6413_v37  ;;  %v1121_v41 = vpop.f32.mrb[51].mxu0  ;;  %v1281_v42 = vpop.f32.mrb[51].mxu1 }
 0x22c   : > { %v1122_v45 = vadd.f32 %v1121_v41, %v6415_v40  ;;  %v1282_v46 = vadd.f32 %v1281_v42, %v6415_v40 }
 0x22d   : > { %v1338_v47 = vpack.c.bf16 %v1120_v38, %v1116_v35  ;;  %v1370_v48 = vpack.c.bf16 %v1280_v39, %v1276_v36 }
 0x22e   : > { %v1339_v49 = vpack.c.bf16 %v1122_v45, %v1118_v43  ;;  %v1371_v50 = vpack.c.bf16 %v1282_v46, %v1278_v44 }
 0x22f   : > { %1404 = vst [vmem:[%s6426_s7 + $0xc0] sm:$0xff] %v1338_v47  ;;  %1436 = vst [vmem:[%s6426_s7 + $0x1c0] sm:$0xff] %v1370_v48 }
 0x230   : > { %1405 = vst [vmem:[%s6426_s7 + $0xc8] sm:$0xff] %v1339_v49  ;;  %1437 = vst [vmem:[%s6426_s7 + $0x1c8] sm:$0xff] %v1371_v50  ;;  %v1125_v51 = vpop.f32.mrb[52].mxu0  ;;  %v1285_v52 = vpop.f32.mrb[52].mxu1 }
 0x231   : > { %v1127_v53 = vpop.f32.mrb[53].mxu0  ;;  %v1287_v54 = vpop.f32.mrb[53].mxu1  ;;  %v1126_v57 = vadd.f32 %v1125_v51, %v6413_v37  ;;  %v1286_v58 = vadd.f32 %v1285_v52, %v6413_v37 }
 0x232   : > { %v1129_v55 = vpop.f32.mrb[54].mxu0  ;;  %v1289_v56 = vpop.f32.mrb[54].mxu1  ;;  %v1128_v63 = vadd.f32 %v1127_v53, %v6415_v40  ;;  %v1288_v0 = vadd.f32 %v1287_v54, %v6415_v40 }
 0x233   : > { %v1130_v59 = vadd.f32 %v1129_v55, %v6413_v37  ;;  %v1290_v60 = vadd.f32 %v1289_v56, %v6413_v37  ;;  %v1131_v61 = vpop.f32.mrb[55].mxu0  ;;  %v1291_v62 = vpop.f32.mrb[55].mxu1 }
 0x234   : > { %v1132_v1 = vadd.f32 %v1131_v61, %v6415_v40  ;;  %v1292_v2 = vadd.f32 %v1291_v62, %v6415_v40 }
 0x235   : > { %v1340_v3 = vpack.c.bf16 %v1130_v59, %v1126_v57  ;;  %v1372_v4 = vpack.c.bf16 %v1290_v60, %v1286_v58 }
 0x236   : > { %v1341_v5 = vpack.c.bf16 %v1132_v1, %v1128_v63  ;;  %v1373_v6 = vpack.c.bf16 %v1292_v2, %v1288_v0 }
 0x237   : > { %1406 = vst [vmem:[%s6426_s7 + $0xd0] sm:$0xff] %v1340_v3  ;;  %1438 = vst [vmem:[%s6426_s7 + $0x1d0] sm:$0xff] %v1372_v4 }
 0x238   : > { %1407 = vst [vmem:[%s6426_s7 + $0xd8] sm:$0xff] %v1341_v5  ;;  %1439 = vst [vmem:[%s6426_s7 + $0x1d8] sm:$0xff] %v1373_v6  ;;  %v1135_v7 = vpop.f32.mrb[56].mxu0  ;;  %v1295_v8 = vpop.f32.mrb[56].mxu1 }
 0x239   : > { %v1137_v9 = vpop.f32.mrb[57].mxu0  ;;  %v1297_v10 = vpop.f32.mrb[57].mxu1  ;;  %v1136_v13 = vadd.f32 %v1135_v7, %v6413_v37  ;;  %v1296_v14 = vadd.f32 %v1295_v8, %v6413_v37 }
 0x23a   : > { %v1139_v11 = vpop.f32.mrb[58].mxu0  ;;  %v1299_v12 = vpop.f32.mrb[58].mxu1  ;;  %v1138_v19 = vadd.f32 %v1137_v9, %v6415_v40  ;;  %v1298_v20 = vadd.f32 %v1297_v10, %v6415_v40 }
 0x23b   : > { %v1140_v15 = vadd.f32 %v1139_v11, %v6413_v37  ;;  %v1300_v16 = vadd.f32 %v1299_v12, %v6413_v37  ;;  %v1141_v17 = vpop.f32.mrb[59].mxu0  ;;  %v1301_v18 = vpop.f32.mrb[59].mxu1 }
 0x23c   : > { %v1142_v21 = vadd.f32 %v1141_v17, %v6415_v40  ;;  %v1302_v22 = vadd.f32 %v1301_v18, %v6415_v40 }
 0x23d   : > { %v1342_v23 = vpack.c.bf16 %v1140_v15, %v1136_v13  ;;  %v1374_v24 = vpack.c.bf16 %v1300_v16, %v1296_v14 }
 0x23e   : > { %v1343_v25 = vpack.c.bf16 %v1142_v21, %v1138_v19  ;;  %v1375_v26 = vpack.c.bf16 %v1302_v22, %v1298_v20 }
 0x23f   : > { %1408 = vst [vmem:[%s6426_s7 + $0xe0] sm:$0xff] %v1342_v23  ;;  %1440 = vst [vmem:[%s6426_s7 + $0x1e0] sm:$0xff] %v1374_v24 }
 0x240   : > { %1409 = vst [vmem:[%s6426_s7 + $0xe8] sm:$0xff] %v1343_v25  ;;  %1441 = vst [vmem:[%s6426_s7 + $0x1e8] sm:$0xff] %v1375_v26  ;;  %v1145_v27 = vpop.f32.mrb[60].mxu0  ;;  %v1305_v28 = vpop.f32.mrb[60].mxu1 }
 0x241   : > { %v1147_v29 = vpop.f32.mrb[61].mxu0  ;;  %v1307_v30 = vpop.f32.mrb[61].mxu1  ;;  %v1146_v33 = vadd.f32 %v1145_v27, %v6413_v37  ;;  %v1306_v34 = vadd.f32 %v1305_v28, %v6413_v37 }
 0x242   : > { %v1149_v31 = vpop.f32.mrb[62].mxu0  ;;  %v1309_v32 = vpop.f32.mrb[62].mxu1  ;;  %v1148_v41 = vadd.f32 %v1147_v29, %v6415_v40  ;;  %v1308_v42 = vadd.f32 %v1307_v30, %v6415_v40 }
 0x243   : > { %v1150_v35 = vadd.f32 %v1149_v31, %v6413_v37  ;;  %v1310_v36 = vadd.f32 %v1309_v32, %v6413_v37  ;;  %v1151_v38 = vpop.f32.mrb[63].mxu0  ;;  %v1311_v39 = vpop.f32.mrb[63].mxu1 }
 0x244   : > { %v1152_v43 = vadd.f32 %v1151_v38, %v6415_v40  ;;  %v1312_v44 = vadd.f32 %v1311_v39, %v6415_v40 }
 0x245   : > { %v1344_v45 = vpack.c.bf16 %v1150_v35, %v1146_v33  ;;  %v1376_v46 = vpack.c.bf16 %v1310_v36, %v1306_v34 }
 0x246   : > { %v1345_v47 = vpack.c.bf16 %v1152_v43, %v1148_v41  ;;  %v1377_v48 = vpack.c.bf16 %v1312_v44, %v1308_v42 }
 0x247   : > { %1410 = vst [vmem:[%s6426_s7 + $0xf0] sm:$0xff] %v1344_v45  ;;  %1442 = vst [vmem:[%s6426_s7 + $0x1f0] sm:$0xff] %v1376_v46 }
 0x248   : > { %1411 = vst [vmem:[%s6426_s7 + $0xf8] sm:$0xff] %v1345_v47  ;;  %1443 = vst [vmem:[%s6426_s7 + $0x1f8] sm:$0xff] %v1377_v48 }
 0x249 PF: > { %s7893_s19 = sld [smem:[#allocation18_spill]]  ;;  %s4370_s6 = sshll.u32 %s5958_s8, 8 }
 0x24a   : > { %s6628_s23 = scalar_lea.vmem %s6290_s20, %s4370_s6 [#allocation4]  ;;  %s7894_s1 = sld [smem:[#allocation102_spill]] }
 0x24b   : > { %v5304_v58 = vld [vmem:[%s6628_s23 + $0x4] ss:$8 sps:$4 sm:$0xff]   ;;  %v5302_v1 = vld [vmem:[%s6628_s23] ss:$8 sps:$4 sm:$0xff]   ;;  %v5305_v2 = vld [vmem:[%s6628_s23 + $0x14] ss:$8 sps:$4 sm:$0xff]  }
 0x24c   : > { %1813 = vmatprep.mubr.bf16.mxu0 %v5304_v58  ;;  %v5328_v0 = vld [vmem:[%s6628_s23 + $0x84] ss:$8 sps:$4 sm:$0xff]   ;;  %v5326_v3 = vld [vmem:[%s6628_s23 + $0x80] ss:$8 sps:$4 sm:$0xff]   ;;  %v5329_v4 = vld [vmem:[%s6628_s23 + $0x94] ss:$8 sps:$4 sm:$0xff]  }
 0x24d   : > { %1877 = vmatprep.mubr.bf16.mxu1 %v5328_v0  ;;  %v5307_v5 = vld [vmem:[%s6628_s23 + $0x10] ss:$8 sps:$4 sm:$0xff]   ;;  %v5308_v6 = vld [vmem:[%s6628_s23 + $0x24] ss:$8 sps:$4 sm:$0xff]   ;;  %v5310_v16 = vld [vmem:[%s6628_s23 + $0x20] ss:$8 sps:$4 sm:$0xff]  }
 0x24e   : > { %v5331_v11 = vld [vmem:[%s6628_s23 + $0x90] ss:$8 sps:$4 sm:$0xff]   ;;  %v5332_v14 = vld [vmem:[%s6628_s23 + $0xa4] ss:$8 sps:$4 sm:$0xff]   ;;  %v5311_v19 = vld [vmem:[%s6628_s23 + $0x34] ss:$8 sps:$4 sm:$0xff]  }
 0x24f   : > { %s4472_s21 = sshll.u32 %s7893_s19, 7  ;;  %s4473_s20 = sshll.u32 %s7893_s19, 9  ;;  %v5334_v20 = vld [vmem:[%s6628_s23 + $0xa0] ss:$8 sps:$4 sm:$0xff]   ;;  %v5335_v22 = vld [vmem:[%s6628_s23 + $0xb4] ss:$8 sps:$4 sm:$0xff]  }
 0x250   : > { %s6615_s18 = scalar_lea.vmem [#allocation7], %s4472_s21  ;;  %s6646_s16 = scalar_lea.vmem [#allocation2], %s4473_s20  ;;  %v5313_v24 = vld [vmem:[%s6628_s23 + $0x30] ss:$8 sps:$4 sm:$0xff]   ;;  %v5314_v27 = vld [vmem:[%s6628_s23 + $0x44] ss:$8 sps:$4 sm:$0xff]  }
 0x251   : > { %v5286_v37 = vld [vmem:[%s6615_s18 + $0x40] sm:$0xff]   ;;  %v5288_v49 = vld [vmem:[%s6615_s18 + $0x48] sm:$0xff]   ;;  %v5290_v51 = vld [vmem:[%s6615_s18 + $0x50] sm:$0xff]   ;;  %s1517_s9 = scalar_lea.vmem %s7894_s1, %s7893_s19  ;;  %s3582_s24 = sshra.s32 %s4472_s21, 7 }
 0x252   : > { %v5287_v40 = vld [vmem:[%s6615_s18] sm:$0xff]   ;;  %4475 = vmatprep.subr.bf16.mxu0 %v5286_v37  ;;  %4939 = vmatprep.subr.bf16.mxu1 %v5286_v37  ;;  %v5289_v50 = vld [vmem:[%s6615_s18 + $0x8] sm:$0xff]   ;;  %v5291_v52 = vld [vmem:[%s6615_s18 + $0x10] sm:$0xff]   ;;  %s4427_s7 = sshll.u32 %s3582_s24, 3  ;;  %p4428_p3 = scmp.ne.s32.totalorder %s7893_s19, 1 }
 0x253   : > { %4476 = vmatpush3.bf16.msra.mxu0 %v5287_v40  ;;  %4947 = vmatpush3.bf16.msra.mxu1 %v5287_v40  ;;  %v5292_v53 = vld [vmem:[%s6615_s18 + $0x58] sm:$0xff]   ;;  %v5294_v55 = vld [vmem:[%s6615_s18 + $0x60] sm:$0xff]   ;;  %v5296_v57 = vld [vmem:[%s6615_s18 + $0x68] sm:$0xff]   ;;  %s7524_s21 = scalar_lea.vmem [#allocation3], %s4427_s7  ;;  %s8051_s6 = sld [smem:[#allocation104_spill]] (!%p4428_p3) }
 0x254   : > { %4477 = vmatprep.subr.bf16.mxu0 %v5288_v49  ;;  %4940 = vmatprep.subr.bf16.mxu1 %v5288_v49  ;;  %v5293_v54 = vld [vmem:[%s6615_s18 + $0x18] sm:$0xff]   ;;  %v5295_v56 = vld [vmem:[%s6615_s18 + $0x20] sm:$0xff]   ;;  %v5297_v59 = vld [vmem:[%s6615_s18 + $0x28] sm:$0xff]  }
 0x255   : > { %v5298_v60 = vld [vmem:[%s6615_s18 + $0x70] sm:$0xff]   ;;  %v5300_v62 = vld [vmem:[%s6615_s18 + $0x78] sm:$0xff]   ;;  %v1961_v7 = vld [vmem:[%s6646_s16 + $0x80] sm:$0xff] }
 0x256   : > { %v5299_v61 = vld [vmem:[%s6615_s18 + $0x30] sm:$0xff]   ;;  %v5301_v63 = vld [vmem:[%s6615_s18 + $0x38] sm:$0xff]   ;;  %v1945_v8 = vld [vmem:[%s6646_s16] sm:$0xff] }
 0x257   : > { %4478 = vmatpush3.bf16.msra.mxu0 %v5289_v50  ;;  %4948 = vmatpush3.bf16.msra.mxu1 %v5289_v50  ;;  %v1993_v9 = vld [vmem:[%s6646_s16 + $0x180] sm:$0xff]  ;;  %v1963_v12 = vld [vmem:[%s6646_s16 + $0x90] sm:$0xff] }
 0x258   : > { %4479 = vmatprep.subr.bf16.mxu0 %v5290_v51  ;;  %4941 = vmatprep.subr.bf16.mxu1 %v5290_v51  ;;  %v1977_v10 = vld [vmem:[%s6646_s16 + $0x100] sm:$0xff]  ;;  %v1995_v13 = vld [vmem:[%s6646_s16 + $0x190] sm:$0xff] }
 0x259   : > { %v1979_v15 = vld [vmem:[%s6646_s16 + $0x110] sm:$0xff]  ;;  %v1997_v18 = vld [vmem:[%s6646_s16 + $0x1a0] sm:$0xff] }
 0x25a   : > { %v1947_v17 = vld [vmem:[%s6646_s16 + $0x10] sm:$0xff]  ;;  %v1965_v21 = vld [vmem:[%s6646_s16 + $0xa0] sm:$0xff] }
 0x25b   : > { %4480 = vmatpush3.bf16.msra.mxu0 %v5291_v52  ;;  %4949 = vmatpush3.bf16.msra.mxu1 %v5291_v52  ;;  %v1981_v23 = vld [vmem:[%s6646_s16 + $0x120] sm:$0xff]  ;;  %v1999_v26 = vld [vmem:[%s6646_s16 + $0x1b0] sm:$0xff] }
 0x25c   : > { %4481 = vmatprep.subr.bf16.mxu0 %v5292_v53  ;;  %4942 = vmatprep.subr.bf16.mxu1 %v5292_v53  ;;  %v1949_v25 = vld [vmem:[%s6646_s16 + $0x20] sm:$0xff]  ;;  %v5337_v28 = vld [vmem:[%s6628_s23 + $0xb0] ss:$8 sps:$4 sm:$0xff]   ;;  %v5317_v35 = vld [vmem:[%s6628_s23 + $0x54] ss:$8 sps:$4 sm:$0xff]  }
 0x25d   : > { %v1967_v29 = vld [vmem:[%s6646_s16 + $0xb0] sm:$0xff]  ;;  %v5338_v30 = vld [vmem:[%s6628_s23 + $0xc4] ss:$8 sps:$4 sm:$0xff]   ;;  %v5316_v32 = vld [vmem:[%s6628_s23 + $0x40] ss:$8 sps:$4 sm:$0xff]  }
 0x25e   : > { %v1983_v31 = vld [vmem:[%s6646_s16 + $0x130] sm:$0xff]  ;;  %v2001_v34 = vld [vmem:[%s6646_s16 + $0x1c0] sm:$0xff] }
 0x25f   : > { %4482 = vmatpush3.bf16.msra.mxu0 %v5293_v54  ;;  %4950 = vmatpush3.bf16.msra.mxu1 %v5293_v54  ;;  %v1951_v33 = vld [vmem:[%s6646_s16 + $0x30] sm:$0xff]  ;;  %v5340_v36 = vld [vmem:[%s6628_s23 + $0xc0] ss:$8 sps:$4 sm:$0xff]   ;;  %v5320_v45 = vld [vmem:[%s6628_s23 + $0x64] ss:$8 sps:$4 sm:$0xff]  }
 0x260   : > { %4483 = vmatprep.subr.bf16.mxu0 %v5294_v55  ;;  %4943 = vmatprep.subr.bf16.mxu1 %v5294_v55  ;;  %v1969_v38 = vld [vmem:[%s6646_s16 + $0xc0] sm:$0xff]  ;;  %v5341_v39 = vld [vmem:[%s6628_s23 + $0xd4] ss:$8 sps:$4 sm:$0xff]   ;;  %v5319_v42 = vld [vmem:[%s6628_s23 + $0x50] ss:$8 sps:$4 sm:$0xff]  }
 0x261   : > { %v1985_v41 = vld [vmem:[%s6646_s16 + $0x140] sm:$0xff]  ;;  %v2003_v44 = vld [vmem:[%s6646_s16 + $0x1d0] sm:$0xff] }
 0x262   : > { %v1953_v43 = vld [vmem:[%s6646_s16 + $0x40] sm:$0xff]  ;;  %v5343_v46 = vld [vmem:[%s6628_s23 + $0xd0] ss:$8 sps:$4 sm:$0xff]   ;;  %v5323_v51 = vld [vmem:[%s6628_s23 + $0x74] ss:$8 sps:$4 sm:$0xff]  }
 0x263   : > { %4484 = vmatpush3.bf16.msra.mxu0 %v5295_v56  ;;  %4951 = vmatpush3.bf16.msra.mxu1 %v5295_v56  ;;  %v1971_v47 = vld [vmem:[%s6646_s16 + $0xd0] sm:$0xff]  ;;  %v5344_v48 = vld [vmem:[%s6628_s23 + $0xe4] ss:$8 sps:$4 sm:$0xff]   ;;  %v5322_v40 = vld [vmem:[%s6628_s23 + $0x60] ss:$8 sps:$4 sm:$0xff]  }
 0x264   : > { %4485 = vmatprep.subr.bf16.mxu0 %v5296_v57  ;;  %4944 = vmatprep.subr.bf16.mxu1 %v5296_v57  ;;  %v1987_v37 = vld [vmem:[%s6646_s16 + $0x150] sm:$0xff]  ;;  %v2005_v50 = vld [vmem:[%s6646_s16 + $0x1e0] sm:$0xff] }
 0x265   : > { %v1955_v49 = vld [vmem:[%s6646_s16 + $0x50] sm:$0xff]  ;;  %v5346_v52 = vld [vmem:[%s6628_s23 + $0xe0] ss:$8 sps:$4 sm:$0xff]  }
 0x266   : > { %v1973_v53 = vld [vmem:[%s6646_s16 + $0xe0] sm:$0xff]  ;;  %v5347_v54 = vld [vmem:[%s6628_s23 + $0xf4] ss:$8 sps:$4 sm:$0xff]   ;;  %v5325_v56 = vld [vmem:[%s6628_s23 + $0x70] ss:$8 sps:$4 sm:$0xff]  }
 0x267   : > { %4486 = vmatpush3.bf16.msra.mxu0 %v5297_v59  ;;  %4952 = vmatpush3.bf16.msra.mxu1 %v5297_v59  ;;  %v1989_v55 = vld [vmem:[%s6646_s16 + $0x160] sm:$0xff]  ;;  %v5349_v58 = vld [vmem:[%s6628_s23 + $0xf0] ss:$8 sps:$4 sm:$0xff]  }
 0x268   : > { %4487 = vmatprep.subr.bf16.mxu0 %v5298_v60  ;;  %4945 = vmatprep.subr.bf16.mxu1 %v5298_v60  ;;  %v1957_v57 = vld [vmem:[%s6646_s16 + $0x60] sm:$0xff]  ;;  %v1975_v59 = vld [vmem:[%s6646_s16 + $0xf0] sm:$0xff] }
 0x269   : > { %v2007_v60 = vld [vmem:[%s6646_s16 + $0x1f0] sm:$0xff] }
 0x26b   : > { %4488 = vmatpush3.bf16.msra.mxu0 %v5299_v61  ;;  %4953 = vmatpush3.bf16.msra.mxu1 %v5299_v61  ;;  %v1959_v61 = vld [vmem:[%s6646_s16 + $0x70] sm:$0xff] }
 0x26c   : > { %4489 = vmatprep.subr.bf16.mxu0 %v5300_v62  ;;  %4946 = vmatprep.subr.bf16.mxu1 %v5300_v62  ;;  %v1991_v62 = vld [vmem:[%s6646_s16 + $0x170] sm:$0xff] }
 0x26f   : > { %4490 = vmatpush3.bf16.msra.mxu0 %v5301_v63  ;;  %4954 = vmatpush3.bf16.msra.mxu1 %v5301_v63 }
 0x270   : > { %4587 = vmatprep.subr.bf16.mxu1 %v1961_v7  ;;  %4635 = vmatprep.subr.bf16.mxu0 %v1993_v9 }
 0x272   : > { %1814 = vmatmul.mubr.bf16.vlgmr.msra.gmra.mrb[0].mxu0 %v5302_v1  ;;  %1878 = vmatmul.mubr.bf16.vlgmr.msra.gmra.mrb[0].mxu1 %v5326_v3 }
 0x273   : > { %1821 = vmatprep.mubr.bf16.mxu0 %v5305_v2  ;;  %1885 = vmatprep.mubr.bf16.mxu1 %v5329_v4 }
 0x278   : > { %4636 = vmatpush3.bf16.xpose.msra.mxu0 %v1977_v10  ;;  %4588 = vmatpush3.bf16.xpose.msra.mxu1 %v1945_v8 }
 0x279   : > { %4637 = vmatprep.subr.bf16.mxu0 %v1995_v13  ;;  %4589 = vmatprep.subr.bf16.mxu1 %v1963_v12 }
 0x27a   : > { %1822 = vmatmul.mubr.bf16.gmra.mrb[4].mxu0 %v5307_v5  ;;  %1886 = vmatmul.mubr.bf16.gmra.mrb[4].mxu1 %v5331_v11  ;;  %v6708_v5 = vld [vmem:[%s1517_s9] ss:$0 sm:$0xff] }
 0x27b   : > { %1829 = vmatprep.mubr.bf16.mxu0 %v5308_v6  ;;  %1893 = vmatprep.mubr.bf16.mxu1 %v5332_v14 }
 0x280   : > { %4638 = vmatpush3.bf16.xpose.msra.mxu0 %v1979_v15  ;;  %4590 = vmatpush3.bf16.xpose.msra.mxu1 %v1947_v17 }
 0x281   : > { %4639 = vmatprep.subr.bf16.mxu0 %v1997_v18  ;;  %4591 = vmatprep.subr.bf16.mxu1 %v1965_v21 }
 0x282   : > { %1830 = vmatmul.mubr.bf16.gmra.mrb[8].mxu0 %v5310_v16  ;;  %1894 = vmatmul.mubr.bf16.gmra.mrb[8].mxu1 %v5334_v20 }
 0x283   : > { %1837 = vmatprep.mubr.bf16.mxu0 %v5311_v19  ;;  %1901 = vmatprep.mubr.bf16.mxu1 %v5335_v22 }
 0x288   : > { %4640 = vmatpush3.bf16.xpose.msra.mxu0 %v1981_v23  ;;  %4592 = vmatpush3.bf16.xpose.msra.mxu1 %v1949_v25 }
 0x289   : > { %4641 = vmatprep.subr.bf16.mxu0 %v1999_v26  ;;  %4593 = vmatprep.subr.bf16.mxu1 %v1967_v29 }
 0x28a   : > { %1838 = vmatmul.mubr.bf16.gmra.mrb[12].mxu0 %v5313_v24  ;;  %1902 = vmatmul.mubr.bf16.gmra.mrb[12].mxu1 %v5337_v28 }
 0x28b   : > { %1845 = vmatprep.mubr.bf16.mxu0 %v5314_v27  ;;  %1909 = vmatprep.mubr.bf16.mxu1 %v5338_v30 }
 0x290   : > { %4642 = vmatpush3.bf16.xpose.msra.mxu0 %v1983_v31  ;;  %4594 = vmatpush3.bf16.xpose.msra.mxu1 %v1951_v33 }
 0x291   : > { %4643 = vmatprep.subr.bf16.mxu0 %v2001_v34  ;;  %4595 = vmatprep.subr.bf16.mxu1 %v1969_v38 }
 0x292   : > { %1846 = vmatmul.mubr.bf16.gmra.mrb[16].mxu0 %v5316_v32  ;;  %1910 = vmatmul.mubr.bf16.gmra.mrb[16].mxu1 %v5340_v36 }
 0x293   : > { %1853 = vmatprep.mubr.bf16.mxu0 %v5317_v35  ;;  %1917 = vmatprep.mubr.bf16.mxu1 %v5341_v39 }
 0x298   : > { %4644 = vmatpush3.bf16.xpose.msra.mxu0 %v1985_v41  ;;  %4596 = vmatpush3.bf16.xpose.msra.mxu1 %v1953_v43 }
 0x299   : > { %4645 = vmatprep.subr.bf16.mxu0 %v2003_v44  ;;  %4597 = vmatprep.subr.bf16.mxu1 %v1971_v47 }
 0x29a   : > { %1854 = vmatmul.mubr.bf16.gmra.mrb[20].mxu0 %v5319_v42  ;;  %1918 = vmatmul.mubr.bf16.gmra.mrb[20].mxu1 %v5343_v46 }
 0x29b   : > { %1861 = vmatprep.mubr.bf16.mxu0 %v5320_v45  ;;  %1925 = vmatprep.mubr.bf16.mxu1 %v5344_v48 }
 0x2a0   : > { %4646 = vmatpush3.bf16.xpose.msra.mxu0 %v1987_v37  ;;  %4598 = vmatpush3.bf16.xpose.msra.mxu1 %v1955_v49 }
 0x2a1   : > { %4647 = vmatprep.subr.bf16.mxu0 %v2005_v50  ;;  %4599 = vmatprep.subr.bf16.mxu1 %v1973_v53 }
 0x2a2   : > { %1862 = vmatmul.mubr.bf16.gmra.mrb[24].mxu0 %v5322_v40  ;;  %1926 = vmatmul.mubr.bf16.gmra.mrb[24].mxu1 %v5346_v52 }
 0x2a3   : > { %1869 = vmatprep.mubr.bf16.mxu0 %v5323_v51  ;;  %1933 = vmatprep.mubr.bf16.mxu1 %v5347_v54 }
 0x2a8   : > { %4648 = vmatpush3.bf16.xpose.msra.mxu0 %v1989_v55  ;;  %4600 = vmatpush3.bf16.xpose.msra.mxu1 %v1957_v57 }
 0x2a9   : > { %4601 = vmatprep.subr.bf16.mxu1 %v1975_v59  ;;  %4649 = vmatprep.subr.bf16.mxu0 %v2007_v60 }
 0x2aa   : > { %1870 = vmatmul.mubr.bf16.gmra.mrb[28].mxu0 %v5325_v56  ;;  %1934 = vmatmul.mubr.bf16.gmra.mrb[28].mxu1 %v5349_v58 }
 0x2b0   : > { %4602 = vmatpush3.bf16.xpose.msra.mxu1 %v1959_v61  ;;  %4650 = vmatpush3.bf16.xpose.msra.mxu0 %v1991_v62 }
 0x345   : > { %v4491_v63 = vpop.f32.mrb[0].mxu0  ;;  %v4539_v1 = vpop.f32.mrb[0].mxu1 }
 0x346   : > { %v4492_v0 = vpop.f32.mrb[1].mxu0  ;;  %v4540_v4 = vpop.f32.mrb[1].mxu1 }
 0x347   : > { %v4493_v2 = vadd.f32 %v4492_v0, %v4491_v63  ;;  %v4494_v3 = vpop.f32.mrb[2].mxu0  ;;  %v4541_v7 = vadd.f32 %v4540_v4, %v4539_v1  ;;  %v4542_v8 = vpop.f32.mrb[2].mxu1 }
 0x348   : > { %v4495_v6 = vpop.f32.mrb[3].mxu0  ;;  %v4543_v10 = vpop.f32.mrb[3].mxu1 }
 0x349   : > { %v4496_v9 = vadd.f32 %v4495_v6, %v4494_v3  ;;  %v1880_v11 = vadd.f32 %v4541_v7, %v6708_v5  ;;  %v4544_v12 = vadd.f32 %v4543_v10, %v4542_v8  ;;  %v1816_v13 = vadd.f32 %v4493_v2, %v6708_v5 }
 0x34b   : > { %v1819_v14 = vadd.f32 %v4496_v9, %v6708_v5  ;;  %v1883_v15 = vadd.f32 %v4544_v12, %v6708_v5 }
 0x34d   : > { %v2009_v16 = vpack.c.bf16 %v1819_v14, %v1816_v13  ;;  %v4497_v17 = vpop.f32.mrb[4].mxu0  ;;  %v6714_v19 = vpack.c.bf16 %v1883_v15, %v1880_v11  ;;  %v4545_v20 = vpop.f32.mrb[4].mxu1 }
 0x34e   : > { %v4498_v18 = vpop.f32.mrb[5].mxu0  ;;  %v4546_v23 = vpop.f32.mrb[5].mxu1 }
 0x34f   : > { %v4499_v21 = vadd.f32 %v4498_v18, %v4497_v17  ;;  %v4500_v22 = vpop.f32.mrb[6].mxu0  ;;  %4603 = vmatprep.mubr.bf16.mxu1 %v2009_v16  ;;  %4651 = vmatprep.mubr.bf16.mxu0 %v2009_v16  ;;  %v4547_v25 = vadd.f32 %v4546_v23, %v4545_v20  ;;  %v4548_v26 = vpop.f32.mrb[6].mxu1 }
 0x350   : > { %v4501_v24 = vpop.f32.mrb[7].mxu0  ;;  %4604 = vmatmul.mubr.bf16.vlgmr.msra.gmra.mrb[32].mxu1 %v2009_v16  ;;  %4652 = vmatmul.mubr.bf16.vlgmr.msra.gmra.mrb[32].mxu0 %v2009_v16  ;;  %v4549_v28 = vpop.f32.mrb[7].mxu1 }
 0x351   : > { %v4502_v27 = vadd.f32 %v4501_v24, %v4500_v22  ;;  %v1888_v29 = vadd.f32 %v4547_v25, %v6708_v5  ;;  %v4550_v30 = vadd.f32 %v4549_v28, %v4548_v26  ;;  %v1824_v31 = vadd.f32 %v4499_v21, %v6708_v5 }
 0x353   : > { %v1827_v32 = vadd.f32 %v4502_v27, %v6708_v5  ;;  %v1891_v33 = vadd.f32 %v4550_v30, %v6708_v5 }
 0x355   : > { %v2010_v34 = vpack.c.bf16 %v1827_v32, %v1824_v31  ;;  %v4503_v35 = vpop.f32.mrb[8].mxu0  ;;  %v6720_v38 = vpack.c.bf16 %v1891_v33, %v1888_v29  ;;  %v4551_v39 = vpop.f32.mrb[8].mxu1 }
 0x356   : > { %v4504_v36 = vpop.f32.mrb[9].mxu0  ;;  %v4552_v43 = vpop.f32.mrb[9].mxu1 }
 0x357   : > { %v4505_v41 = vadd.f32 %v4504_v36, %v4503_v35  ;;  %v4506_v42 = vpop.f32.mrb[10].mxu0  ;;  %4605 = vmatprep.mubr.bf16.mxu1 %v2010_v34  ;;  %4653 = vmatprep.mubr.bf16.mxu0 %v2010_v34  ;;  %v4553_v45 = vadd.f32 %v4552_v43, %v4551_v39  ;;  %v4554_v46 = vpop.f32.mrb[10].mxu1 }
 0x358   : > { %v4507_v44 = vpop.f32.mrb[11].mxu0  ;;  %4606 = vmatmul.mubr.bf16.gmra.mrb[36].mxu1 %v2010_v34  ;;  %4654 = vmatmul.mubr.bf16.gmra.mrb[36].mxu0 %v2010_v34  ;;  %v4555_v37 = vpop.f32.mrb[11].mxu1 }
 0x359   : > { %v1832_v47 = vadd.f32 %v4505_v41, %v6708_v5  ;;  %v4508_v48 = vadd.f32 %v4507_v44, %v4506_v42  ;;  %v1896_v40 = vadd.f32 %v4553_v45, %v6708_v5  ;;  %v4556_v49 = vadd.f32 %v4555_v37, %v4554_v46 }
 0x35b   : > { %v1835_v50 = vadd.f32 %v4508_v48, %v6708_v5  ;;  %v1899_v51 = vadd.f32 %v4556_v49, %v6708_v5 }
 0x35d   : > { %v2011_v52 = vpack.c.bf16 %v1835_v50, %v1832_v47  ;;  %v4509_v53 = vpop.f32.mrb[12].mxu0  ;;  %v6726_v55 = vpack.c.bf16 %v1899_v51, %v1896_v40  ;;  %v4557_v56 = vpop.f32.mrb[12].mxu1 }
 0x35e   : > { %v4510_v54 = vpop.f32.mrb[13].mxu0  ;;  %v4558_v59 = vpop.f32.mrb[13].mxu1 }
 0x35f   : > { %v4511_v57 = vadd.f32 %v4510_v54, %v4509_v53  ;;  %v4512_v58 = vpop.f32.mrb[14].mxu0  ;;  %4607 = vmatprep.mubr.bf16.mxu1 %v2011_v52  ;;  %4655 = vmatprep.mubr.bf16.mxu0 %v2011_v52  ;;  %v4559_v61 = vadd.f32 %v4558_v59, %v4557_v56  ;;  %v4560_v62 = vpop.f32.mrb[14].mxu1 }
 0x360   : > { %v4513_v60 = vpop.f32.mrb[15].mxu0  ;;  %4608 = vmatmul.mubr.bf16.gmra.mrb[40].mxu1 %v2011_v52  ;;  %4656 = vmatmul.mubr.bf16.gmra.mrb[40].mxu0 %v2011_v52  ;;  %v4561_v1 = vpop.f32.mrb[15].mxu1 }
 0x361   : > { %v1840_v63 = vadd.f32 %v4511_v57, %v6708_v5  ;;  %v4514_v0 = vadd.f32 %v4513_v60, %v4512_v58  ;;  %v1904_v2 = vadd.f32 %v4559_v61, %v6708_v5  ;;  %v4562_v3 = vadd.f32 %v4561_v1, %v4560_v62 }
 0x363   : > { %v1843_v4 = vadd.f32 %v4514_v0, %v6708_v5  ;;  %v1907_v6 = vadd.f32 %v4562_v3, %v6708_v5 }
 0x365   : > { %v2012_v7 = vpack.c.bf16 %v1843_v4, %v1840_v63  ;;  %v4515_v8 = vpop.f32.mrb[16].mxu0  ;;  %v6732_v10 = vpack.c.bf16 %v1907_v6, %v1904_v2  ;;  %v4563_v11 = vpop.f32.mrb[16].mxu1 }
 0x366   : > { %v4516_v9 = vpop.f32.mrb[17].mxu0  ;;  %v4564_v14 = vpop.f32.mrb[17].mxu1 }
 0x367   : > { %v4517_v12 = vadd.f32 %v4516_v9, %v4515_v8  ;;  %v4518_v13 = vpop.f32.mrb[18].mxu0  ;;  %4609 = vmatprep.mubr.bf16.mxu1 %v2012_v7  ;;  %4657 = vmatprep.mubr.bf16.mxu0 %v2012_v7  ;;  %v4565_v16 = vadd.f32 %v4564_v14, %v4563_v11  ;;  %v4566_v17 = vpop.f32.mrb[18].mxu1 }
 0x368   : > { %v4519_v15 = vpop.f32.mrb[19].mxu0  ;;  %4610 = vmatmul.mubr.bf16.gmra.mrb[44].mxu1 %v2012_v7  ;;  %4658 = vmatmul.mubr.bf16.gmra.mrb[44].mxu0 %v2012_v7  ;;  %v4567_v21 = vpop.f32.mrb[19].mxu1 }
 0x369   : > { %v1848_v18 = vadd.f32 %v4517_v12, %v6708_v5  ;;  %v4520_v20 = vadd.f32 %v4519_v15, %v4518_v13  ;;  %v1912_v22 = vadd.f32 %v4565_v16, %v6708_v5  ;;  %v4568_v23 = vadd.f32 %v4567_v21, %v4566_v17 }
 0x36b   : > { %v1851_v24 = vadd.f32 %v4520_v20, %v6708_v5  ;;  %v1915_v25 = vadd.f32 %v4568_v23, %v6708_v5  ;;  %v1996_v23 = vld [vmem:[%s6646_s16 + $0x198] sm:$0xff] }
 0x36d   : > { %v2013_v26 = vpack.c.bf16 %v1851_v24, %v1848_v18  ;;  %v4521_v27 = vpop.f32.mrb[20].mxu0  ;;  %v6738_v29 = vpack.c.bf16 %v1915_v25, %v1912_v22  ;;  %v4569_v30 = vpop.f32.mrb[20].mxu1  ;;  %v1948_v24 = vld [vmem:[%s6646_s16 + $0x18] sm:$0xff] }
 0x36e   : > { %v4522_v28 = vpop.f32.mrb[21].mxu0  ;;  %v4570_v33 = vpop.f32.mrb[21].mxu1  ;;  %v1980_v25 = vld [vmem:[%s6646_s16 + $0x118] sm:$0xff] }
 0x36f   : > { %v4523_v31 = vadd.f32 %v4522_v28, %v4521_v27  ;;  %v4524_v32 = vpop.f32.mrb[22].mxu0  ;;  %4611 = vmatprep.mubr.bf16.mxu1 %v2013_v26  ;;  %4659 = vmatprep.mubr.bf16.mxu0 %v2013_v26  ;;  %v4571_v35 = vadd.f32 %v4570_v33, %v4569_v30  ;;  %v4572_v36 = vpop.f32.mrb[22].mxu1  ;;  %v1998_v27 = vld [vmem:[%s6646_s16 + $0x1a8] sm:$0xff]  ;;  %v1968_v30 = vld [vmem:[%s6646_s16 + $0xb8] sm:$0xff] }
 0x370   : > { %v4525_v34 = vpop.f32.mrb[23].mxu0  ;;  %4612 = vmatmul.mubr.bf16.gmra.mrb[48].mxu1 %v2013_v26  ;;  %4660 = vmatmul.mubr.bf16.gmra.mrb[48].mxu0 %v2013_v26  ;;  %v4573_v42 = vpop.f32.mrb[23].mxu1  ;;  %v1966_v26 = vld [vmem:[%s6646_s16 + $0xa8] sm:$0xff]  ;;  %v1984_v33 = vld [vmem:[%s6646_s16 + $0x138] sm:$0xff] }
 0x371   : > { %v1856_v39 = vadd.f32 %v4523_v31, %v6708_v5  ;;  %v4526_v41 = vadd.f32 %v4525_v34, %v4524_v32  ;;  %v1920_v43 = vadd.f32 %v4571_v35, %v6708_v5  ;;  %v4574_v44 = vadd.f32 %v4573_v42, %v4572_v36  ;;  %v1950_v28 = vld [vmem:[%s6646_s16 + $0x28] sm:$0xff]  ;;  %v2000_v31 = vld [vmem:[%s6646_s16 + $0x1b8] sm:$0xff] }
 0x372   : > { %v1952_v32 = vld [vmem:[%s6646_s16 + $0x38] sm:$0xff]  ;;  %v1970_v34 = vld [vmem:[%s6646_s16 + $0xc8] sm:$0xff] }
 0x373   : > { %v1859_v45 = vadd.f32 %v4526_v41, %v6708_v5  ;;  %v1923_v46 = vadd.f32 %v4574_v44, %v6708_v5  ;;  %v2002_v35 = vld [vmem:[%s6646_s16 + $0x1c8] sm:$0xff]  ;;  %v1972_v41 = vld [vmem:[%s6646_s16 + $0xd8] sm:$0xff] }
 0x374   : > { %v1954_v36 = vld [vmem:[%s6646_s16 + $0x48] sm:$0xff]  ;;  %v2004_v42 = vld [vmem:[%s6646_s16 + $0x1d8] sm:$0xff] }
 0x375   : > { %v2014_v47 = vpack.c.bf16 %v1859_v45, %v1856_v39  ;;  %v4527_v48 = vpop.f32.mrb[24].mxu0  ;;  %v6744_v40 = vpack.c.bf16 %v1923_v46, %v1920_v43  ;;  %v4575_v49 = vpop.f32.mrb[24].mxu1  ;;  %v1986_v39 = vld [vmem:[%s6646_s16 + $0x148] sm:$0xff]  ;;  %v1956_v43 = vld [vmem:[%s6646_s16 + $0x58] sm:$0xff] }
 0x376   : > { %v4528_v37 = vpop.f32.mrb[25].mxu0  ;;  %v4576_v52 = vpop.f32.mrb[25].mxu1  ;;  %v1988_v44 = vld [vmem:[%s6646_s16 + $0x158] sm:$0xff] }
 0x377   : > { %v4529_v50 = vadd.f32 %v4528_v37, %v4527_v48  ;;  %v4530_v51 = vpop.f32.mrb[26].mxu0  ;;  %4613 = vmatprep.mubr.bf16.mxu1 %v2014_v47  ;;  %4661 = vmatprep.mubr.bf16.mxu0 %v2014_v47  ;;  %v4577_v54 = vadd.f32 %v4576_v52, %v4575_v49  ;;  %v4578_v56 = vpop.f32.mrb[26].mxu1  ;;  %v1958_v52 = vld [vmem:[%s6646_s16 + $0x68] sm:$0xff] }
 0x378   : > { %v4531_v53 = vpop.f32.mrb[27].mxu0  ;;  %4614 = vmatmul.mubr.bf16.gmra.mrb[52].mxu1 %v2014_v47  ;;  %4662 = vmatmul.mubr.bf16.gmra.mrb[52].mxu0 %v2014_v47  ;;  %v4579_v59 = vpop.f32.mrb[27].mxu1 }
 0x379   : > { %v1864_v57 = vadd.f32 %v4529_v50, %v6708_v5  ;;  %v4532_v58 = vadd.f32 %v4531_v53, %v4530_v51  ;;  %v1928_v60 = vadd.f32 %v4577_v54, %v6708_v5  ;;  %v4580_v61 = vadd.f32 %v4579_v59, %v4578_v56  ;;  %v1974_v50 = vld [vmem:[%s6646_s16 + $0xe8] sm:$0xff] }
 0x37a   : > { %v2006_v51 = vld [vmem:[%s6646_s16 + $0x1e8] sm:$0xff] }
 0x37b   : > { %v1867_v62 = vadd.f32 %v4532_v58, %v6708_v5  ;;  %v1931_v63 = vadd.f32 %v4580_v61, %v6708_v5  ;;  %v1990_v56 = vld [vmem:[%s6646_s16 + $0x168] sm:$0xff] }
 0x37d   : > { %v2015_v0 = vpack.c.bf16 %v1867_v62, %v1864_v57  ;;  %v4533_v1 = vpop.f32.mrb[28].mxu0  ;;  %v2023_v3 = vpack.c.bf16 %v1931_v63, %v1928_v60  ;;  %v4581_v4 = vpop.f32.mrb[28].mxu1 }
 0x37e   : > { %v4534_v2 = vpop.f32.mrb[29].mxu0  ;;  %v4582_v8 = vpop.f32.mrb[29].mxu1 }
 0x37f   : > { %v4535_v6 = vadd.f32 %v4534_v2, %v4533_v1  ;;  %v4536_v7 = vpop.f32.mrb[30].mxu0  ;;  %4615 = vmatprep.mubr.bf16.mxu1 %v2015_v0  ;;  %4663 = vmatprep.mubr.bf16.mxu0 %v2015_v0  ;;  %v4583_v11 = vadd.f32 %v4582_v8, %v4581_v4  ;;  %v4584_v12 = vpop.f32.mrb[30].mxu1 }
 0x380   : > { %v4537_v9 = vpop.f32.mrb[31].mxu0  ;;  %4616 = vmatmul.mubr.bf16.gmra.mrb[56].mxu1 %v2015_v0  ;;  %4664 = vmatmul.mubr.bf16.gmra.mrb[56].mxu0 %v2015_v0  ;;  %v4585_v15 = vpop.f32.mrb[31].mxu1 }
 0x381   : > { %v1872_v13 = vadd.f32 %v4535_v6, %v6708_v5  ;;  %v4538_v14 = vadd.f32 %v4537_v9, %v4536_v7  ;;  %v1936_v16 = vadd.f32 %v4583_v11, %v6708_v5  ;;  %v4586_v17 = vadd.f32 %v4585_v15, %v4584_v12 }
 0x383   : > { %v1875_v18 = vadd.f32 %v4538_v14, %v6708_v5  ;;  %v1939_v20 = vadd.f32 %v4586_v17, %v6708_v5  ;;  %v1962_v5 = vld [vmem:[%s6646_s16 + $0x88] sm:$0xff] }
 0x384   : > { %4683 = vmatprep.subr.bf16.mxu1 %v1962_v5 }
 0x385   : > { %v2016_v21 = vpack.c.bf16 %v1875_v18, %v1872_v13  ;;  %v2024_v22 = vpack.c.bf16 %v1939_v20, %v1936_v16 }
 0x387   : > { %4617 = vmatprep.mubr.bf16.mxu1 %v2016_v21  ;;  %4665 = vmatprep.mubr.bf16.mxu0 %v2016_v21 }
 0x388   : > { %4618 = vmatmul.mubr.bf16.gmra.mrb[60].mxu1 %v2016_v21  ;;  %4666 = vmatmul.mubr.bf16.gmra.mrb[60].mxu0 %v2016_v21 }
 0x389   : > { %4619 = vmatprep.mubr.bf16.mxu1 %v6714_v19  ;;  %4667 = vmatprep.mubr.bf16.mxu0 %v6714_v19 }
 0x390   : > { %4620 = vmatmul.mubr.bf16.gmra.mrb[64].mxu1 %v6714_v19  ;;  %4668 = vmatmul.mubr.bf16.gmra.mrb[64].mxu0 %v6714_v19  ;;  %v1994_v19 = vld [vmem:[%s6646_s16 + $0x188] sm:$0xff] }
 0x391   : > { %4621 = vmatprep.mubr.bf16.mxu1 %v6720_v38  ;;  %4669 = vmatprep.mubr.bf16.mxu0 %v6720_v38 }
 0x392   : > { %4795 = vmatprep.subr.bf16.mxu0 %v1994_v19 }
 0x398   : > { %4622 = vmatmul.mubr.bf16.gmra.mrb[68].mxu1 %v6720_v38  ;;  %4670 = vmatmul.mubr.bf16.gmra.mrb[68].mxu0 %v6720_v38  ;;  %v1946_v38 = vld [vmem:[%s6646_s16 + $0x8] sm:$0xff] }
 0x399   : > { %4623 = vmatprep.mubr.bf16.mxu1 %v6726_v55  ;;  %4671 = vmatprep.mubr.bf16.mxu0 %v6726_v55 }
 0x39a   : > { %4684 = vmatpush3.bf16.msra.mxu1 %v1946_v38 }
 0x3a0   : > { %4624 = vmatmul.mubr.bf16.gmra.mrb[72].mxu1 %v6726_v55  ;;  %4672 = vmatmul.mubr.bf16.gmra.mrb[72].mxu0 %v6726_v55  ;;  %v1978_v55 = vld [vmem:[%s6646_s16 + $0x108] sm:$0xff] }
 0x3a1   : > { %4625 = vmatprep.mubr.bf16.mxu1 %v6732_v10  ;;  %4673 = vmatprep.mubr.bf16.mxu0 %v6732_v10 }
 0x3a2   : > { %4796 = vmatpush3.bf16.msra.mxu0 %v1978_v55 }
 0x3a3   : > { %4797 = vmatprep.subr.bf16.mxu0 %v1996_v23 }
 0x3a6   : > { %4798 = vmatpush3.bf16.msra.mxu0 %v1980_v25 }
 0x3a7   : > { %4799 = vmatprep.subr.bf16.mxu0 %v1998_v27 }
 0x3a8   : > { %4626 = vmatmul.mubr.bf16.gmra.mrb[76].mxu1 %v6732_v10  ;;  %4674 = vmatmul.mubr.bf16.gmra.mrb[76].mxu0 %v6732_v10  ;;  %v1964_v10 = vld [vmem:[%s6646_s16 + $0x98] sm:$0xff] }
 0x3a9   : > { %4627 = vmatprep.mubr.bf16.mxu1 %v6738_v29  ;;  %4675 = vmatprep.mubr.bf16.mxu0 %v6738_v29 }
 0x3aa   : > { %4685 = vmatprep.subr.bf16.mxu1 %v1964_v10 }
 0x3ab   : > { %4686 = vmatpush3.bf16.msra.mxu1 %v1948_v24 }
 0x3ac   : > { %4687 = vmatprep.subr.bf16.mxu1 %v1966_v26 }
 0x3af   : > { %4688 = vmatpush3.bf16.msra.mxu1 %v1950_v28 }
 0x3b0   : > { %4628 = vmatmul.mubr.bf16.gmra.mrb[80].mxu1 %v6738_v29  ;;  %4676 = vmatmul.mubr.bf16.gmra.mrb[80].mxu0 %v6738_v29  ;;  %v1982_v29 = vld [vmem:[%s6646_s16 + $0x128] sm:$0xff] }
 0x3b1   : > { %4629 = vmatprep.mubr.bf16.mxu1 %v6744_v40  ;;  %4677 = vmatprep.mubr.bf16.mxu0 %v6744_v40 }
 0x3b2   : > { %4800 = vmatpush3.bf16.msra.mxu0 %v1982_v29  ;;  %4689 = vmatprep.subr.bf16.mxu1 %v1968_v30 }
 0x3b3   : > { %4801 = vmatprep.subr.bf16.mxu0 %v2000_v31  ;;  %4690 = vmatpush3.bf16.msra.mxu1 %v1952_v32 }
 0x3b4   : > { %4691 = vmatprep.subr.bf16.mxu1 %v1970_v34 }
 0x3b6   : > { %4802 = vmatpush3.bf16.msra.mxu0 %v1984_v33 }
 0x3b7   : > { %4803 = vmatprep.subr.bf16.mxu0 %v2002_v35  ;;  %4692 = vmatpush3.bf16.msra.mxu1 %v1954_v36 }
 0x3b8   : > { %4630 = vmatmul.mubr.bf16.gmra.mrb[84].mxu1 %v6744_v40  ;;  %4678 = vmatmul.mubr.bf16.gmra.mrb[84].mxu0 %v6744_v40 }
 0x3b9   : > { %4631 = vmatprep.mubr.bf16.mxu1 %v2023_v3  ;;  %4679 = vmatprep.mubr.bf16.mxu0 %v2023_v3 }
 0x3ba   : > { %4804 = vmatpush3.bf16.msra.mxu0 %v1986_v39  ;;  %4693 = vmatprep.subr.bf16.mxu1 %v1972_v41 }
 0x3bb   : > { %4805 = vmatprep.subr.bf16.mxu0 %v2004_v42  ;;  %4694 = vmatpush3.bf16.msra.mxu1 %v1956_v43 }
 0x3bc   : > { %4695 = vmatprep.subr.bf16.mxu1 %v1974_v50  ;;  %v2008_v50 = vld [vmem:[%s6646_s16 + $0x1f8] sm:$0xff] }
 0x3be   : > { %4806 = vmatpush3.bf16.msra.mxu0 %v1988_v44 }
 0x3bf   : > { %4807 = vmatprep.subr.bf16.mxu0 %v2006_v51  ;;  %4696 = vmatpush3.bf16.msra.mxu1 %v1958_v52  ;;  %v1960_v51 = vld [vmem:[%s6646_s16 + $0x78] sm:$0xff] }
 0x3c0   : > { %4632 = vmatmul.mubr.bf16.gmra.mrb[88].mxu1 %v2023_v3  ;;  %4680 = vmatmul.mubr.bf16.gmra.mrb[88].mxu0 %v2023_v3 }
 0x3c1   : > { %4633 = vmatprep.mubr.bf16.mxu1 %v2024_v22  ;;  %4681 = vmatprep.mubr.bf16.mxu0 %v2024_v22 }
 0x3c2   : > { %4808 = vmatpush3.bf16.msra.mxu0 %v1990_v56 }
 0x3c3   : > { %4809 = vmatprep.subr.bf16.mxu0 %v2008_v50 }
 0x3c8   : > { %4634 = vmatmul.mubr.bf16.gmra.mrb[92].mxu1 %v2024_v22  ;;  %4682 = vmatmul.mubr.bf16.gmra.mrb[92].mxu0 %v2024_v22 }
 0x423   : > { %v6802_v45 = vpop.f32.mrb[32].mxu1  ;;  %v6804_v46 = vpop.f32.mrb[32].mxu0 }
 0x424   : > { %v6806_v47 = vpop.f32.mrb[33].mxu1  ;;  %v6808_v48 = vpop.f32.mrb[33].mxu0 }
 0x425   : > { %v2411_v37 = vmax.f32 %v6802_v45, %v6806_v47  ;;  %v6812_v40 = vpop.f32.mrb[34].mxu1  ;;  %v6814_v49 = vpop.f32.mrb[34].mxu0 }
 0x426   : > { %v6819_v53 = vpop.f32.mrb[35].mxu1  ;;  %v6821_v54 = vpop.f32.mrb[35].mxu0 }
 0x427   : > { %v2416_v57 = vmax.f32 %v6812_v40, %v6819_v53  ;;  %v2412_v58 = vmax.f32 %v2411_v37, %v6804_v46  ;;  %v1976_v37 = vld [vmem:[%s6646_s16 + $0xf8] sm:$0xff] }
 0x428   : > { %4697 = vmatprep.subr.bf16.mxu1 %v1976_v37 }
 0x429   : > { %v2413_v59 = vmax.f32 %v2412_v58, %v6808_v48  ;;  %v2417_v60 = vmax.f32 %v2416_v57, %v6814_v49  ;;  %v1992_v58 = vld [vmem:[%s6646_s16 + $0x178] sm:$0xff]  ;;  %4698 = vmatpush3.bf16.msra.mxu1 %v1960_v51 }
 0x42a   : > { %4810 = vmatpush3.bf16.msra.mxu0 %v1992_v58 }
 0x42b   : > { %v6829_v61 = vpop.f32.mrb[36].mxu0  ;;  %2414 = vmax.xlane.f32.xlu0 %v2413_v59  ;;  %v6831_v62 = vpop.f32.mrb[36].mxu1  ;;  %v2418_v63 = vmax.f32 %v2417_v60, %v6821_v54 }
 0x42c   : > { %v6834_v0 = vpop.f32.mrb[37].mxu1  ;;  %v6836_v1 = vpop.f32.mrb[37].mxu0 }
 0x42d   : > { %v2421_v2 = vmax.f32 %v6831_v62, %v6834_v0  ;;  %v6840_v3 = vpop.f32.mrb[38].mxu1  ;;  %v6842_v4 = vpop.f32.mrb[38].mxu0 }
 0x42e   : > { %v6844_v6 = vpop.f32.mrb[39].mxu1  ;;  %v6846_v7 = vpop.f32.mrb[39].mxu0 }
 0x42f   : > { %v2426_v8 = vmax.f32 %v6840_v3, %v6844_v6  ;;  %2419 = vmax.xlane.f32.xlu0 %v2418_v63  ;;  %v2422_v9 = vmax.f32 %v2421_v2, %v6829_v61 }
 0x431   : > { %v2423_v11 = vmax.f32 %v2422_v9, %v6836_v1  ;;  %v2427_v12 = vmax.f32 %v2426_v8, %v6842_v4 }
 0x433   : > { %v6853_v13 = vpop.f32.mrb[40].mxu0  ;;  %2424 = vmax.xlane.f32.xlu1 %v2423_v11  ;;  %v6855_v14 = vpop.f32.mrb[40].mxu1  ;;  %v2428_v15 = vmax.f32 %v2427_v12, %v6846_v7 }
 0x434   : > { %v6858_v16 = vpop.f32.mrb[41].mxu1  ;;  %v6860_v17 = vpop.f32.mrb[41].mxu0 }
 0x435   : > { %v2431_v18 = vmax.f32 %v6855_v14, %v6858_v16  ;;  %v6864_v20 = vpop.f32.mrb[42].mxu1  ;;  %v6866_v21 = vpop.f32.mrb[42].mxu0 }
 0x436   : > { %v6868_v22 = vpop.f32.mrb[43].mxu1  ;;  %v6870_v5 = vpop.f32.mrb[43].mxu0 }
 0x437   : > { %v2436_v19 = vmax.f32 %v6864_v20, %v6868_v22  ;;  %2429 = vmax.xlane.f32.xlu1 %v2428_v15  ;;  %v2432_v38 = vmax.f32 %v2431_v18, %v6853_v13 }
 0x439   : > { %v2433_v55 = vmax.f32 %v2432_v38, %v6860_v17  ;;  %v2437_v10 = vmax.f32 %v2436_v19, %v6866_v21 }
 0x43b   : > { %v6877_v23 = vpop.f32.mrb[44].mxu0  ;;  %2434 = vmax.xlane.f32.xlu0 %v2433_v55  ;;  %v6879_v24 = vpop.f32.mrb[44].mxu1  ;;  %v2438_v25 = vmax.f32 %v2437_v10, %v6870_v5 }
 0x43c   : > { %v6882_v26 = vpop.f32.mrb[45].mxu1  ;;  %v6884_v27 = vpop.f32.mrb[45].mxu0 }
 0x43d   : > { %v2441_v28 = vmax.f32 %v6879_v24, %v6882_v26  ;;  %v6888_v29 = vpop.f32.mrb[46].mxu0  ;;  %2439 = vmax.xlane.f32.xlu1 %v2438_v25  ;;  %v6890_v30 = vpop.f32.mrb[46].mxu1 }
 0x43e   : > { %v6892_v31 = vpop.f32.mrb[47].mxu1  ;;  %v6894_v32 = vpop.f32.mrb[47].mxu0 }
 0x43f   : > { %v2446_v33 = vmax.f32 %v6890_v30, %v6892_v31  ;;  %v2442_v34 = vmax.f32 %v2441_v28, %v6877_v23 }
 0x441   : > { %v2443_v35 = vmax.f32 %v2442_v34, %v6884_v27  ;;  %v2447_v36 = vmax.f32 %v2446_v33, %v6888_v29 }
 0x443   : > { %v6901_v39 = vpop.f32.mrb[48].mxu0  ;;  %2444 = vmax.xlane.f32.xlu0 %v2443_v35  ;;  %v6903_v41 = vpop.f32.mrb[48].mxu1  ;;  %v2448_v42 = vmax.f32 %v2447_v36, %v6894_v32 }
 0x444   : > { %v6906_v43 = vpop.f32.mrb[49].mxu1  ;;  %v6908_v44 = vpop.f32.mrb[49].mxu0 }
 0x445   : > { %v2451_v52 = vmax.f32 %v6903_v41, %v6906_v43  ;;  %v6915_v56 = vpop.f32.mrb[50].mxu0  ;;  %2449 = vmax.xlane.f32.xlu1 %v2448_v42  ;;  %v6917_v57 = vpop.f32.mrb[50].mxu1 }
 0x446   : > { %v6920_v59 = vpop.f32.mrb[51].mxu1  ;;  %v6922_v60 = vpop.f32.mrb[51].mxu0 }
 0x447   : > { %v2456_v63 = vmax.f32 %v6917_v57, %v6920_v59  ;;  %v2452_v2 = vmax.f32 %v2451_v52, %v6901_v39 }
 0x449   : > { %v2453_v8 = vmax.f32 %v2452_v2, %v6908_v44  ;;  %v2457_v9 = vmax.f32 %v2456_v63, %v6915_v56 }
 0x44b   : > { %v6929_v11 = vpop.f32.mrb[52].mxu0  ;;  %2454 = vmax.xlane.f32.xlu0 %v2453_v8  ;;  %v6931_v12 = vpop.f32.mrb[52].mxu1  ;;  %v2458_v15 = vmax.f32 %v2457_v9, %v6922_v60 }
 0x44c   : > { %v6934_v18 = vpop.f32.mrb[53].mxu1  ;;  %v6936_v19 = vpop.f32.mrb[53].mxu0 }
 0x44d   : > { %v2461_v38 = vmax.f32 %v6931_v12, %v6934_v18  ;;  %v6940_v55 = vpop.f32.mrb[54].mxu0  ;;  %2459 = vmax.xlane.f32.xlu1 %v2458_v15  ;;  %v6942_v10 = vpop.f32.mrb[54].mxu1 }
 0x44e   : > { %v6944_v25 = vpop.f32.mrb[55].mxu1  ;;  %v6946_v28 = vpop.f32.mrb[55].mxu0 }
 0x44f   : > { %7895 = vst [vmem:[#allocation22_spill] sm:$0xff] %v6946_v28  ;;  %v2466_v33 = vmax.f32 %v6942_v10, %v6944_v25  ;;  %v2462_v34 = vmax.f32 %v2461_v38, %v6929_v11 }
 0x451   : > { %v2463_v35 = vmax.f32 %v2462_v34, %v6936_v19  ;;  %v2467_v36 = vmax.f32 %v2466_v33, %v6940_v55 }
 0x453   : > { %v6953_v42 = vpop.f32.mrb[56].mxu0  ;;  %2464 = vmax.xlane.f32.xlu0 %v2463_v35  ;;  %v6955_v37 = vpop.f32.mrb[56].mxu1  ;;  %v2468_v50 = vmax.f32 %v2467_v36, %v6946_v28 }
 0x454   : > { %7896 = vst [vmem:[#allocation23_spill] sm:$0xff] %v6953_v42  ;;  %7897 = vst [vmem:[#allocation24_spill] sm:$0xff] %v6955_v37  ;;  %v6958_v51 = vpop.f32.mrb[57].mxu1  ;;  %v6960_v52 = vpop.f32.mrb[57].mxu0 }
 0x455   : > { %7898 = vst [vmem:[#allocation25_spill] sm:$0xff] %v6958_v51  ;;  %7899 = vst [vmem:[#allocation26_spill] sm:$0xff] %v6960_v52  ;;  %v2471_v58 = vmax.f32 %v6955_v37, %v6958_v51  ;;  %v6964_v63 = vpop.f32.mrb[58].mxu0  ;;  %2469 = vmax.xlane.f32.xlu1 %v2468_v50  ;;  %v6966_v2 = vpop.f32.mrb[58].mxu1 }
 0x456   : > { %7900 = vst [vmem:[#allocation27_spill] sm:$0xff] %v6964_v63  ;;  %7901 = vst [vmem:[#allocation28_spill] sm:$0xff] %v6966_v2  ;;  %v6968_v8 = vpop.f32.mrb[59].mxu1  ;;  %v6970_v9 = vpop.f32.mrb[59].mxu0 }
 0x457   : > { %7902 = vst [vmem:[#allocation29_spill] sm:$0xff] %v6968_v8  ;;  %7903 = vst [vmem:[#allocation30_spill] sm:$0xff] %v6970_v9  ;;  %v2476_v15 = vmax.f32 %v6966_v2, %v6968_v8  ;;  %v2472_v38 = vmax.f32 %v2471_v58, %v6953_v42 }
 0x459   : > { %v2473_v33 = vmax.f32 %v2472_v38, %v6960_v52  ;;  %v2477_v34 = vmax.f32 %v2476_v15, %v6964_v63 }
 0x45b   : > { %v6977_v35 = vpop.f32.mrb[60].mxu0  ;;  %2474 = vmax.xlane.f32.xlu0 %v2473_v33  ;;  %v6979_v36 = vpop.f32.mrb[60].mxu1  ;;  %v2478_v50 = vmax.f32 %v2477_v34, %v6970_v9 }
 0x45c   : > { %7904 = vst [vmem:[#allocation31_spill] sm:$0xff] %v6977_v35  ;;  %7905 = vst [vmem:[#allocation32_spill] sm:$0xff] %v6979_v36  ;;  %v6982_v51 = vpop.f32.mrb[61].mxu1  ;;  %v6984_v37 = vpop.f32.mrb[61].mxu0 }
 0x45d   : > { %7906 = vst [vmem:[#allocation33_spill] sm:$0xff] %v6982_v51  ;;  %7907 = vst [vmem:[#allocation34_spill] sm:$0xff] %v6984_v37  ;;  %v2481_v8 = vmax.f32 %v6979_v36, %v6982_v51  ;;  %v6988_v2 = vpop.f32.mrb[62].mxu0  ;;  %2479 = vmax.xlane.f32.xlu1 %v2478_v50  ;;  %v6990_v58 = vpop.f32.mrb[62].mxu1 }
 0x45e   : > { %7908 = vst [vmem:[#allocation35_spill] sm:$0xff] %v6988_v2  ;;  %7909 = vst [vmem:[#allocation36_spill] sm:$0xff] %v6990_v58  ;;  %v6992_v15 = vpop.f32.mrb[63].mxu1  ;;  %v6994_v38 = vpop.f32.mrb[63].mxu0 }
 0x45f   : > { %7910 = vst [vmem:[#allocation37_spill] sm:$0xff] %v6992_v15  ;;  %7911 = vst [vmem:[#allocation38_spill] sm:$0xff] %v6994_v38  ;;  %v2486_v33 = vmax.f32 %v6990_v58, %v6992_v15  ;;  %v2482_v34 = vmax.f32 %v2481_v8, %v6977_v35 }
 0x461   : > { %v2483_v9 = vmax.f32 %v2482_v34, %v6984_v37  ;;  %v2487_v63 = vmax.f32 %v2486_v33, %v6988_v2 }
 0x463   : > { %v7001_v52 = vpop.f32.mrb[64].mxu0  ;;  %2484 = vmax.xlane.f32.xlu0 %v2483_v9  ;;  %v7003_v51 = vpop.f32.mrb[64].mxu1  ;;  %v2488_v50 = vmax.f32 %v2487_v63, %v6994_v38 }
 0x464   : > { %7912 = vst [vmem:[#allocation39_spill] sm:$0xff] %v7001_v52  ;;  %7913 = vst [vmem:[#allocation40_spill] sm:$0xff] %v7003_v51  ;;  %v7006_v36 = vpop.f32.mrb[65].mxu1  ;;  %v7008_v42 = vpop.f32.mrb[65].mxu0 }
 0x465   : > { %7914 = vst [vmem:[#allocation41_spill] sm:$0xff] %v7006_v36  ;;  %7915 = vst [vmem:[#allocation42_spill] sm:$0xff] %v7008_v42  ;;  %v2491_v15 = vmax.f32 %v7003_v51, %v7006_v36  ;;  %v7012_v58 = vpop.f32.mrb[66].mxu0  ;;  %2489 = vmax.xlane.f32.xlu1 %v2488_v50  ;;  %v7014_v8 = vpop.f32.mrb[66].mxu1 }
 0x466   : > { %7916 = vst [vmem:[#allocation43_spill] sm:$0xff] %v7012_v58  ;;  %7917 = vst [vmem:[#allocation44_spill] sm:$0xff] %v7014_v8  ;;  %v7016_v33 = vpop.f32.mrb[67].mxu1  ;;  %v7018_v34 = vpop.f32.mrb[67].mxu0 }
 0x467   : > { %7918 = vst [vmem:[#allocation45_spill] sm:$0xff] %v7016_v33  ;;  %7919 = vst [vmem:[#allocation46_spill] sm:$0xff] %v7018_v34  ;;  %v2496_v9 = vmax.f32 %v7014_v8, %v7016_v33  ;;  %v2492_v63 = vmax.f32 %v2491_v15, %v7001_v52 }
 0x469   : > { %v2493_v38 = vmax.f32 %v2492_v63, %v7008_v42  ;;  %v2497_v2 = vmax.f32 %v2496_v9, %v7012_v58 }
 0x46b   : > { %v7025_v37 = vpop.f32.mrb[68].mxu0  ;;  %2494 = vmax.xlane.f32.xlu0 %v2493_v38  ;;  %v7027_v36 = vpop.f32.mrb[68].mxu1  ;;  %v2498_v50 = vmax.f32 %v2497_v2, %v7018_v34 }
 0x46c   : > { %7920 = vst [vmem:[#allocation47_spill] sm:$0xff] %v7025_v37  ;;  %7921 = vst [vmem:[#allocation48_spill] sm:$0xff] %v7027_v36  ;;  %v7030_v51 = vpop.f32.mrb[69].mxu1  ;;  %v7032_v35 = vpop.f32.mrb[69].mxu0 }
 0x46d   : > { %7922 = vst [vmem:[#allocation49_spill] sm:$0xff] %v7030_v51  ;;  %7923 = vst [vmem:[#allocation50_spill] sm:$0xff] %v7032_v35  ;;  %v2501_v33 = vmax.f32 %v7027_v36, %v7030_v51  ;;  %v7036_v8 = vpop.f32.mrb[70].mxu0  ;;  %2499 = vmax.xlane.f32.xlu1 %v2498_v50  ;;  %v7038_v15 = vpop.f32.mrb[70].mxu1 }
 0x46e   : > { %7924 = vst [vmem:[#allocation51_spill] sm:$0xff] %v7036_v8  ;;  %7925 = vst [vmem:[#allocation52_spill] sm:$0xff] %v7038_v15  ;;  %v7040_v9 = vpop.f32.mrb[71].mxu1  ;;  %v7042_v63 = vpop.f32.mrb[71].mxu0 }
 0x46f   : > { %7926 = vst [vmem:[#allocation53_spill] sm:$0xff] %v7040_v9  ;;  %7927 = vst [vmem:[#allocation54_spill] sm:$0xff] %v7042_v63  ;;  %v2506_v38 = vmax.f32 %v7038_v15, %v7040_v9  ;;  %v2502_v2 = vmax.f32 %v2501_v33, %v7025_v37 }
 0x471   : > { %v2503_v34 = vmax.f32 %v2502_v2, %v7032_v35  ;;  %v2507_v58 = vmax.f32 %v2506_v38, %v7036_v8 }
 0x473   : > { %v7049_v42 = vpop.f32.mrb[72].mxu0  ;;  %2504 = vmax.xlane.f32.xlu0 %v2503_v34  ;;  %v7051_v51 = vpop.f32.mrb[72].mxu1  ;;  %v2508_v50 = vmax.f32 %v2507_v58, %v7042_v63 }
 0x474   : > { %7928 = vst [vmem:[#allocation55_spill] sm:$0xff] %v7049_v42  ;;  %7929 = vst [vmem:[#allocation56_spill] sm:$0xff] %v7051_v51  ;;  %v7054_v36 = vpop.f32.mrb[73].mxu1  ;;  %v7056_v52 = vpop.f32.mrb[73].mxu0 }
 0x475   : > { %7930 = vst [vmem:[#allocation57_spill] sm:$0xff] %v7054_v36  ;;  %7931 = vst [vmem:[#allocation58_spill] sm:$0xff] %v7056_v52  ;;  %v2511_v9 = vmax.f32 %v7051_v51, %v7054_v36  ;;  %v7060_v15 = vpop.f32.mrb[74].mxu0  ;;  %2509 = vmax.xlane.f32.xlu1 %v2508_v50  ;;  %v7062_v33 = vpop.f32.mrb[74].mxu1 }
 0x476   : > { %7932 = vst [vmem:[#allocation59_spill] sm:$0xff] %v7060_v15  ;;  %7933 = vst [vmem:[#allocation60_spill] sm:$0xff] %v7062_v33  ;;  %v7064_v38 = vpop.f32.mrb[75].mxu1  ;;  %v7066_v2 = vpop.f32.mrb[75].mxu0 }
 0x477   : > { %7934 = vst [vmem:[#allocation61_spill] sm:$0xff] %v7064_v38  ;;  %7935 = vst [vmem:[#allocation62_spill] sm:$0xff] %v7066_v2  ;;  %v2516_v34 = vmax.f32 %v7062_v33, %v7064_v38  ;;  %v2512_v58 = vmax.f32 %v2511_v9, %v7049_v42 }
 0x479   : > { %v2513_v63 = vmax.f32 %v2512_v58, %v7056_v52  ;;  %v2517_v8 = vmax.f32 %v2516_v34, %v7060_v15 }
 0x47b   : > { %v7073_v35 = vpop.f32.mrb[76].mxu0  ;;  %2514 = vmax.xlane.f32.xlu0 %v2513_v63  ;;  %v7075_v36 = vpop.f32.mrb[76].mxu1  ;;  %v2518_v50 = vmax.f32 %v2517_v8, %v7066_v2 }
 0x47c   : > { %7936 = vst [vmem:[#allocation63_spill] sm:$0xff] %v7073_v35  ;;  %7937 = vst [vmem:[#allocation64_spill] sm:$0xff] %v7075_v36  ;;  %v7078_v51 = vpop.f32.mrb[77].mxu1  ;;  %v7080_v37 = vpop.f32.mrb[77].mxu0 }
 0x47d   : > { %7938 = vst [vmem:[#allocation65_spill] sm:$0xff] %v7078_v51  ;;  %7939 = vst [vmem:[#allocation66_spill] sm:$0xff] %v7080_v37  ;;  %v2521_v38 = vmax.f32 %v7075_v36, %v7078_v51  ;;  %v7084_v33 = vpop.f32.mrb[78].mxu0  ;;  %2519 = vmax.xlane.f32.xlu1 %v2518_v50  ;;  %v7086_v9 = vpop.f32.mrb[78].mxu1 }
 0x47e   : > { %7940 = vst [vmem:[#allocation67_spill] sm:$0xff] %v7084_v33  ;;  %7941 = vst [vmem:[#allocation68_spill] sm:$0xff] %v7086_v9  ;;  %v7088_v34 = vpop.f32.mrb[79].mxu1  ;;  %v7090_v58 = vpop.f32.mrb[79].mxu0 }
 0x47f   : > { %7942 = vst [vmem:[#allocation69_spill] sm:$0xff] %v7088_v34  ;;  %7943 = vst [vmem:[#allocation70_spill] sm:$0xff] %v7090_v58  ;;  %v2526_v63 = vmax.f32 %v7086_v9, %v7088_v34  ;;  %v2522_v8 = vmax.f32 %v2521_v38, %v7073_v35 }
 0x481   : > { %v2523_v2 = vmax.f32 %v2522_v8, %v7080_v37  ;;  %v2527_v15 = vmax.f32 %v2526_v63, %v7084_v33 }
 0x483   : > { %v7097_v52 = vpop.f32.mrb[80].mxu0  ;;  %2524 = vmax.xlane.f32.xlu0 %v2523_v2  ;;  %v7099_v51 = vpop.f32.mrb[80].mxu1  ;;  %v2528_v50 = vmax.f32 %v2527_v15, %v7090_v58 }
 0x484   : > { %7944 = vst [vmem:[#allocation71_spill] sm:$0xff] %v7097_v52  ;;  %7945 = vst [vmem:[#allocation72_spill] sm:$0xff] %v7099_v51  ;;  %v7102_v36 = vpop.f32.mrb[81].mxu1  ;;  %v7104_v42 = vpop.f32.mrb[81].mxu0 }
 0x485   : > { %7946 = vst [vmem:[#allocation73_spill] sm:$0xff] %v7102_v36  ;;  %7947 = vst [vmem:[#allocation74_spill] sm:$0xff] %v7104_v42  ;;  %v2531_v34 = vmax.f32 %v7099_v51, %v7102_v36  ;;  %v7108_v9 = vpop.f32.mrb[82].mxu0  ;;  %2529 = vmax.xlane.f32.xlu1 %v2528_v50  ;;  %v7110_v38 = vpop.f32.mrb[82].mxu1 }
 0x486   : > { %7948 = vst [vmem:[#allocation75_spill] sm:$0xff] %v7108_v9  ;;  %7949 = vst [vmem:[#allocation76_spill] sm:$0xff] %v7110_v38  ;;  %v7112_v63 = vpop.f32.mrb[83].mxu1  ;;  %v7114_v8 = vpop.f32.mrb[83].mxu0 }
 0x487   : > { %7950 = vst [vmem:[#allocation77_spill] sm:$0xff] %v7112_v63  ;;  %7951 = vst [vmem:[#allocation78_spill] sm:$0xff] %v7114_v8  ;;  %v2536_v2 = vmax.f32 %v7110_v38, %v7112_v63  ;;  %v2532_v15 = vmax.f32 %v2531_v34, %v7097_v52 }
 0x489   : > { %v2533_v58 = vmax.f32 %v2532_v15, %v7104_v42  ;;  %v2537_v33 = vmax.f32 %v2536_v2, %v7108_v9 }
 0x48b   : > { %v7121_v37 = vpop.f32.mrb[84].mxu0  ;;  %2534 = vmax.xlane.f32.xlu0 %v2533_v58  ;;  %v7123_v36 = vpop.f32.mrb[84].mxu1  ;;  %v2538_v50 = vmax.f32 %v2537_v33, %v7114_v8 }
 0x48c   : > { %7952 = vst [vmem:[#allocation79_spill] sm:$0xff] %v7121_v37  ;;  %7953 = vst [vmem:[#allocation80_spill] sm:$0xff] %v7123_v36  ;;  %v7126_v51 = vpop.f32.mrb[85].mxu1  ;;  %v7128_v35 = vpop.f32.mrb[85].mxu0 }
 0x48d   : > { %7954 = vst [vmem:[#allocation81_spill] sm:$0xff] %v7126_v51  ;;  %7955 = vst [vmem:[#allocation82_spill] sm:$0xff] %v7128_v35  ;;  %v2541_v63 = vmax.f32 %v7123_v36, %v7126_v51  ;;  %v7132_v38 = vpop.f32.mrb[86].mxu0  ;;  %2539 = vmax.xlane.f32.xlu1 %v2538_v50  ;;  %v7134_v34 = vpop.f32.mrb[86].mxu1 }
 0x48e   : > { %7956 = vst [vmem:[#allocation83_spill] sm:$0xff] %v7132_v38  ;;  %7957 = vst [vmem:[#allocation84_spill] sm:$0xff] %v7134_v34  ;;  %v7136_v2 = vpop.f32.mrb[87].mxu1  ;;  %v7138_v15 = vpop.f32.mrb[87].mxu0 }
 0x48f   : > { %7958 = vst [vmem:[#allocation85_spill] sm:$0xff] %v7136_v2  ;;  %7959 = vst [vmem:[#allocation86_spill] sm:$0xff] %v7138_v15  ;;  %v2546_v58 = vmax.f32 %v7134_v34, %v7136_v2  ;;  %v2542_v33 = vmax.f32 %v2541_v63, %v7121_v37 }
 0x491   : > { %v2543_v8 = vmax.f32 %v2542_v33, %v7128_v35  ;;  %v2547_v9 = vmax.f32 %v2546_v58, %v7132_v38 }
 0x493   : > { %v7145_v42 = vpop.f32.mrb[88].mxu0  ;;  %2544 = vmax.xlane.f32.xlu0 %v2543_v8  ;;  %v7147_v51 = vpop.f32.mrb[88].mxu1  ;;  %v2548_v50 = vmax.f32 %v2547_v9, %v7138_v15 }
 0x494   : > { %7960 = vst [vmem:[#allocation87_spill] sm:$0xff] %v7145_v42  ;;  %7961 = vst [vmem:[#allocation88_spill] sm:$0xff] %v7147_v51  ;;  %v7150_v36 = vpop.f32.mrb[89].mxu1  ;;  %v7152_v52 = vpop.f32.mrb[89].mxu0 }
 0x495   : > { %7962 = vst [vmem:[#allocation89_spill] sm:$0xff] %v7150_v36  ;;  %7963 = vst [vmem:[#allocation90_spill] sm:$0xff] %v7152_v52  ;;  %v2551_v2 = vmax.f32 %v7147_v51, %v7150_v36  ;;  %v7156_v34 = vpop.f32.mrb[90].mxu0  ;;  %2549 = vmax.xlane.f32.xlu1 %v2548_v50  ;;  %v7158_v63 = vpop.f32.mrb[90].mxu1 }
 0x496   : > { %7964 = vst [vmem:[#allocation91_spill] sm:$0xff] %v7156_v34  ;;  %7965 = vst [vmem:[#allocation92_spill] sm:$0xff] %v7158_v63  ;;  %v7160_v58 = vpop.f32.mrb[91].mxu1  ;;  %v7162_v33 = vpop.f32.mrb[91].mxu0 }
 0x497   : > { %7966 = vst [vmem:[#allocation93_spill] sm:$0xff] %v7160_v58  ;;  %7967 = vst [vmem:[#allocation94_spill] sm:$0xff] %v7162_v33  ;;  %v2556_v8 = vmax.f32 %v7158_v63, %v7160_v58  ;;  %v2552_v9 = vmax.f32 %v2551_v2, %v7145_v42 }
 0x499   : > { %v2553_v15 = vmax.f32 %v2552_v9, %v7152_v52  ;;  %v2557_v38 = vmax.f32 %v2556_v8, %v7156_v34 }
 0x49b   : > { %v7169_v35 = vpop.f32.mrb[92].mxu0  ;;  %2554 = vmax.xlane.f32.xlu0 %v2553_v15  ;;  %v7171_v36 = vpop.f32.mrb[92].mxu1  ;;  %v2558_v50 = vmax.f32 %v2557_v38, %v7162_v33 }
 0x49c   : > { %7968 = vst [vmem:[#allocation95_spill] sm:$0xff] %v7169_v35  ;;  %7969 = vst [vmem:[#allocation96_spill] sm:$0xff] %v7171_v36  ;;  %v7174_v51 = vpop.f32.mrb[93].mxu1  ;;  %v7176_v37 = vpop.f32.mrb[93].mxu0 }
 0x49d   : > { %7970 = vst [vmem:[#allocation97_spill] sm:$0xff] %v7174_v51  ;;  %v2561_v58 = vmax.f32 %v7171_v36, %v7174_v51  ;;  %v7180_v63 = vpop.f32.mrb[94].mxu0  ;;  %2559 = vmax.xlane.f32.xlu1 %v2558_v50  ;;  %v7182_v2 = vpop.f32.mrb[94].mxu1 }
 0x49e   : > { %7971 = vst [vmem:[#allocation98_spill] sm:$0xff] %v7182_v2  ;;  %v7184_v8 = vpop.f32.mrb[95].mxu1  ;;  %v7186_v9 = vpop.f32.mrb[95].mxu0 }
 0x49f   : > { %7972 = vst [vmem:[#allocation99_spill] sm:$0xff] %v7184_v8  ;;  %v2566_v15 = vmax.f32 %v7182_v2, %v7184_v8  ;;  %v2562_v38 = vmax.f32 %v2561_v58, %v7169_v35 }
 0x4a1   : > { %v2563_v33 = vmax.f32 %v2562_v38, %v7176_v37  ;;  %v2567_v34 = vmax.f32 %v2566_v15, %v7180_v63 }
 0x4a3   : > { %2564 = vmax.xlane.f32.xlu0 %v2563_v33  ;;  %v2568_v51 = vmax.f32 %v2567_v34, %v7186_v9 }
 0x4a5   : > { %2569 = vmax.xlane.f32.xlu1 %v2568_v51 }
 0x4b8   : > { %v2415_v50 = vpop.xlane.xlu0 %2414 }
 0x4b9   : > { %v2571_v36 = vsub.f32 %v6802_v45, %v2415_v50  ;;  %v2572_v52 = vsub.f32 %v6806_v47, %v2415_v50  ;;  %v2573_v42 = vsub.f32 %v6804_v46, %v2415_v50  ;;  %v2574_v28 = vsub.f32 %v6808_v48, %v2415_v50 }
 0x4bb   : > { %v2699_v8 = vmul.f32 1.442695, %v2571_v36  ;;  %v2701_v2 = vmul.f32 1.442695, %v2572_v52  ;;  %v2703_v58 = vmul.f32 1.442695, %v2573_v42 }
 0x4bc   : > { %v2705_v35 = vmul.f32 1.442695, %v2574_v28  ;;  %v2420_v38 = vpop.xlane.xlu0 %2419 }
 0x4bd   : > { %5350 = vpow2.f32 %v2699_v8  ;;  %v2575_v33 = vsub.f32 %v6812_v40, %v2420_v38  ;;  %v2576_v34 = vsub.f32 %v6819_v53, %v2420_v38  ;;  %v2577_v51 = vsub.f32 %v6814_v49, %v2420_v38 }
 0x4be   : > { %5352 = vpow2.f32 %v2701_v2  ;;  %v2578_v45 = vsub.f32 %v6821_v54, %v2420_v38 }
 0x4bf   : > { %5354 = vpow2.f32 %v2703_v58  ;;  %v2707_v47 = vmul.f32 1.442695, %v2575_v33  ;;  %v2709_v46 = vmul.f32 1.442695, %v2576_v34  ;;  %v2711_v15 = vmul.f32 1.442695, %v2577_v51 }
 0x4c0   : > { %5356 = vpow2.f32 %v2705_v35  ;;  %v2713_v48 = vmul.f32 1.442695, %v2578_v45  ;;  %v2425_v52 = vpop.xlane.xlu1 %2424 }
 0x4c1   : > { %5358 = vpow2.f32 %v2707_v47  ;;  %v2579_v28 = vsub.f32 %v6831_v62, %v2425_v52  ;;  %v2580_v42 = vsub.f32 %v6834_v0, %v2425_v52  ;;  %v2581_v40 = vsub.f32 %v6829_v61, %v2425_v52 }
 0x4c2   : > { %5360 = vpow2.f32 %v2709_v46  ;;  %v2582_v49 = vsub.f32 %v6836_v1, %v2425_v52 }
 0x4c3   : > { %5362 = vpow2.f32 %v2711_v15  ;;  %v2715_v53 = vmul.f32 1.442695, %v2579_v28  ;;  %v2717_v54 = vmul.f32 1.442695, %v2580_v42  ;;  %v2719_v36 = vmul.f32 1.442695, %v2581_v40 }
 0x4c4   : > { %5364 = vpow2.f32 %v2713_v48  ;;  %v2721_v2 = vmul.f32 1.442695, %v2582_v49  ;;  %v2430_v8 = vpop.xlane.xlu1 %2429 }
 0x4c5   : > { %5366 = vpow2.f32 %v2715_v53  ;;  %v2583_v35 = vsub.f32 %v6840_v3, %v2430_v8  ;;  %v2584_v50 = vsub.f32 %v6844_v6, %v2430_v8  ;;  %v2585_v62 = vsub.f32 %v6842_v4, %v2430_v8 }
 0x4c6   : > { %5368 = vpow2.f32 %v2717_v54  ;;  %v2586_v61 = vsub.f32 %v6846_v7, %v2430_v8 }
 0x4c7   : > { %v5351_v0 = vpop.eup %5350  ;;  %5370 = vpow2.f32 %v2719_v36  ;;  %v2723_v1 = vmul.f32 1.442695, %v2583_v35  ;;  %v2725_v58 = vmul.f32 1.442695, %v2584_v50  ;;  %v2727_v38 = vmul.f32 1.442695, %v2585_v62 }
 0x4c8   : > { %v5353_v33 = vpop.eup %5352  ;;  %5372 = vpow2.f32 %v2721_v2  ;;  %v2729_v34 = vmul.f32 1.442695, %v2586_v61  ;;  %v2435_v51 = vpop.xlane.xlu0 %2434 }
 0x4c9   : > { %v5355_v45 = vpop.eup %5354  ;;  %5374 = vpow2.f32 %v2723_v1  ;;  %v2587_v3 = vsub.f32 %v6855_v14, %v2435_v51  ;;  %v2588_v6 = vsub.f32 %v6858_v16, %v2435_v51  ;;  %v2589_v4 = vsub.f32 %v6853_v13, %v2435_v51 }
 0x4ca   : > { %v5357_v47 = vpop.eup %5356  ;;  %5376 = vpow2.f32 %v2725_v58  ;;  %v2590_v7 = vsub.f32 %v6860_v17, %v2435_v51  ;;  %v2440_v46 = vpop.xlane.xlu1 %2439  ;;  %v2955_v15 = vadd.f32 %v5353_v33, %v5351_v0 }
 0x4cb   : > { %v5359_v48 = vpop.eup %5358  ;;  %5378 = vpow2.f32 %v2727_v38  ;;  %v2731_v52 = vmul.f32 1.442695, %v2587_v3  ;;  %v2733_v28 = vmul.f32 1.442695, %v2588_v6  ;;  %v2735_v42 = vmul.f32 1.442695, %v2589_v4 }
 0x4cc   : > { %v5361_v40 = vpop.eup %5360  ;;  %5380 = vpow2.f32 %v2729_v34  ;;  %v2737_v49 = vmul.f32 1.442695, %v2590_v7  ;;  %v2591_v14 = vsub.f32 %v6864_v20, %v2440_v46  ;;  %v2592_v16 = vsub.f32 %v6868_v22, %v2440_v46 }
 0x4cd   : > { %v5363_v53 = vpop.eup %5362  ;;  %5382 = vpow2.f32 %v2731_v52  ;;  %v2593_v13 = vsub.f32 %v6866_v21, %v2440_v46  ;;  %v2594_v17 = vsub.f32 %v6870_v5, %v2440_v46  ;;  %v3148_v54 = vpack.c.bf16 %v5361_v40, %v5353_v33 }
 0x4ce   : > { %v5365_v36 = vpop.eup %5364  ;;  %5384 = vpow2.f32 %v2733_v28  ;;  %v2739_v2 = vmul.f32 1.442695, %v2591_v14  ;;  %v2741_v8 = vmul.f32 1.442695, %v2592_v16  ;;  %v2956_v35 = vadd.f32 %v5355_v45, %v2955_v15 }
 0x4cf   : > { %v7218_v50 = vpop.eup %5366  ;;  %5386 = vpow2.f32 %v2735_v42  ;;  %v2743_v62 = vmul.f32 1.442695, %v2593_v13  ;;  %v2745_v61 = vmul.f32 1.442695, %v2594_v17  ;;  %3243 = vmatprep.mubr.bf16.mxu1 %v3148_v54  ;;  %v3150_v20 = vpack.c.bf16 %v5365_v36, %v5357_v47 }
 0x4d0   : > { %v5369_v22 = vpop.eup %5368  ;;  %5388 = vpow2.f32 %v2737_v49  ;;  %v2957_v1 = vadd.f32 %v5357_v47, %v2956_v35  ;;  %v3147_v58 = vpack.c.bf16 %v5359_v48, %v5351_v0  ;;  %v3149_v21 = vpack.c.bf16 %v5363_v53, %v5355_v45  ;;  %v2445_v38 = vpop.xlane.xlu0 %2444 }
 0x4d1   : > { %v7220_v5 = vpop.eup %5370  ;;  %5390 = vpow2.f32 %v2739_v2  ;;  %3404 = vmatprep.mubr.bf16.mxu0 %v3150_v20  ;;  %v2595_v33 = vsub.f32 %v6879_v24, %v2445_v38  ;;  %v2596_v34 = vsub.f32 %v6882_v26, %v2445_v38  ;;  %v2597_v51 = vsub.f32 %v6877_v23, %v2445_v38 }
 0x4d2   : > { %v5373_v3 = vpop.eup %5372  ;;  %5392 = vpow2.f32 %v2741_v8  ;;  %2958 = vadd.xlane.f32.xlu0 %v2957_v1  ;;  %3244 = vmatmul.mubr.bf16.vlgmr.msra.gmra.mrb[96].mxu1 %v3147_v58  ;;  %v2598_v6 = vsub.f32 %v6884_v27, %v2445_v38  ;;  %v2450_v4 = vpop.xlane.xlu1 %2449  ;;  %v2960_v0 = vadd.f32 %v5361_v40, %v5359_v48  ;;  %v2965_v45 = vadd.f32 %v5369_v22, %v7218_v50 }
 0x4d3   : > { %v7227_v47 = vpop.eup %5374  ;;  %5394 = vpow2.f32 %v2743_v62  ;;  %3405 = vmatmul.mubr.bf16.vlgmr.msra.gmra.mrb[96].mxu0 %v3149_v21  ;;  %v2747_v7 = vmul.f32 1.442695, %v2595_v33  ;;  %v2749_v24 = vmul.f32 1.442695, %v2596_v34  ;;  %v2751_v46 = vmul.f32 1.442695, %v2597_v51 }
 0x4d4   : > { %v5377_v26 = vpop.eup %5376  ;;  %5396 = vpow2.f32 %v2745_v61  ;;  %v2753_v23 = vmul.f32 1.442695, %v2598_v6  ;;  %v2599_v15 = vsub.f32 %v6890_v30, %v2450_v4  ;;  %v2600_v52 = vsub.f32 %v6892_v31, %v2450_v4 }
 0x4d5   : > { %v7231_v28 = vpop.eup %5378  ;;  %5398 = vpow2.f32 %v2747_v7  ;;  %v2601_v27 = vsub.f32 %v6888_v29, %v2450_v4  ;;  %v2602_v48 = vsub.f32 %v6894_v32, %v2450_v4  ;;  %v2961_v42 = vadd.f32 %v5363_v53, %v2960_v0 }
 0x4d6   : > { %v7235_v40 = vpop.eup %5380  ;;  %5400 = vpow2.f32 %v2749_v24  ;;  %v2755_v49 = vmul.f32 1.442695, %v2599_v15  ;;  %v2757_v14 = vmul.f32 1.442695, %v2600_v52  ;;  %v3152_v16 = vpack.c.bf16 %v5377_v26, %v5369_v22 }
 0x4d7   : > { %v7237_v13 = vpop.eup %5382  ;;  %5402 = vpow2.f32 %v2751_v46  ;;  %v2759_v30 = vmul.f32 1.442695, %v2601_v27  ;;  %v2761_v17 = vmul.f32 1.442695, %v2602_v48  ;;  %v2962_v31 = vadd.f32 %v5365_v36, %v2961_v42 }
 0x4d8   : > { %v5385_v54 = vpop.eup %5384  ;;  %5404 = vpow2.f32 %v2753_v23  ;;  %3251 = vmatprep.mubr.bf16.mxu1 %v3152_v16  ;;  %v3154_v29 = vpack.c.bf16 %v7235_v40, %v5373_v3  ;;  %v2966_v32 = vadd.f32 %v7220_v5, %v2965_v45  ;;  %v3151_v53 = vpack.c.bf16 %v7227_v47, %v7218_v50  ;;  %v2455_v2 = vpop.xlane.xlu0 %2454 }
 0x4d9   : > { %v7243_v8 = vpop.eup %5386  ;;  %5406 = vpow2.f32 %v2755_v49  ;;  %2963 = vadd.xlane.f32.xlu1 %v2962_v31  ;;  %v3153_v35 = vpack.c.bf16 %v7231_v28, %v7220_v5  ;;  %v2603_v36 = vsub.f32 %v6903_v41, %v2455_v2  ;;  %v2604_v62 = vsub.f32 %v6906_v43, %v2455_v2 }
 0x4da   : > { %v7249_v61 = vpop.eup %5388  ;;  %5408 = vpow2.f32 %v2757_v14  ;;  %3412 = vmatprep.mubr.bf16.mxu0 %v3154_v29  ;;  %v2967_v20 = vadd.f32 %v5373_v3, %v2966_v32  ;;  %3252 = vmatmul.mubr.bf16.gmra.mrb[100].mxu1 %v3151_v53  ;;  %v2605_v50 = vsub.f32 %v6901_v39, %v2455_v2  ;;  %v2606_v22 = vsub.f32 %v6908_v44, %v2455_v2  ;;  %v2460_v1 = vpop.xlane.xlu1 %2459 }
 0x4db   : > { %v5391_v58 = vpop.eup %5390  ;;  %5410 = vpow2.f32 %v2759_v30  ;;  %3413 = vmatmul.mubr.bf16.gmra.mrb[100].mxu0 %v3153_v35  ;;  %v2763_v21 = vmul.f32 1.442695, %v2603_v36  ;;  %v2765_v38 = vmul.f32 1.442695, %v2604_v62  ;;  %v2607_v41 = vsub.f32 %v6917_v57, %v2460_v1 }
 0x4dc   : > { %v5393_v5 = vpop.eup %5392  ;;  %5412 = vpow2.f32 %v2761_v17  ;;  %2968 = vadd.xlane.f32.xlu0 %v2967_v20  ;;  %v2767_v43 = vmul.f32 1.442695, %v2605_v50  ;;  %v2769_v33 = vmul.f32 1.442695, %v2606_v22  ;;  %v2608_v34 = vsub.f32 %v6920_v59, %v2460_v1 }
 0x4dd   : > { %v5395_v51 = vpop.eup %5394  ;;  %5414 = vpow2.f32 %v2763_v21  ;;  %v2609_v39 = vsub.f32 %v6915_v56, %v2460_v1  ;;  %v2610_v44 = vsub.f32 %v6922_v60, %v2460_v1  ;;  %v2771_v3 = vmul.f32 1.442695, %v2607_v41 }
 0x4de   : > { %v5397_v6 = vpop.eup %5396  ;;  %5416 = vpow2.f32 %v2765_v38  ;;  %v2773_v4 = vmul.f32 1.442695, %v2608_v34  ;;  %v2970_v0 = vadd.f32 %v5377_v26, %v7227_v47  ;;  %v3156_v57 = vpack.c.bf16 %v5393_v5, %v5385_v54  ;;  %v7975_v34 = vld [vmem:[#allocation25_spill] sm:$0xff] }
 0x4df   : > { %v7258_v45 = vpop.eup %5398  ;;  %5418 = vpow2.f32 %v2767_v43  ;;  %v2775_v7 = vmul.f32 1.442695, %v2609_v39  ;;  %v2777_v24 = vmul.f32 1.442695, %v2610_v44  ;;  %v3158_v59 = vpack.c.bf16 %v5397_v6, %v7249_v61  ;;  %v7974_v43 = vld [vmem:[#allocation24_spill] sm:$0xff] }
 0x4e0   : > { %v5401_v46 = vpop.eup %5400  ;;  %5420 = vpow2.f32 %v2769_v33  ;;  %v2971_v56 = vadd.f32 %v7231_v28, %v2970_v0  ;;  %3259 = vmatprep.mubr.bf16.mxu1 %v3156_v57  ;;  %v2975_v60 = vadd.f32 %v5385_v54, %v7237_v13  ;;  %v3155_v23 = vpack.c.bf16 %v5391_v58, %v7237_v13  ;;  %v2465_v15 = vpop.xlane.xlu0 %2464  ;;  %v7977_v0 = vld [vmem:[#allocation26_spill] sm:$0xff] }
 0x4e1   : > { %v7264_v52 = vpop.eup %5402  ;;  %5422 = vpow2.f32 %v2771_v3  ;;  %3420 = vmatprep.mubr.bf16.mxu0 %v3158_v59  ;;  %v3157_v47 = vpack.c.bf16 %v5395_v51, %v7243_v8  ;;  %v2611_v26 = vsub.f32 %v6931_v12, %v2465_v15  ;;  %v2612_v27 = vsub.f32 %v6934_v18, %v2465_v15 }
 0x4e2   : > { %v7269_v48 = vpop.eup %5404  ;;  %5424 = vpow2.f32 %v2773_v4  ;;  %v2972_v28 = vadd.f32 %v7235_v40, %v2971_v56  ;;  %v2976_v42 = vadd.f32 %v7243_v8, %v2975_v60  ;;  %3260 = vmatmul.mubr.bf16.gmra.mrb[104].mxu1 %v3155_v23  ;;  %v2613_v49 = vsub.f32 %v6929_v11, %v2465_v15  ;;  %v2470_v14 = vpop.xlane.xlu1 %2469  ;;  %v7973_v8 = vld [vmem:[#allocation22_spill] sm:$0xff] }
 0x4e3   : > { %v5407_v16 = vpop.eup %5406  ;;  %5426 = vpow2.f32 %v2775_v7  ;;  %3421 = vmatmul.mubr.bf16.gmra.mrb[104].mxu0 %v3157_v47  ;;  %v2614_v13 = vsub.f32 %v6936_v19, %v2465_v15  ;;  %v2779_v30 = vmul.f32 1.442695, %v2611_v26  ;;  %v2781_v12 = vmul.f32 1.442695, %v2612_v27  ;;  %v7978_v15 = vld [vmem:[#allocation28_spill] sm:$0xff]  ;;  %v7979_v27 = vld [vmem:[#allocation29_spill] sm:$0xff] }
 0x4e4   : > { %v5409_v17 = vpop.eup %5408  ;;  %5428 = vpow2.f32 %v2777_v24  ;;  %2973 = vadd.xlane.f32.xlu1 %v2972_v28  ;;  %v2977_v18 = vadd.f32 %v7249_v61, %v2976_v42  ;;  %v2783_v31 = vmul.f32 1.442695, %v2613_v49  ;;  %v2980_v40 = vadd.f32 %v5393_v5, %v5391_v58  ;;  %v7980_v42 = vld [vmem:[#allocation27_spill] sm:$0xff] }
 0x4e5   : > { %v5411_v54 = vpop.eup %5410  ;;  %5430 = vpow2.f32 %v2779_v30  ;;  %v2785_v29 = vmul.f32 1.442695, %v2614_v13  ;;  %v2615_v11 = vsub.f32 %v6942_v10, %v2470_v14  ;;  %v2616_v32 = vsub.f32 %v6944_v25, %v2470_v14  ;;  %v7981_v13 = vld [vmem:[#allocation30_spill] sm:$0xff] }
 0x4e6   : > { %v5413_v53 = vpop.eup %5412  ;;  %2978 = vadd.xlane.f32.xlu0 %v2977_v18  ;;  %5432 = vpow2.f32 %v2781_v12  ;;  %v2981_v19 = vadd.f32 %v5395_v51, %v2980_v40  ;;  %v2617_v2 = vsub.f32 %v6940_v55, %v2470_v14  ;;  %v2618_v35 = vsub.f32 %v7973_v8, %v2470_v14  ;;  %v7982_v8 = vld [vmem:[#allocation32_spill] sm:$0xff] }
 0x4e7   : > { %v7280_v36 = vpop.eup %5414  ;;  %5434 = vpow2.f32 %v2783_v31  ;;  %v2787_v62 = vmul.f32 1.442695, %v2615_v11  ;;  %v2789_v61 = vmul.f32 1.442695, %v2616_v32  ;;  %v3160_v20 = vpack.c.bf16 %v5409_v17, %v5401_v46 }
 0x4e8   : > { %v5417_v50 = vpop.eup %5416  ;;  %5436 = vpow2.f32 %v2785_v29  ;;  %v2982_v22 = vadd.f32 %v5397_v6, %v2981_v19  ;;  %v2791_v10 = vmul.f32 1.442695, %v2617_v2  ;;  %v2793_v1 = vmul.f32 1.442695, %v2618_v35  ;;  %v2475_v25 = vpop.xlane.xlu0 %2474  ;;  %v7976_v6 = vld [vmem:[#allocation23_spill] sm:$0xff] }
 0x4e9   : > { %v7282_v58 = vpop.eup %5418  ;;  %5438 = vpow2.f32 %v2787_v62  ;;  %3267 = vmatprep.mubr.bf16.mxu1 %v3160_v20  ;;  %v3162_v55 = vpack.c.bf16 %v5413_v53, %v7269_v48  ;;  %v2985_v21 = vadd.f32 %v5401_v46, %v7258_v45  ;;  %v3159_v38 = vpack.c.bf16 %v5407_v16, %v7258_v45  ;;  %v7983_v20 = vld [vmem:[#allocation33_spill] sm:$0xff] }
 0x4ea   : > { %v7287_v41 = vpop.eup %5420  ;;  %2983 = vadd.xlane.f32.xlu1 %v2982_v22  ;;  %5440 = vpow2.f32 %v2789_v61  ;;  %v3161_v5 = vpack.c.bf16 %v5411_v54, %v7264_v52  ;;  %v2619_v33 = vsub.f32 %v7974_v43, %v2475_v25  ;;  %v2620_v51 = vsub.f32 %v7975_v34, %v2475_v25  ;;  %v2480_v39 = vpop.xlane.xlu1 %2479 }
 0x4eb   : > { %v5423_v44 = vpop.eup %5422  ;;  %5442 = vpow2.f32 %v2791_v10  ;;  %3428 = vmatprep.mubr.bf16.mxu0 %v3162_v55  ;;  %v2986_v3 = vadd.f32 %v7264_v52, %v2985_v21  ;;  %3268 = vmatmul.mubr.bf16.gmra.mrb[108].mxu1 %v3159_v38  ;;  %v2621_v4 = vsub.f32 %v7976_v6, %v2475_v25  ;;  %v2622_v57 = vsub.f32 %v7977_v0, %v2475_v25  ;;  %v7984_v10 = vld [vmem:[#allocation31_spill] sm:$0xff] }
 0x4ec   : > { %v5425_v45 = vpop.eup %5424  ;;  %5444 = vpow2.f32 %v2793_v1  ;;  %3429 = vmatmul.mubr.bf16.gmra.mrb[108].mxu0 %v3161_v5  ;;  %v2795_v7 = vmul.f32 1.442695, %v2619_v33  ;;  %v2797_v24 = vmul.f32 1.442695, %v2620_v51  ;;  %v2990_v59 = vadd.f32 %v5409_v17, %v5407_v16 }
 0x4ed   : > { %v5427_v46 = vpop.eup %5426  ;;  %v2987_v56 = vadd.f32 %v7269_v48, %v2986_v3  ;;  %v2799_v60 = vmul.f32 1.442695, %v2621_v4  ;;  %v2801_v23 = vmul.f32 1.442695, %v2622_v57  ;;  %v2623_v47 = vsub.f32 %v7978_v15, %v2480_v39  ;;  %v7986_v3 = vld [vmem:[#allocation36_spill] sm:$0xff]  ;;  %v7987_v4 = vld [vmem:[#allocation37_spill] sm:$0xff] }
 0x4ee   : > { %v5429_v26 = vpop.eup %5428  ;;  %5446 = vpow2.f32 %v2795_v7  ;;  %v2991_v52 = vadd.f32 %v5411_v54, %v2990_v59  ;;  %v2624_v28 = vsub.f32 %v7979_v27, %v2480_v39  ;;  %v2625_v49 = vsub.f32 %v7980_v42, %v2480_v39  ;;  %v7988_v57 = vld [vmem:[#allocation35_spill] sm:$0xff] }
 0x4ef   : > { %v7299_v14 = vpop.eup %5430  ;;  %2988 = vadd.xlane.f32.xlu0 %v2987_v56  ;;  %5448 = vpow2.f32 %v2797_v24  ;;  %v2626_v16 = vsub.f32 %v7981_v13, %v2480_v39  ;;  %v2803_v30 = vmul.f32 1.442695, %v2623_v47  ;;  %v3164_v12 = vpack.c.bf16 %v5425_v45, %v5417_v50  ;;  %v7990_v13 = vld [vmem:[#allocation40_spill] sm:$0xff] }
 0x4f0   : > { %v7302_v48 = vpop.eup %5432  ;;  %5450 = vpow2.f32 %v2799_v60  ;;  %v2992_v17 = vadd.f32 %v5413_v53, %v2991_v52  ;;  %v2805_v18 = vmul.f32 1.442695, %v2624_v28  ;;  %v2807_v31 = vmul.f32 1.442695, %v2625_v49  ;;  %v2485_v40 = vpop.xlane.xlu0 %2484 }
 0x4f1   : > { %v7304_v54 = vpop.eup %5434  ;;  %5452 = vpow2.f32 %v2801_v23  ;;  %v2809_v29 = vmul.f32 1.442695, %v2626_v16  ;;  %3275 = vmatprep.mubr.bf16.mxu1 %v3164_v12  ;;  %v3166_v11 = vpack.c.bf16 %v5429_v26, %v7287_v41  ;;  %v2995_v32 = vadd.f32 %v5417_v50, %v7280_v36 }
 0x4f2   : > { %v7308_v19 = vpop.eup %5436  ;;  %2993 = vadd.xlane.f32.xlu1 %v2992_v17  ;;  %5454 = vpow2.f32 %v2803_v30  ;;  %v3163_v2 = vpack.c.bf16 %v5423_v44, %v7280_v36  ;;  %v3165_v53 = vpack.c.bf16 %v5427_v46, %v7282_v58  ;;  %v2627_v35 = vsub.f32 %v7982_v8, %v2485_v40  ;;  %v2490_v1 = vpop.xlane.xlu1 %2489  ;;  %v7985_v36 = vld [vmem:[#allocation34_spill] sm:$0xff]  ;;  %v7991_v30 = vld [vmem:[#allocation41_spill] sm:$0xff] }
 0x4f3   : > { %v7313_v62 = vpop.eup %5438  ;;  %5456 = vpow2.f32 %v2805_v18  ;;  %3436 = vmatprep.mubr.bf16.mxu0 %v3166_v11  ;;  %v2996_v61 = vadd.f32 %v7282_v58, %v2995_v32  ;;  %v2628_v22 = vsub.f32 %v7983_v20, %v2485_v40  ;;  %v2629_v50 = vsub.f32 %v7984_v10, %v2485_v40 }
 0x4f4   : > { %v5441_v25 = vpop.eup %5440  ;;  %5458 = vpow2.f32 %v2807_v31  ;;  %3276 = vmatmul.mubr.bf16.gmra.mrb[112].mxu1 %v3163_v2  ;;  %3437 = vmatmul.mubr.bf16.gmra.mrb[112].mxu0 %v3165_v53  ;;  %v2630_v55 = vsub.f32 %v7985_v36, %v2485_v40  ;;  %v2811_v21 = vmul.f32 1.442695, %v2627_v35  ;;  %v3000_v38 = vadd.f32 %v5425_v45, %v5423_v44  ;;  %v7989_v44 = vld [vmem:[#allocation38_spill] sm:$0xff] }
 0x4f5   : > { %v5443_v5 = vpop.eup %5442  ;;  %5460 = vpow2.f32 %v2809_v29  ;;  %v2997_v43 = vadd.f32 %v7287_v41, %v2996_v61  ;;  %v2813_v33 = vmul.f32 1.442695, %v2628_v22  ;;  %v2815_v34 = vmul.f32 1.442695, %v2629_v50  ;;  %v7993_v29 = vld [vmem:[#allocation42_spill] sm:$0xff]  ;;  %v7994_v22 = vld [vmem:[#allocation44_spill] sm:$0xff] }
 0x4f6   : > { %v7320_v58 = vpop.eup %5444  ;;  %5462 = vpow2.f32 %v2811_v21  ;;  %v2817_v51 = vmul.f32 1.442695, %v2630_v55  ;;  %v3001_v39 = vadd.f32 %v5427_v46, %v3000_v38  ;;  %v2631_v6 = vsub.f32 %v7986_v3, %v2490_v1  ;;  %v7996_v55 = vld [vmem:[#allocation43_spill] sm:$0xff] }
 0x4f7   : > { %2998 = vadd.xlane.f32.xlu0 %v2997_v43  ;;  %5464 = vpow2.f32 %v2813_v33  ;;  %v2632_v0 = vsub.f32 %v7987_v4, %v2490_v1  ;;  %v2633_v7 = vsub.f32 %v7988_v57, %v2490_v1  ;;  %v2634_v45 = vsub.f32 %v7989_v44, %v2490_v1  ;;  %v7995_v1 = vld [vmem:[#allocation45_spill] sm:$0xff]  ;;  %v7997_v43 = vld [vmem:[#allocation46_spill] sm:$0xff] }
 0x4f8   : > { %v7326_v24 = vpop.eup %5446  ;;  %5466 = vpow2.f32 %v2815_v34  ;;  %v3002_v41 = vadd.f32 %v5429_v26, %v3001_v39  ;;  %v2819_v59 = vmul.f32 1.442695, %v2631_v6  ;;  %v3168_v56 = vpack.c.bf16 %v5441_v25, %v7302_v48  ;;  %v2495_v60 = vpop.xlane.xlu0 %2494 }
 0x4f9   : > { %v5449_v23 = vpop.eup %5448  ;;  %5468 = vpow2.f32 %v2817_v51  ;;  %v2821_v46 = vmul.f32 1.442695, %v2632_v0  ;;  %v2823_v15 = vmul.f32 1.442695, %v2633_v7  ;;  %v2825_v47 = vmul.f32 1.442695, %v2634_v45 }
 0x4fa   : > { %v7329_v52 = vpop.eup %5450  ;;  %3003 = vadd.xlane.f32.xlu1 %v3002_v41  ;;  %5470 = vpow2.f32 %v2819_v59  ;;  %3283 = vmatprep.mubr.bf16.mxu1 %v3168_v56  ;;  %v3170_v27 = vpack.c.bf16 %v7320_v58, %v7308_v19  ;;  %v3005_v26 = vadd.f32 %v7302_v48, %v7299_v14  ;;  %v3167_v28 = vpack.c.bf16 %v7313_v62, %v7299_v14  ;;  %v2500_v17 = vpop.xlane.xlu1 %2499  ;;  %v7992_v48 = vld [vmem:[#allocation39_spill] sm:$0xff]  ;;  %v7999_v56 = vld [vmem:[#allocation49_spill] sm:$0xff] }
 0x4fb   : > { %v7337_v42 = vpop.eup %5452  ;;  %5472 = vpow2.f32 %v2821_v46  ;;  %v3169_v49 = vpack.c.bf16 %v5443_v5, %v7304_v54  ;;  %v2635_v16 = vsub.f32 %v7990_v13, %v2495_v60  ;;  %v2636_v12 = vsub.f32 %v7991_v30, %v2495_v60  ;;  %v8000_v46 = vld [vmem:[#allocation47_spill] sm:$0xff] }
 0x4fc   : > { %v5455_v18 = vpop.eup %5454  ;;  %5474 = vpow2.f32 %v2823_v15  ;;  %3444 = vmatprep.mubr.bf16.mxu0 %v3170_v27  ;;  %v3006_v31 = vadd.f32 %v7304_v54, %v3005_v26  ;;  %3284 = vmatmul.mubr.bf16.gmra.mrb[116].mxu1 %v3167_v28  ;;  %v2637_v40 = vsub.f32 %v7992_v48, %v2495_v60  ;;  %v2638_v14 = vsub.f32 %v7993_v29, %v2495_v60 }
 0x4fd   : > { %v5457_v11 = vpop.eup %5456  ;;  %5476 = vpow2.f32 %v2825_v47  ;;  %3445 = vmatmul.mubr.bf16.gmra.mrb[116].mxu0 %v3169_v49  ;;  %v2827_v32 = vmul.f32 1.442695, %v2635_v16  ;;  %v2829_v2 = vmul.f32 1.442695, %v2636_v12  ;;  %v3010_v53 = vadd.f32 %v5441_v25, %v7313_v62 }
 0x4fe   : > { %v5459_v8 = vpop.eup %5458  ;;  %v3007_v35 = vadd.f32 %v7308_v19, %v3006_v31  ;;  %v2831_v61 = vmul.f32 1.442695, %v2637_v40  ;;  %v2833_v20 = vmul.f32 1.442695, %v2638_v14  ;;  %v2639_v10 = vsub.f32 %v7994_v22, %v2500_v17  ;;  %v8002_v31 = vld [vmem:[#allocation52_spill] sm:$0xff]  ;;  %v8003_v40 = vld [vmem:[#allocation53_spill] sm:$0xff] }
 0x4ff   : > { %v5461_v54 = vpop.eup %5460  ;;  %5478 = vpow2.f32 %v2827_v32  ;;  %v3011_v50 = vadd.f32 %v5443_v5, %v3010_v53  ;;  %v2640_v36 = vsub.f32 %v7995_v1, %v2500_v17  ;;  %v2641_v21 = vsub.f32 %v7996_v55, %v2500_v17  ;;  %v8004_v14 = vld [vmem:[#allocation51_spill] sm:$0xff] }
 0x500   : > { %v7350_v38 = vpop.eup %5462  ;;  %3008 = vadd.xlane.f32.xlu0 %v3007_v35  ;;  %5480 = vpow2.f32 %v2829_v2  ;;  %v2642_v62 = vsub.f32 %v7997_v43, %v2500_v17  ;;  %v2835_v25 = vmul.f32 1.442695, %v2639_v10  ;;  %v3172_v33 = vpack.c.bf16 %v5457_v11, %v5449_v23  ;;  %v2505_v19 = vpop.xlane.xlu0 %2504  ;;  %v8006_v43 = vld [vmem:[#allocation56_spill] sm:$0xff] }
 0x501   : > { %v5465_v34 = vpop.eup %5464  ;;  %5482 = vpow2.f32 %v2831_v61  ;;  %v3012_v51 = vadd.f32 %v7320_v58, %v3011_v50  ;;  %v2837_v39 = vmul.f32 1.442695, %v2640_v36  ;;  %v2839_v3 = vmul.f32 1.442695, %v2641_v21  ;;  %v7998_v58 = vld [vmem:[#allocation48_spill] sm:$0xff] }
 0x502   : > { %v7354_v5 = vpop.eup %5466  ;;  %5484 = vpow2.f32 %v2833_v20  ;;  %v2841_v6 = vmul.f32 1.442695, %v2642_v62  ;;  %3291 = vmatprep.mubr.bf16.mxu1 %v3172_v33  ;;  %v3174_v4 = vpack.c.bf16 %v5461_v54, %v7337_v42  ;;  %v3015_v0 = vadd.f32 %v5449_v23, %v7326_v24  ;;  %v2510_v15 = vpop.xlane.xlu1 %2509 }
 0x503   : > { %v7358_v57 = vpop.eup %5468  ;;  %3013 = vadd.xlane.f32.xlu1 %v3012_v51  ;;  %5486 = vpow2.f32 %v2835_v25  ;;  %v3171_v7 = vpack.c.bf16 %v5455_v18, %v7326_v24  ;;  %v3173_v44 = vpack.c.bf16 %v5459_v8, %v7329_v52  ;;  %v2643_v45 = vsub.f32 %v7998_v58, %v2505_v19  ;;  %v8001_v24 = vld [vmem:[#allocation50_spill] sm:$0xff]  ;;  %v8007_v25 = vld [vmem:[#allocation57_spill] sm:$0xff] }
 0x504   : > { %v7363_v41 = vpop.eup %5470  ;;  %5488 = vpow2.f32 %v2837_v39  ;;  %3452 = vmatprep.mubr.bf16.mxu0 %v3174_v4  ;;  %v3016_v59 = vadd.f32 %v7329_v52, %v3015_v0  ;;  %v2644_v60 = vsub.f32 %v7999_v56, %v2505_v19  ;;  %v2645_v23 = vsub.f32 %v8000_v46, %v2505_v19 }
 0x505   : > { %v5473_v47 = vpop.eup %5472  ;;  %5490 = vpow2.f32 %v2839_v3  ;;  %3292 = vmatmul.mubr.bf16.gmra.mrb[120].mxu1 %v3171_v7  ;;  %3453 = vmatmul.mubr.bf16.gmra.mrb[120].mxu0 %v3173_v44  ;;  %v2646_v27 = vsub.f32 %v8001_v24, %v2505_v19  ;;  %v2843_v26 = vmul.f32 1.442695, %v2643_v45  ;;  %v3020_v28 = vadd.f32 %v5457_v11, %v5455_v18  ;;  %v8005_v18 = vld [vmem:[#allocation54_spill] sm:$0xff] }
 0x506   : > { %v5475_v49 = vpop.eup %5474  ;;  %5492 = vpow2.f32 %v2841_v6  ;;  %v3017_v13 = vadd.f32 %v7337_v42, %v3016_v59  ;;  %v2845_v16 = vmul.f32 1.442695, %v2644_v60  ;;  %v2847_v30 = vmul.f32 1.442695, %v2645_v23  ;;  %v8009_v6 = vld [vmem:[#allocation58_spill] sm:$0xff]  ;;  %v8010_v60 = vld [vmem:[#allocation60_spill] sm:$0xff] }
 0x507   : > { %v7370_v52 = vpop.eup %5476  ;;  %5494 = vpow2.f32 %v2843_v26  ;;  %v2849_v12 = vmul.f32 1.442695, %v2646_v27  ;;  %v3021_v17 = vadd.f32 %v5459_v8, %v3020_v28  ;;  %v2647_v48 = vsub.f32 %v8002_v31, %v2510_v15  ;;  %v8012_v27 = vld [vmem:[#allocation59_spill] sm:$0xff] }
 0x508   : > { %3018 = vadd.xlane.f32.xlu0 %v3017_v13  ;;  %5496 = vpow2.f32 %v2845_v16  ;;  %v2648_v29 = vsub.f32 %v8003_v40, %v2510_v15  ;;  %v2649_v32 = vsub.f32 %v8004_v14, %v2510_v15  ;;  %v2650_v11 = vsub.f32 %v8005_v18, %v2510_v15  ;;  %v2515_v61 = vpop.xlane.xlu0 %2514  ;;  %v8011_v15 = vld [vmem:[#allocation61_spill] sm:$0xff]  ;;  %v8013_v13 = vld [vmem:[#allocation62_spill] sm:$0xff] }
 0x509   : > { %v7376_v2 = vpop.eup %5478  ;;  %5498 = vpow2.f32 %v2847_v30  ;;  %v3022_v42 = vadd.f32 %v5461_v54, %v3021_v17  ;;  %v2851_v53 = vmul.f32 1.442695, %v2647_v48  ;;  %v3176_v35 = vpack.c.bf16 %v5473_v47, %v5465_v34 }
 0x50a   : > { %v5481_v20 = vpop.eup %5480  ;;  %5500 = vpow2.f32 %v2849_v12  ;;  %v2853_v8 = vmul.f32 1.442695, %v2648_v29  ;;  %v2855_v22 = vmul.f32 1.442695, %v2649_v32  ;;  %v2857_v10 = vmul.f32 1.442695, %v2650_v11  ;;  %v2520_v19 = vpop.xlane.xlu1 %2519 }
 0x50b   : > { %v7378_v50 = vpop.eup %5482  ;;  %3023 = vadd.xlane.f32.xlu1 %v3022_v42  ;;  %5502 = vpow2.f32 %v2851_v53  ;;  %3299 = vmatprep.mubr.bf16.mxu1 %v3176_v35  ;;  %v3178_v1 = vpack.c.bf16 %v7370_v52, %v7358_v57  ;;  %v3025_v36 = vadd.f32 %v5465_v34, %v7350_v38  ;;  %v3175_v54 = vpack.c.bf16 %v7363_v41, %v7350_v38  ;;  %v8008_v34 = vld [vmem:[#allocation55_spill] sm:$0xff]  ;;  %v8015_v35 = vld [vmem:[#allocation65_spill] sm:$0xff] }
 0x50c   : > { %v7385_v55 = vpop.eup %5484  ;;  %5504 = vpow2.f32 %v2853_v8  ;;  %v3177_v21 = vpack.c.bf16 %v5475_v49, %v7354_v5  ;;  %v2651_v62 = vsub.f32 %v8006_v43, %v2515_v61  ;;  %v2652_v33 = vsub.f32 %v8007_v25, %v2515_v61  ;;  %v8016_v8 = vld [vmem:[#allocation63_spill] sm:$0xff] }
 0x50d   : > { %v5487_v51 = vpop.eup %5486  ;;  %5506 = vpow2.f32 %v2855_v22  ;;  %3460 = vmatprep.mubr.bf16.mxu0 %v3178_v1  ;;  %v3026_v39 = vadd.f32 %v7354_v5, %v3025_v36  ;;  %3300 = vmatmul.mubr.bf16.gmra.mrb[124].mxu1 %v3175_v54  ;;  %v2653_v3 = vsub.f32 %v8008_v34, %v2515_v61  ;;  %v2654_v38 = vsub.f32 %v8009_v6, %v2515_v61 }
 0x50e   : > { %v5489_v4 = vpop.eup %5488  ;;  %5508 = vpow2.f32 %v2857_v10  ;;  %3461 = vmatmul.mubr.bf16.gmra.mrb[124].mxu0 %v3177_v21  ;;  %v2859_v0 = vmul.f32 1.442695, %v2651_v62  ;;  %v2861_v7 = vmul.f32 1.442695, %v2652_v33  ;;  %v3030_v44 = vadd.f32 %v5473_v47, %v7363_v41 }
 0x50f   : > { %v5491_v58 = vpop.eup %5490  ;;  %v3027_v45 = vadd.f32 %v7358_v57, %v3026_v39  ;;  %v2863_v59 = vmul.f32 1.442695, %v2653_v3  ;;  %v2865_v56 = vmul.f32 1.442695, %v2654_v38  ;;  %v2655_v46 = vsub.f32 %v8010_v60, %v2520_v19  ;;  %v8018_v39 = vld [vmem:[#allocation68_spill] sm:$0xff]  ;;  %v8019_v3 = vld [vmem:[#allocation69_spill] sm:$0xff] }
 0x510   : > { %v5493_v5 = vpop.eup %5492  ;;  %5510 = vpow2.f32 %v2859_v0  ;;  %v3031_v23 = vadd.f32 %v5475_v49, %v3030_v44  ;;  %v2656_v24 = vsub.f32 %v8011_v15, %v2520_v19  ;;  %v2657_v26 = vsub.f32 %v8012_v27, %v2520_v19  ;;  %v2525_v57 = vpop.xlane.xlu0 %2524  ;;  %v8020_v38 = vld [vmem:[#allocation67_spill] sm:$0xff] }
 0x511   : > { %v7398_v28 = vpop.eup %5494  ;;  %3028 = vadd.xlane.f32.xlu0 %v3027_v45  ;;  %5512 = vpow2.f32 %v2861_v7  ;;  %v2658_v41 = vsub.f32 %v8013_v13, %v2520_v19  ;;  %v2867_v47 = vmul.f32 1.442695, %v2655_v46  ;;  %v3180_v16 = vpack.c.bf16 %v5489_v4, %v5481_v20  ;;  %v8022_v13 = vld [vmem:[#allocation72_spill] sm:$0xff] }
 0x512   : > { %v5497_v30 = vpop.eup %5496  ;;  %5514 = vpow2.f32 %v2863_v59  ;;  %v3032_v12 = vadd.f32 %v7370_v52, %v3031_v23  ;;  %v2869_v17 = vmul.f32 1.442695, %v2656_v24  ;;  %v2871_v31 = vmul.f32 1.442695, %v2657_v26  ;;  %v8014_v52 = vld [vmem:[#allocation64_spill] sm:$0xff]  ;;  %v2530_v22 = vpop.xlane.xlu1 %2529 }
 0x513   : > { %v7402_v49 = vpop.eup %5498  ;;  %5516 = vpow2.f32 %v2865_v56  ;;  %v2873_v48 = vmul.f32 1.442695, %v2658_v41  ;;  %3307 = vmatprep.mubr.bf16.mxu1 %v3180_v16  ;;  %v3182_v40 = vpack.c.bf16 %v5493_v5, %v7385_v55  ;;  %v3035_v29 = vadd.f32 %v5481_v20, %v7376_v2 }
 0x514   : > { %v7406_v14 = vpop.eup %5500  ;;  %3033 = vadd.xlane.f32.xlu1 %v3032_v12  ;;  %5518 = vpow2.f32 %v2867_v47  ;;  %v3179_v32 = vpack.c.bf16 %v5487_v51, %v7376_v2  ;;  %v3181_v18 = vpack.c.bf16 %v5491_v58, %v7378_v50  ;;  %v2659_v11 = vsub.f32 %v8014_v52, %v2525_v57  ;;  %v8017_v2 = vld [vmem:[#allocation66_spill] sm:$0xff]  ;;  %v8023_v47 = vld [vmem:[#allocation73_spill] sm:$0xff] }
 0x515   : > { %v7411_v42 = vpop.eup %5502  ;;  %5520 = vpow2.f32 %v2869_v17  ;;  %3468 = vmatprep.mubr.bf16.mxu0 %v3182_v40  ;;  %v3036_v53 = vadd.f32 %v7378_v50, %v3035_v29  ;;  %v2660_v61 = vsub.f32 %v8015_v35, %v2525_v57  ;;  %v2661_v20 = vsub.f32 %v8016_v8, %v2525_v57 }
 0x516   : > { %v5505_v10 = vpop.eup %5504  ;;  %5522 = vpow2.f32 %v2871_v31  ;;  %3308 = vmatmul.mubr.bf16.gmra.mrb[128].mxu1 %v3179_v32  ;;  %3469 = vmatmul.mubr.bf16.gmra.mrb[128].mxu0 %v3181_v18  ;;  %v2662_v1 = vsub.f32 %v8017_v2, %v2525_v57  ;;  %v2875_v36 = vmul.f32 1.442695, %v2659_v11  ;;  %v3040_v54 = vadd.f32 %v5489_v4, %v5487_v51  ;;  %v8021_v51 = vld [vmem:[#allocation70_spill] sm:$0xff] }
 0x517   : > { %v5507_v21 = vpop.eup %5506  ;;  %5524 = vpow2.f32 %v2873_v48  ;;  %v3037_v43 = vadd.f32 %v7385_v55, %v3036_v53  ;;  %v2877_v62 = vmul.f32 1.442695, %v2660_v61  ;;  %v2879_v25 = vmul.f32 1.442695, %v2661_v20  ;;  %v8025_v48 = vld [vmem:[#allocation74_spill] sm:$0xff]  ;;  %v8026_v61 = vld [vmem:[#allocation76_spill] sm:$0xff] }
 0x518   : > { %v7418_v50 = vpop.eup %5508  ;;  %5526 = vpow2.f32 %v2875_v36  ;;  %v2881_v33 = vmul.f32 1.442695, %v2662_v1  ;;  %v3041_v19 = vadd.f32 %v5491_v58, %v3040_v54  ;;  %v2663_v34 = vsub.f32 %v8018_v39, %v2530_v22  ;;  %v2535_v59 = vpop.xlane.xlu0 %2534  ;;  %v8028_v1 = vld [vmem:[#allocation75_spill] sm:$0xff] }
 0x519   : > { %3038 = vadd.xlane.f32.xlu0 %v3037_v43  ;;  %5528 = vpow2.f32 %v2877_v62  ;;  %v2664_v6 = vsub.f32 %v8019_v3, %v2530_v22  ;;  %v2665_v0 = vsub.f32 %v8020_v38, %v2530_v22  ;;  %v2666_v4 = vsub.f32 %v8021_v51, %v2530_v22  ;;  %v8027_v22 = vld [vmem:[#allocation77_spill] sm:$0xff]  ;;  %v8029_v43 = vld [vmem:[#allocation78_spill] sm:$0xff] }
 0x51a   : > { %v7424_v7 = vpop.eup %5510  ;;  %5530 = vpow2.f32 %v2879_v25  ;;  %v3042_v55 = vadd.f32 %v5493_v5, %v3041_v19  ;;  %v2883_v44 = vmul.f32 1.442695, %v2663_v34  ;;  %v3184_v45 = vpack.c.bf16 %v5505_v10, %v5497_v30  ;;  %v2540_v57 = vpop.xlane.xlu1 %2539 }
 0x51b   : > { %v5513_v56 = vpop.eup %5512  ;;  %5532 = vpow2.f32 %v2881_v33  ;;  %v2885_v58 = vmul.f32 1.442695, %v2664_v6  ;;  %v2887_v60 = vmul.f32 1.442695, %v2665_v0  ;;  %v2889_v46 = vmul.f32 1.442695, %v2666_v4 }
 0x51c   : > { %v7426_v23 = vpop.eup %5514  ;;  %3043 = vadd.xlane.f32.xlu1 %v3042_v55  ;;  %5534 = vpow2.f32 %v2883_v44  ;;  %3315 = vmatprep.mubr.bf16.mxu1 %v3184_v45  ;;  %v3186_v15 = vpack.c.bf16 %v7418_v50, %v7406_v14  ;;  %v3045_v24 = vadd.f32 %v5497_v30, %v7398_v28  ;;  %v3183_v5 = vpack.c.bf16 %v7411_v42, %v7398_v28  ;;  %v8024_v30 = vld [vmem:[#allocation71_spill] sm:$0xff]  ;;  %v8031_v45 = vld [vmem:[#allocation81_spill] sm:$0xff] }
 0x51d   : > { %v7433_v27 = vpop.eup %5516  ;;  %5536 = vpow2.f32 %v2885_v58  ;;  %v3185_v26 = vpack.c.bf16 %v5507_v21, %v7402_v49  ;;  %v2667_v41 = vsub.f32 %v8022_v13, %v2535_v59  ;;  %v2668_v16 = vsub.f32 %v8023_v47, %v2535_v59  ;;  %v8032_v58 = vld [vmem:[#allocation79_spill] sm:$0xff] }
 0x51e   : > { %v5519_v12 = vpop.eup %5518  ;;  %5538 = vpow2.f32 %v2887_v60  ;;  %3476 = vmatprep.mubr.bf16.mxu0 %v3186_v15  ;;  %v3046_v17 = vadd.f32 %v7402_v49, %v3045_v24  ;;  %3316 = vmatmul.mubr.bf16.gmra.mrb[132].mxu1 %v3183_v5  ;;  %v2669_v31 = vsub.f32 %v8024_v30, %v2535_v59  ;;  %v2670_v28 = vsub.f32 %v8025_v48, %v2535_v59 }
 0x51f   : > { %v5521_v40 = vpop.eup %5520  ;;  %5540 = vpow2.f32 %v2889_v46  ;;  %3477 = vmatmul.mubr.bf16.gmra.mrb[132].mxu0 %v3185_v26  ;;  %v2891_v29 = vmul.f32 1.442695, %v2667_v41  ;;  %v2893_v32 = vmul.f32 1.442695, %v2668_v16  ;;  %v3050_v18 = vadd.f32 %v5505_v10, %v7411_v42 }
 0x520   : > { %v5523_v52 = vpop.eup %5522  ;;  %v3047_v11 = vadd.f32 %v7406_v14, %v3046_v17  ;;  %v2895_v53 = vmul.f32 1.442695, %v2669_v31  ;;  %v2897_v35 = vmul.f32 1.442695, %v2670_v28  ;;  %v2671_v8 = vsub.f32 %v8026_v61, %v2540_v57  ;;  %v2545_v14 = vpop.xlane.xlu0 %2544  ;;  %v8034_v17 = vld [vmem:[#allocation84_spill] sm:$0xff]  ;;  %v8035_v31 = vld [vmem:[#allocation85_spill] sm:$0xff] }
 0x521   : > { %v5525_v49 = vpop.eup %5524  ;;  %5542 = vpow2.f32 %v2891_v29  ;;  %v3051_v20 = vadd.f32 %v5507_v21, %v3050_v18  ;;  %v2672_v2 = vsub.f32 %v8027_v22, %v2540_v57  ;;  %v2673_v36 = vsub.f32 %v8028_v1, %v2540_v57  ;;  %v8036_v28 = vld [vmem:[#allocation83_spill] sm:$0xff] }
 0x522   : > { %v7446_v54 = vpop.eup %5526  ;;  %3048 = vadd.xlane.f32.xlu0 %v3047_v11  ;;  %5544 = vpow2.f32 %v2893_v32  ;;  %v2674_v42 = vsub.f32 %v8029_v43, %v2540_v57  ;;  %v2899_v10 = vmul.f32 1.442695, %v2671_v8  ;;  %v3188_v62 = vpack.c.bf16 %v5521_v40, %v5513_v56  ;;  %v2550_v60 = vpop.xlane.xlu1 %2549  ;;  %v8038_v43 = vld [vmem:[#allocation88_spill] sm:$0xff] }
 0x523   : > { %v5529_v25 = vpop.eup %5528  ;;  %5546 = vpow2.f32 %v2895_v53  ;;  %v3052_v33 = vadd.f32 %v7418_v50, %v3051_v20  ;;  %v2901_v19 = vmul.f32 1.442695, %v2672_v2  ;;  %v2903_v39 = vmul.f32 1.442695, %v2673_v36  ;;  %v8030_v50 = vld [vmem:[#allocation80_spill] sm:$0xff] }
 0x524   : > { %v7450_v21 = vpop.eup %5530  ;;  %5548 = vpow2.f32 %v2897_v35  ;;  %v2905_v34 = vmul.f32 1.442695, %v2674_v42  ;;  %3323 = vmatprep.mubr.bf16.mxu1 %v3188_v62  ;;  %v3190_v3 = vpack.c.bf16 %v5525_v49, %v7433_v27  ;;  %v3055_v6 = vadd.f32 %v5513_v56, %v7424_v7 }
 0x525   : > { %v7454_v38 = vpop.eup %5532  ;;  %3053 = vadd.xlane.f32.xlu1 %v3052_v33  ;;  %5550 = vpow2.f32 %v2899_v10  ;;  %v3187_v0 = vpack.c.bf16 %v5519_v12, %v7424_v7  ;;  %v3189_v51 = vpack.c.bf16 %v5523_v52, %v7426_v23  ;;  %v2675_v4 = vsub.f32 %v8030_v50, %v2545_v14  ;;  %v8033_v7 = vld [vmem:[#allocation82_spill] sm:$0xff]  ;;  %v8039_v10 = vld [vmem:[#allocation89_spill] sm:$0xff] }
 0x526   : > { %v7459_v55 = vpop.eup %5534  ;;  %5552 = vpow2.f32 %v2901_v19  ;;  %3484 = vmatprep.mubr.bf16.mxu0 %v3190_v3  ;;  %v3056_v44 = vadd.f32 %v7426_v23, %v3055_v6  ;;  %v2676_v59 = vsub.f32 %v8031_v45, %v2545_v14  ;;  %v2677_v56 = vsub.f32 %v8032_v58, %v2545_v14 }
 0x527   : > { %v5537_v46 = vpop.eup %5536  ;;  %5554 = vpow2.f32 %v2903_v39  ;;  %3324 = vmatmul.mubr.bf16.gmra.mrb[136].mxu1 %v3187_v0  ;;  %3485 = vmatmul.mubr.bf16.gmra.mrb[136].mxu0 %v3189_v51  ;;  %v2678_v15 = vsub.f32 %v8033_v7, %v2545_v14  ;;  %v2907_v24 = vmul.f32 1.442695, %v2675_v4  ;;  %v3060_v5 = vadd.f32 %v5521_v40, %v5519_v12  ;;  %v8037_v12 = vld [vmem:[#allocation86_spill] sm:$0xff] }
 0x528   : > { %v5539_v26 = vpop.eup %5538  ;;  %5556 = vpow2.f32 %v2905_v34  ;;  %v3057_v13 = vadd.f32 %v7433_v27, %v3056_v44  ;;  %v2909_v41 = vmul.f32 1.442695, %v2676_v59  ;;  %v2911_v47 = vmul.f32 1.442695, %v2677_v56  ;;  %v2555_v53 = vpop.xlane.xlu0 %2554  ;;  %v8041_v34 = vld [vmem:[#allocation90_spill] sm:$0xff]  ;;  %v8042_v59 = vld [vmem:[#allocation92_spill] sm:$0xff] }
 0x529   : > { %v7466_v23 = vpop.eup %5540  ;;  %5558 = vpow2.f32 %v2907_v24  ;;  %v2913_v16 = vmul.f32 1.442695, %v2678_v15  ;;  %v3061_v57 = vadd.f32 %v5523_v52, %v3060_v5  ;;  %v2679_v30 = vsub.f32 %v8034_v17, %v2550_v60  ;;  %v8044_v15 = vld [vmem:[#allocation91_spill] sm:$0xff] }
 0x52a   : > { %3058 = vadd.xlane.f32.xlu0 %v3057_v13  ;;  %5560 = vpow2.f32 %v2909_v41  ;;  %v2680_v48 = vsub.f32 %v8035_v31, %v2550_v60  ;;  %v2681_v29 = vsub.f32 %v8036_v28, %v2550_v60  ;;  %v2682_v40 = vsub.f32 %v8037_v12, %v2550_v60  ;;  %v2560_v14 = vpop.xlane.xlu1 %2559  ;;  %v8043_v60 = vld [vmem:[#allocation93_spill] sm:$0xff]  ;;  %v8045_v13 = vld [vmem:[#allocation94_spill] sm:$0xff] }
 0x52b   : > { %v7472_v32 = vpop.eup %5542  ;;  %5562 = vpow2.f32 %v2911_v47  ;;  %v3062_v27 = vadd.f32 %v5525_v49, %v3061_v57  ;;  %v2915_v18 = vmul.f32 1.442695, %v2679_v30  ;;  %v3192_v11 = vpack.c.bf16 %v5537_v46, %v5529_v25 }
 0x52c   : > { %v5545_v35 = vpop.eup %5544  ;;  %5564 = vpow2.f32 %v2913_v16  ;;  %v2917_v52 = vmul.f32 1.442695, %v2680_v48  ;;  %v2919_v61 = vmul.f32 1.442695, %v2681_v29  ;;  %v2921_v8 = vmul.f32 1.442695, %v2682_v40 }
 0x52d   : > { %v7474_v20 = vpop.eup %5546  ;;  %3063 = vadd.xlane.f32.xlu1 %v3062_v27  ;;  %5566 = vpow2.f32 %v2915_v18  ;;  %3331 = vmatprep.mubr.bf16.mxu1 %v3192_v11  ;;  %v3194_v22 = vpack.c.bf16 %v7466_v23, %v7454_v38  ;;  %v3065_v2 = vadd.f32 %v5529_v25, %v7446_v54  ;;  %v3191_v49 = vpack.c.bf16 %v7459_v55, %v7446_v54  ;;  %v8040_v25 = vld [vmem:[#allocation87_spill] sm:$0xff]  ;;  %v8047_v11 = vld [vmem:[#allocation97_spill] sm:$0xff] }
 0x52e   : > { %v7481_v1 = vpop.eup %5548  ;;  %5568 = vpow2.f32 %v2917_v52  ;;  %v3193_v36 = vpack.c.bf16 %v5539_v26, %v7450_v21  ;;  %v2683_v42 = vsub.f32 %v8038_v43, %v2555_v53  ;;  %v2684_v62 = vsub.f32 %v8039_v10, %v2555_v53  ;;  %v8048_v52 = vld [vmem:[#allocation95_spill] sm:$0xff] }
 0x52f   : > { %v5551_v33 = vpop.eup %5550  ;;  %5570 = vpow2.f32 %v2919_v61  ;;  %3492 = vmatprep.mubr.bf16.mxu0 %v3194_v22  ;;  %v3066_v19 = vadd.f32 %v7450_v21, %v3065_v2  ;;  %3332 = vmatmul.mubr.bf16.gmra.mrb[140].mxu1 %v3191_v49  ;;  %v2685_v39 = vsub.f32 %v8040_v25, %v2555_v53  ;;  %v2686_v54 = vsub.f32 %v8041_v34, %v2555_v53  ;;  %v8050_v25 = vld [vmem:[#allocation99_spill] sm:$0xff] }
 0x530   : > { %v5553_v3 = vpop.eup %5552  ;;  %5572 = vpow2.f32 %v2921_v8  ;;  %3493 = vmatmul.mubr.bf16.gmra.mrb[140].mxu0 %v3193_v36  ;;  %v2923_v6 = vmul.f32 1.442695, %v2683_v42  ;;  %v2925_v0 = vmul.f32 1.442695, %v2684_v62  ;;  %v3070_v51 = vadd.f32 %v5537_v46, %v7459_v55 }
 0x531   : > { %v5555_v50 = vpop.eup %5554  ;;  %v3067_v4 = vadd.f32 %v7454_v38, %v3066_v19  ;;  %v2927_v44 = vmul.f32 1.442695, %v2685_v39  ;;  %v2929_v45 = vmul.f32 1.442695, %v2686_v54  ;;  %v2687_v58 = vsub.f32 %v8042_v59, %v2560_v14  ;;  %v2565_v38 = vpop.xlane.xlu0 %2564 }
 0x532   : > { %v5557_v21 = vpop.eup %5556  ;;  %5574 = vpow2.f32 %v2923_v6  ;;  %v3071_v56 = vadd.f32 %v5539_v26, %v3070_v51  ;;  %v2688_v7 = vsub.f32 %v8043_v60, %v2560_v14  ;;  %v2689_v24 = vsub.f32 %v8044_v15, %v2560_v14 }
 0x533   : > { %v7494_v5 = vpop.eup %5558  ;;  %3068 = vadd.xlane.f32.xlu0 %v3067_v4  ;;  %5576 = vpow2.f32 %v2925_v0  ;;  %v2690_v55 = vsub.f32 %v8045_v13, %v2560_v14  ;;  %v2931_v46 = vmul.f32 1.442695, %v2687_v58  ;;  %v3196_v41 = vpack.c.bf16 %v5553_v3, %v5545_v35  ;;  %v8049_v14 = vld [vmem:[#allocation98_spill] sm:$0xff] }
 0x534   : > { %v5561_v47 = vpop.eup %5560  ;;  %5578 = vpow2.f32 %v2927_v44  ;;  %v3072_v16 = vadd.f32 %v7466_v23, %v3071_v56  ;;  %v2933_v57 = vmul.f32 1.442695, %v2688_v7  ;;  %v2935_v17 = vmul.f32 1.442695, %v2689_v24  ;;  %v8046_v23 = vld [vmem:[#allocation96_spill] sm:$0xff] }
 0x535   : > { %v7498_v26 = vpop.eup %5562  ;;  %5580 = vpow2.f32 %v2929_v45  ;;  %v2937_v30 = vmul.f32 1.442695, %v2690_v55  ;;  %3339 = vmatprep.mubr.bf16.mxu1 %v3196_v41  ;;  %v3198_v31 = vpack.c.bf16 %v5557_v21, %v7481_v1  ;;  %v3075_v48 = vadd.f32 %v5545_v35, %v7472_v32  ;;  %v2570_v35 = vpop.xlane.xlu1 %2569 }
 0x536   : > { %v7502_v28 = vpop.eup %5564  ;;  %3073 = vadd.xlane.f32.xlu1 %v3072_v16  ;;  %5582 = vpow2.f32 %v2931_v46  ;;  %v3195_v29 = vpack.c.bf16 %v5551_v33, %v7472_v32  ;;  %v3197_v12 = vpack.c.bf16 %v5555_v50, %v7474_v20  ;;  %v2691_v40 = vsub.f32 %v8046_v23, %v2565_v38 }
 0x537   : > { %v5567_v27 = vpop.eup %5566  ;;  %5584 = vpow2.f32 %v2933_v57  ;;  %3500 = vmatprep.mubr.bf16.mxu0 %v3198_v31  ;;  %v3076_v18 = vadd.f32 %v7474_v20, %v3075_v48  ;;  %v2692_v53 = vsub.f32 %v8047_v11, %v2565_v38  ;;  %v2693_v61 = vsub.f32 %v8048_v52, %v2565_v38 }
 0x538   : > { %v5569_v8 = vpop.eup %5568  ;;  %5586 = vpow2.f32 %v2935_v17  ;;  %3340 = vmatmul.mubr.bf16.gmra.mrb[144].mxu1 %v3195_v29  ;;  %3501 = vmatmul.mubr.bf16.gmra.mrb[144].mxu0 %v3197_v12  ;;  %v2694_v32 = vsub.f32 %v7176_v37, %v2565_v38  ;;  %v2939_v22 = vmul.f32 1.442695, %v2691_v40  ;;  %v3080_v2 = vadd.f32 %v5553_v3, %v5551_v33 }
 0x539   : > { %v5571_v49 = vpop.eup %5570  ;;  %5588 = vpow2.f32 %v2937_v30  ;;  %v3077_v36 = vadd.f32 %v7481_v1, %v3076_v18  ;;  %v2941_v43 = vmul.f32 1.442695, %v2692_v53  ;;  %v2943_v42 = vmul.f32 1.442695, %v2693_v61 }
 0x53a   : > { %v5573_v20 = vpop.eup %5572  ;;  %5590 = vpow2.f32 %v2939_v22  ;;  %v2945_v10 = vmul.f32 1.442695, %v2694_v32  ;;  %v3081_v62 = vadd.f32 %v5555_v50, %v3080_v2  ;;  %v2695_v19 = vsub.f32 %v8049_v14, %v2570_v35 }
 0x53b   : > { %3078 = vadd.xlane.f32.xlu0 %v3077_v36  ;;  %5592 = vpow2.f32 %v2941_v43  ;;  %v2696_v39 = vsub.f32 %v8050_v25, %v2570_v35  ;;  %v2697_v37 = vsub.f32 %v7180_v63, %v2570_v35  ;;  %v2698_v33 = vsub.f32 %v7186_v9, %v2570_v35 }
 0x53c   : > { %v5575_v34 = vpop.eup %5574  ;;  %5594 = vpow2.f32 %v2943_v42  ;;  %v3082_v54 = vadd.f32 %v5557_v21, %v3081_v62  ;;  %v2947_v1 = vmul.f32 1.442695, %v2695_v19  ;;  %v3200_v3 = vpack.c.bf16 %v5569_v8, %v5561_v47 }
 0x53d   : > { %v5577_v6 = vpop.eup %5576  ;;  %5596 = vpow2.f32 %v2945_v10  ;;  %v2949_v0 = vmul.f32 1.442695, %v2696_v39  ;;  %v2951_v51 = vmul.f32 1.442695, %v2697_v37  ;;  %v2953_v50 = vmul.f32 1.442695, %v2698_v33 }
 0x53e   : > { %v5579_v4 = vpop.eup %5578  ;;  %3083 = vadd.xlane.f32.xlu1 %v3082_v54  ;;  %5598 = vpow2.f32 %v2947_v1  ;;  %3347 = vmatprep.mubr.bf16.mxu1 %v3200_v3  ;;  %v3202_v44 = vpack.c.bf16 %v5573_v20, %v7502_v28  ;;  %v3085_v63 = vadd.f32 %v5561_v47, %v7494_v5  ;;  %v3199_v9 = vpack.c.bf16 %v5567_v27, %v7494_v5 }
 0x53f   : > { %v5581_v45 = vpop.eup %5580  ;;  %5600 = vpow2.f32 %v2949_v0  ;;  %v3201_v59 = vpack.c.bf16 %v5571_v49, %v7498_v26  ;;  %v3090_v58 = vadd.f32 %v5569_v8, %v5567_v27  ;;  %v3095_v21 = vadd.f32 %v5577_v6, %v5575_v34 }
 0x540   : > { %v5583_v56 = vpop.eup %5582  ;;  %5602 = vpow2.f32 %v2951_v51  ;;  %3508 = vmatprep.mubr.bf16.mxu0 %v3202_v44  ;;  %v3086_v60 = vadd.f32 %v7498_v26, %v3085_v63  ;;  %3348 = vmatmul.mubr.bf16.gmra.mrb[148].mxu1 %v3199_v9 }
 0x541   : > { %v5585_v7 = vpop.eup %5584  ;;  %5604 = vpow2.f32 %v2953_v50  ;;  %3509 = vmatmul.mubr.bf16.gmra.mrb[148].mxu0 %v3201_v59  ;;  %v3091_v15 = vadd.f32 %v5571_v49, %v3090_v58  ;;  %v3096_v24 = vadd.f32 %v5579_v4, %v3095_v21  ;;  %v3203_v13 = vpack.c.bf16 %v5583_v56, %v5575_v34 }
 0x542   : > { %v5587_v55 = vpop.eup %5586  ;;  %v3087_v5 = vadd.f32 %v7502_v28, %v3086_v60  ;;  %v3204_v46 = vpack.c.bf16 %v5585_v7, %v5577_v6  ;;  %v3100_v41 = vadd.f32 %v5585_v7, %v5583_v56 }
 0x543   : > { %v5589_v38 = vpop.eup %5588  ;;  %v3092_v47 = vadd.f32 %v5573_v20, %v3091_v15  ;;  %v3097_v16 = vadd.f32 %v5581_v45, %v3096_v24  ;;  %v3205_v57 = vpack.c.bf16 %v5587_v55, %v5579_v4 }
 0x544   : > { %v5591_v17 = vpop.eup %5590  ;;  %3088 = vadd.xlane.f32.xlu0 %v3087_v5  ;;  %3355 = vmatprep.mubr.bf16.mxu1 %v3204_v46  ;;  %v3206_v26 = vpack.c.bf16 %v5589_v38, %v5581_v45  ;;  %v3101_v30 = vadd.f32 %v5587_v55, %v3100_v41 }
 0x545   : > { %v5593_v31 = vpop.eup %5592  ;;  %3093 = vadd.xlane.f32.xlu1 %v3092_v47 }
 0x546   : > { %v5595_v48 = vpop.eup %5594  ;;  %3516 = vmatprep.mubr.bf16.mxu0 %v3206_v26  ;;  %v3102_v29 = vadd.f32 %v5589_v38, %v3101_v30  ;;  %v3105_v12 = vadd.f32 %v5593_v31, %v5591_v17 }
 0x547   : > { %v5597_v23 = vpop.eup %5596 }
 0x548   : > { %v5599_v40 = vpop.eup %5598  ;;  %3098 = vadd.xlane.f32.xlu0 %v3097_v16  ;;  %3356 = vmatmul.mubr.bf16.gmra.mrb[152].mxu1 %v3203_v13  ;;  %v3106_v28 = vadd.f32 %v5595_v48, %v3105_v12 }
 0x549   : > { %v5601_v27 = vpop.eup %5600  ;;  %3517 = vmatmul.mubr.bf16.gmra.mrb[152].mxu0 %v3205_v57  ;;  %3103 = vadd.xlane.f32.xlu1 %v3102_v29  ;;  %v3207_v18 = vpack.c.bf16 %v5599_v40, %v5591_v17 }
 0x54a   : > { %v5603_v11 = vpop.eup %5602  ;;  %v3208_v53 = vpack.c.bf16 %v5601_v27, %v5593_v31  ;;  %v3107_v52 = vadd.f32 %v5597_v23, %v3106_v28  ;;  %v3110_v61 = vadd.f32 %v5601_v27, %v5599_v40 }
 0x54b   : > { %v5605_v35 = vpop.eup %5604  ;;  %v3209_v8 = vpack.c.bf16 %v5603_v11, %v5595_v48 }
 0x54c   : > { %3363 = vmatprep.mubr.bf16.mxu1 %v3208_v53  ;;  %v3210_v32 = vpack.c.bf16 %v5605_v35, %v5597_v23  ;;  %3108 = vadd.xlane.f32.xlu0 %v3107_v52  ;;  %v3111_v22 = vadd.f32 %v5603_v11, %v3110_v61 }
 0x54e   : > { %3524 = vmatprep.mubr.bf16.mxu0 %v3210_v32  ;;  %v3112_v2 = vadd.f32 %v5605_v35, %v3111_v22 }
 0x550   : > { %3364 = vmatmul.mubr.bf16.gmra.mrb[156].mxu1 %v3207_v18  ;;  %3113 = vadd.xlane.f32.xlu1 %v3112_v2 }
 0x551   : > { %3525 = vmatmul.mubr.bf16.gmra.mrb[156].mxu0 %v3209_v8 }
 0x55f   : > { %v2959_v49 = vpop.xlane.xlu0 %2958 }
 0x560   : > { %5606 = vrcp.f32 %v2959_v49 }
 0x566   : > { %v2964_v36 = vpop.xlane.xlu1 %2963 }
 0x567   : > { %5608 = vrcp.f32 %v2964_v36 }
 0x569   : > { %v2969_v43 = vpop.xlane.xlu0 %2968 }
 0x56a   : > { %5610 = vrcp.f32 %v2969_v43  ;;  %v5607_v6 = vpop.eup %5606 }
 0x571   : > { %v2974_v20 = vpop.xlane.xlu1 %2973  ;;  %v5609_v4 = vpop.eup %5608 }
 0x572   : > { %5612 = vrcp.f32 %v2974_v20 }
 0x573   : > { %v2979_v0 = vpop.xlane.xlu0 %2978 }
 0x574   : > { %5614 = vrcp.f32 %v2979_v0  ;;  %v5611_v41 = vpop.eup %5610 }
 0x577   : > { %v2984_v9 = vpop.xlane.xlu1 %2983 }
 0x578   : > { %5616 = vrcp.f32 %v2984_v9 }
 0x57c   : > { %v5613_v47 = vpop.eup %5612  ;;  %v2989_v16 = vpop.xlane.xlu0 %2988 }
 0x57d   : > { %5618 = vrcp.f32 %v2989_v16 }
 0x57e   : > { %v5615_v35 = vpop.eup %5614 }
 0x57f   : > { %v2994_v48 = vpop.xlane.xlu1 %2993 }
 0x580   : > { %5620 = vrcp.f32 %v2994_v48 }
 0x582   : > { %v5617_v32 = vpop.eup %5616 }
 0x584   : > { %v2999_v22 = vpop.xlane.xlu0 %2998 }
 0x585   : > { %5622 = vrcp.f32 %v2999_v22 }
 0x587   : > { %v3004_v20 = vpop.xlane.xlu1 %3003 }
 0x588   : > { %5624 = vrcp.f32 %v3004_v20 }
 0x5a5   : > { %v4699_v42 = vpop.f32.mrb[96].mxu1 }
 0x5a6   : > { %v4811_v10 = vpop.f32.mrb[96].mxu0  ;;  %v4700_v14 = vpop.f32.mrb[97].mxu1 }
 0x5a7   : > { %v4812_v62 = vpop.f32.mrb[97].mxu0  ;;  %v4701_v25 = vadd.f32 %v4700_v14, %v4699_v42  ;;  %v4702_v39 = vpop.f32.mrb[98].mxu1 }
 0x5a8   : > { %v4813_v19 = vadd.f32 %v4812_v62, %v4811_v10  ;;  %v4814_v37 = vpop.f32.mrb[98].mxu0  ;;  %v4703_v33 = vpop.f32.mrb[99].mxu1 }
 0x5a9   : > { %v4704_v54 = vadd.f32 %v4703_v33, %v4702_v39  ;;  %v4815_v1 = vpop.f32.mrb[99].mxu0 }
 0x5aa   : > { %v3407_v34 = vadd.f32 %v4813_v19, %v4701_v25  ;;  %v4816_v3 = vadd.f32 %v4815_v1, %v4814_v37 }
 0x5ac   : > { %v3410_v51 = vadd.f32 %v4816_v3, %v4704_v54  ;;  %v3533_v45 = vmul.f32 %v5607_v6, %v3407_v34  ;;  %v5619_v3 = vpop.eup %5618 }
 0x5ad   : > { %v4705_v50 = vpop.f32.mrb[100].mxu1  ;;  %v5621_v0 = vpop.eup %5620 }
 0x5ae   : > { %v4817_v44 = vpop.f32.mrb[100].mxu0  ;;  %v4706_v63 = vpop.f32.mrb[101].mxu1  ;;  %v3534_v59 = vmul.f32 %v5609_v4, %v3410_v51 }
 0x5af   : > { %v4818_v58 = vpop.f32.mrb[101].mxu0  ;;  %v4707_v21 = vadd.f32 %v4706_v63, %v4705_v50  ;;  %v4708_v60 = vpop.f32.mrb[102].mxu1 }
 0x5b0   : > { %v4819_v56 = vadd.f32 %v4818_v58, %v4817_v44  ;;  %v4820_v7 = vpop.f32.mrb[102].mxu0  ;;  %v3566_v15 = vpack.c.bf16 %v3534_v59, %v3533_v45  ;;  %v4709_v24 = vpop.f32.mrb[103].mxu1 }
 0x5b1   : > { %v4821_v13 = vpop.f32.mrb[103].mxu0  ;;  %v4710_v5 = vadd.f32 %v4709_v24, %v4708_v60  ;;  %v3009_v63 = vpop.xlane.xlu0 %3008 }
 0x5b2   : > { %v3415_v55 = vadd.f32 %v4819_v56, %v4707_v21  ;;  %v4822_v46 = vadd.f32 %v4821_v13, %v4820_v7  ;;  %3586 = vst [vmem:[%s7524_s21] sm:$0xff] %v3566_v15  ;;  %v3014_v15 = vpop.xlane.xlu1 %3013  ;;  %5626 = vrcp.f32 %v3009_v63 }
 0x5b3   : > { %5628 = vrcp.f32 %v3014_v15 }
 0x5b4   : > { %v3418_v38 = vadd.f32 %v4822_v46, %v4710_v5  ;;  %v3535_v17 = vmul.f32 %v5611_v41, %v3415_v55  ;;  %v5623_v46 = vpop.eup %5622 }
 0x5b5   : > { %v4711_v57 = vpop.f32.mrb[104].mxu1 }
 0x5b6   : > { %v3536_v26 = vmul.f32 %v5613_v47, %v3418_v38  ;;  %v4823_v30 = vpop.f32.mrb[104].mxu0  ;;  %v4712_v31 = vpop.f32.mrb[105].mxu1 }
 0x5b7   : > { %v4824_v29 = vpop.f32.mrb[105].mxu0  ;;  %v4713_v12 = vadd.f32 %v4712_v31, %v4711_v57  ;;  %v4714_v28 = vpop.f32.mrb[106].mxu1 }
 0x5b8   : > { %v3567_v23 = vpack.c.bf16 %v3536_v26, %v3535_v17  ;;  %v4825_v40 = vadd.f32 %v4824_v29, %v4823_v30  ;;  %v4826_v27 = vpop.f32.mrb[106].mxu0  ;;  %v4715_v18 = vpop.f32.mrb[107].mxu1 }
 0x5b9   : > { %v4827_v11 = vpop.f32.mrb[107].mxu0  ;;  %v4716_v52 = vadd.f32 %v4715_v18, %v4714_v28  ;;  %v5625_v38 = vpop.eup %5624 }
 0x5ba   : > { %3587 = vst [vmem:[%s7524_s21 + $0x10] sm:$0xff] %v3567_v23  ;;  %v3423_v53 = vadd.f32 %v4825_v40, %v4713_v12  ;;  %v4828_v61 = vadd.f32 %v4827_v11, %v4826_v27  ;;  %v3019_v30 = vpop.xlane.xlu0 %3018  ;;  %v3024_v29 = vpop.xlane.xlu1 %3023 }
 0x5bb   : > { %5630 = vrcp.f32 %v3019_v30 }
 0x5bc   : > { %v3426_v8 = vadd.f32 %v4828_v61, %v4716_v52  ;;  %v3537_v2 = vmul.f32 %v5615_v35, %v3423_v53  ;;  %5632 = vrcp.f32 %v3024_v29  ;;  %v5627_v61 = vpop.eup %5626 }
 0x5be   : > { %v3538_v49 = vmul.f32 %v5617_v32, %v3426_v8  ;;  %v4717_v36 = vpop.f32.mrb[108].mxu1  ;;  %v3029_v35 = vpop.xlane.xlu0 %3028 }
 0x5bf   : > { %v4829_v43 = vpop.f32.mrb[108].mxu0  ;;  %v4718_v42 = vpop.f32.mrb[109].mxu1  ;;  %5634 = vrcp.f32 %v3029_v35 }
 0x5c0   : > { %v3568_v10 = vpack.c.bf16 %v3538_v49, %v3537_v2  ;;  %v4830_v62 = vpop.f32.mrb[109].mxu0  ;;  %v4719_v14 = vadd.f32 %v4718_v42, %v4717_v36  ;;  %v4720_v25 = vpop.f32.mrb[110].mxu1 }
 0x5c1   : > { %v4831_v19 = vadd.f32 %v4830_v62, %v4829_v43  ;;  %v4832_v39 = vpop.f32.mrb[110].mxu0  ;;  %v4721_v37 = vpop.f32.mrb[111].mxu1 }
 0x5c2   : > { %3588 = vst [vmem:[%s7524_s21 + $0x20] sm:$0xff] %v3568_v10  ;;  %v4833_v33 = vpop.f32.mrb[111].mxu0  ;;  %v4722_v54 = vadd.f32 %v4721_v37, %v4720_v25  ;;  %v5629_v32 = vpop.eup %5628 }
 0x5c3   : > { %v3431_v34 = vadd.f32 %v4831_v19, %v4719_v14  ;;  %v4834_v1 = vadd.f32 %v4833_v33, %v4832_v39  ;;  %v3034_v49 = vpop.xlane.xlu1 %3033 }
 0x5c4   : > { %5636 = vrcp.f32 %v3034_v49 }
 0x5c5   : > { %v3434_v6 = vadd.f32 %v4834_v1, %v4722_v54  ;;  %v3539_v51 = vmul.f32 %v5619_v3, %v3431_v34  ;;  %v5631_v1 = vpop.eup %5630  ;;  %v3039_v3 = vpop.xlane.xlu0 %3038 }
 0x5c6   : > { %5638 = vrcp.f32 %v3039_v3 }
 0x5c7   : > { %v3540_v50 = vmul.f32 %v5621_v0, %v3434_v6  ;;  %v4723_v4 = vpop.f32.mrb[112].mxu1  ;;  %v4835_v44 = vpop.f32.mrb[112].mxu0 }
 0x5c8   : > { %v4836_v9 = vpop.f32.mrb[113].mxu0  ;;  %v4724_v58 = vpop.f32.mrb[113].mxu1 }
 0x5c9   : > { %v3569_v45 = vpack.c.bf16 %v3540_v50, %v3539_v51  ;;  %v4837_v59 = vadd.f32 %v4836_v9, %v4835_v44  ;;  %v4838_v21 = vpop.f32.mrb[114].mxu0  ;;  %v4725_v56 = vadd.f32 %v4724_v58, %v4723_v4  ;;  %v4726_v60 = vpop.f32.mrb[114].mxu1 }
 0x5ca   : > { %v4839_v7 = vpop.f32.mrb[115].mxu0  ;;  %v4727_v24 = vpop.f32.mrb[115].mxu1 }
 0x5cb   : > { %3589 = vst [vmem:[%s7524_s21 + $0x30] sm:$0xff] %v3569_v45  ;;  %v4840_v13 = vadd.f32 %v4839_v7, %v4838_v21  ;;  %v3439_v55 = vadd.f32 %v4837_v59, %v4725_v56  ;;  %v4728_v5 = vadd.f32 %v4727_v24, %v4726_v60  ;;  %v5633_v0 = vpop.eup %5632  ;;  %v3044_v51 = vpop.xlane.xlu1 %3043 }
 0x5cc   : > { %5640 = vrcp.f32 %v3044_v51 }
 0x5cd   : > { %v3442_v41 = vadd.f32 %v4840_v13, %v4728_v5  ;;  %v3541_v16 = vmul.f32 %v5623_v46, %v3439_v55  ;;  %v5635_v5 = vpop.eup %5634 }
 0x5cf   : > { %v4729_v47 = vpop.f32.mrb[116].mxu1  ;;  %v3542_v57 = vmul.f32 %v5625_v38, %v3442_v41  ;;  %v5637_v41 = vpop.eup %5636 }
 0x5d0   : > { %v4841_v17 = vpop.f32.mrb[116].mxu0  ;;  %v4730_v26 = vpop.f32.mrb[117].mxu1 }
 0x5d1   : > { %v4842_v31 = vpop.f32.mrb[117].mxu0  ;;  %v4731_v48 = vadd.f32 %v4730_v26, %v4729_v47  ;;  %v3570_v12 = vpack.c.bf16 %v3542_v57, %v3541_v16  ;;  %v4732_v40 = vpop.f32.mrb[118].mxu1 }
 0x5d2   : > { %v4843_v23 = vadd.f32 %v4842_v31, %v4841_v17  ;;  %v4844_v28 = vpop.f32.mrb[118].mxu0  ;;  %v4733_v27 = vpop.f32.mrb[119].mxu1 }
 0x5d3   : > { %3590 = vst [vmem:[%s7524_s21 + $0x40] sm:$0xff] %v3570_v12  ;;  %v4734_v11 = vadd.f32 %v4733_v27, %v4732_v40  ;;  %v4845_v53 = vpop.f32.mrb[119].mxu0  ;;  %v3049_v38 = vpop.xlane.xlu0 %3048 }
 0x5d4   : > { %v3447_v18 = vadd.f32 %v4843_v23, %v4731_v48  ;;  %v4846_v52 = vadd.f32 %v4845_v53, %v4844_v28  ;;  %v3054_v47 = vpop.xlane.xlu1 %3053  ;;  %5642 = vrcp.f32 %v3049_v38 }
 0x5d5   : > { %5644 = vrcp.f32 %v3054_v47 }
 0x5d6   : > { %v3450_v8 = vadd.f32 %v4846_v52, %v4734_v11  ;;  %v3543_v36 = vmul.f32 %v5627_v61, %v3447_v18  ;;  %v5639_v52 = vpop.eup %5638 }
 0x5d7   : > { %v5641_v35 = vpop.eup %5640 }
 0x5d8   : > { %v4735_v22 = vpop.f32.mrb[120].mxu1  ;;  %v4847_v2 = vpop.f32.mrb[120].mxu0  ;;  %v3544_v43 = vmul.f32 %v5629_v32, %v3450_v8 }
 0x5d9   : > { %v4848_v42 = vpop.f32.mrb[121].mxu0  ;;  %v4736_v10 = vpop.f32.mrb[121].mxu1 }
 0x5da   : > { %v4849_v20 = vadd.f32 %v4848_v42, %v4847_v2  ;;  %v4850_v62 = vpop.f32.mrb[122].mxu0  ;;  %v3571_v14 = vpack.c.bf16 %v3544_v43, %v3543_v36  ;;  %v4737_v19 = vadd.f32 %v4736_v10, %v4735_v22  ;;  %v4738_v25 = vpop.f32.mrb[122].mxu1 }
 0x5db   : > { %v4851_v39 = vpop.f32.mrb[123].mxu0  ;;  %v4739_v37 = vpop.f32.mrb[123].mxu1 }
 0x5dc   : > { %v4852_v33 = vadd.f32 %v4851_v39, %v4850_v62  ;;  %3591 = vst [vmem:[%s7524_s21 + $0x50] sm:$0xff] %v3571_v14  ;;  %v3455_v34 = vadd.f32 %v4849_v20, %v4737_v19  ;;  %v4740_v54 = vadd.f32 %v4739_v37, %v4738_v25  ;;  %v3059_v8 = vpop.xlane.xlu0 %3058  ;;  %v3064_v32 = vpop.xlane.xlu1 %3063 }
 0x5dd   : > { %5646 = vrcp.f32 %v3059_v8 }
 0x5de   : > { %v3458_v6 = vadd.f32 %v4852_v33, %v4740_v54  ;;  %v3545_v4 = vmul.f32 %v5631_v1, %v3455_v34  ;;  %5648 = vrcp.f32 %v3064_v32  ;;  %v5643_v54 = vpop.eup %5642 }
 0x5df   : > { %v5645_v3 = vpop.eup %5644 }
 0x5e0   : > { %v4741_v50 = vpop.f32.mrb[124].mxu1  ;;  %v3546_v44 = vmul.f32 %v5633_v0, %v3458_v6  ;;  %v3069_v6 = vpop.xlane.xlu0 %3068 }
 0x5e1   : > { %v4853_v63 = vpop.f32.mrb[124].mxu0  ;;  %v4742_v9 = vpop.f32.mrb[125].mxu1  ;;  %5650 = vrcp.f32 %v3069_v6 }
 0x5e2   : > { %v4743_v45 = vadd.f32 %v4742_v9, %v4741_v50  ;;  %v4854_v59 = vpop.f32.mrb[125].mxu0  ;;  %v4744_v58 = vpop.f32.mrb[126].mxu1  ;;  %v3572_v21 = vpack.c.bf16 %v3546_v44, %v3545_v4 }
 0x5e3   : > { %v4855_v56 = vadd.f32 %v4854_v59, %v4853_v63  ;;  %v4856_v60 = vpop.f32.mrb[126].mxu0  ;;  %v4745_v7 = vpop.f32.mrb[127].mxu1 }
 0x5e4   : > { %v4746_v15 = vadd.f32 %v4745_v7, %v4744_v58  ;;  %v4857_v24 = vpop.f32.mrb[127].mxu0  ;;  %3592 = vst [vmem:[%s7524_s21 + $0x60] sm:$0xff] %v3572_v21  ;;  %v3074_v0 = vpop.xlane.xlu1 %3073 }
 0x5e5   : > { %v3463_v13 = vadd.f32 %v4855_v56, %v4743_v45  ;;  %v4858_v55 = vadd.f32 %v4857_v24, %v4856_v60  ;;  %5652 = vrcp.f32 %v3074_v0 }
 0x5e7   : > { %v3466_v46 = vadd.f32 %v4858_v55, %v4746_v15  ;;  %v3547_v16 = vmul.f32 %v5635_v5, %v3463_v13  ;;  %v5647_v55 = vpop.eup %5646 }
 0x5e8   : > { %v3084_v38 = vpop.xlane.xlu1 %3083 }
 0x5e9   : > { %v3548_v57 = vmul.f32 %v5637_v41, %v3466_v46  ;;  %v4747_v17 = vpop.f32.mrb[128].mxu1  ;;  %v4859_v26 = vpop.f32.mrb[128].mxu0 }
 0x5ea   : > { %v4748_v30 = vpop.f32.mrb[129].mxu1  ;;  %v4860_v31 = vpop.f32.mrb[129].mxu0 }
 0x5eb   : > { %v3573_v48 = vpack.c.bf16 %v3548_v57, %v3547_v16  ;;  %v4749_v29 = vadd.f32 %v4748_v30, %v4747_v17  ;;  %v4861_v12 = vadd.f32 %v4860_v31, %v4859_v26  ;;  %v4750_v23 = vpop.f32.mrb[130].mxu1  ;;  %v4862_v40 = vpop.f32.mrb[130].mxu0 }
 0x5ec   : > { %v4751_v28 = vpop.f32.mrb[131].mxu1  ;;  %v4863_v27 = vpop.f32.mrb[131].mxu0 }
 0x5ed   : > { %3593 = vst [vmem:[%s7524_s21 + $0x70] sm:$0xff] %v3573_v48  ;;  %v3471_v18 = vadd.f32 %v4861_v12, %v4749_v29  ;;  %v4752_v11 = vadd.f32 %v4751_v28, %v4750_v23  ;;  %v4864_v53 = vadd.f32 %v4863_v27, %v4862_v40  ;;  %v5649_v46 = vpop.eup %5648  ;;  %v3079_v41 = vpop.xlane.xlu0 %3078 }
 0x5ee   : > { %5654 = vrcp.f32 %v3079_v41  ;;  %v3094_v8 = vpop.xlane.xlu1 %3093 }
 0x5ef   : > { %v3474_v61 = vadd.f32 %v4864_v53, %v4752_v11  ;;  %v3549_v22 = vmul.f32 %v5639_v52, %v3471_v18  ;;  %5656 = vrcp.f32 %v3084_v38  ;;  %v5651_v53 = vpop.eup %5650 }
 0x5f1   : > { %v3550_v2 = vmul.f32 %v5641_v35, %v3474_v61  ;;  %v4753_v49 = vpop.f32.mrb[132].mxu1  ;;  %v5653_v61 = vpop.eup %5652 }
 0x5f2   : > { %v4865_v36 = vpop.f32.mrb[132].mxu0  ;;  %v4754_v43 = vpop.f32.mrb[133].mxu1 }
 0x5f3   : > { %v3574_v42 = vpack.c.bf16 %v3550_v2, %v3549_v22  ;;  %v4755_v20 = vadd.f32 %v4754_v43, %v4753_v49  ;;  %v4866_v10 = vpop.f32.mrb[133].mxu0  ;;  %v4756_v62 = vpop.f32.mrb[134].mxu1 }
 0x5f4   : > { %v4867_v14 = vadd.f32 %v4866_v10, %v4865_v36  ;;  %v4868_v19 = vpop.f32.mrb[134].mxu0  ;;  %v4757_v25 = vpop.f32.mrb[135].mxu1 }
 0x5f5   : > { %3594 = vst [vmem:[%s7524_s21 + $0x80] sm:$0xff] %v3574_v42  ;;  %v4758_v39 = vadd.f32 %v4757_v25, %v4756_v62  ;;  %v4869_v37 = vpop.f32.mrb[135].mxu0  ;;  %v3089_v35 = vpop.xlane.xlu0 %3088 }
 0x5f6   : > { %v3479_v33 = vadd.f32 %v4867_v14, %v4755_v20  ;;  %v4870_v34 = vadd.f32 %v4869_v37, %v4868_v19  ;;  %5658 = vrcp.f32 %v3089_v35  ;;  %v3104_v6 = vpop.xlane.xlu1 %3103 }
 0x5f7   : > { %5660 = vrcp.f32 %v3094_v8 }
 0x5f8   : > { %v3482_v1 = vadd.f32 %v4870_v34, %v4758_v39  ;;  %v3551_v51 = vmul.f32 %v5643_v54, %v3479_v33  ;;  %v5655_v34 = vpop.eup %5654 }
 0x5fa   : > { %v3552_v50 = vmul.f32 %v5645_v3, %v3482_v1  ;;  %v4759_v4 = vpop.f32.mrb[136].mxu1  ;;  %v4871_v44 = vpop.f32.mrb[136].mxu0 }
 0x5fb   : > { %v4760_v63 = vpop.f32.mrb[137].mxu1  ;;  %v4872_v9 = vpop.f32.mrb[137].mxu0 }
 0x5fc   : > { %v3575_v45 = vpack.c.bf16 %v3552_v50, %v3551_v51  ;;  %v4761_v59 = vadd.f32 %v4760_v63, %v4759_v4  ;;  %v4873_v58 = vadd.f32 %v4872_v9, %v4871_v44  ;;  %v4762_v21 = vpop.f32.mrb[138].mxu1  ;;  %v4874_v56 = vpop.f32.mrb[138].mxu0 }
 0x5fd   : > { %v4763_v60 = vpop.f32.mrb[139].mxu1  ;;  %v4875_v7 = vpop.f32.mrb[139].mxu0 }
 0x5fe   : > { %3595 = vst [vmem:[%s7524_s21 + $0x90] sm:$0xff] %v3575_v45  ;;  %v3487_v15 = vadd.f32 %v4873_v58, %v4761_v59  ;;  %v4764_v24 = vadd.f32 %v4763_v60, %v4762_v21  ;;  %v4876_v13 = vadd.f32 %v4875_v7, %v4874_v56  ;;  %v5657_v1 = vpop.eup %5656  ;;  %v3099_v3 = vpop.xlane.xlu0 %3098 }
 0x5ff   : > { %5662 = vrcp.f32 %v3099_v3  ;;  %v3114_v41 = vpop.xlane.xlu1 %3113  ;;  %v5670_v3 = vld [vmem:[#allocation10 + $0x4] ss:$8 sps:$4 sm:$0xff] (!%p4428_p3)  }
 0x600   : > { %v3490_v5 = vadd.f32 %v4876_v13, %v4764_v24  ;;  %v3553_v47 = vmul.f32 %v5647_v55, %v3487_v15  ;;  %5664 = vrcp.f32 %v3104_v6  ;;  %v5659_v13 = vpop.eup %5658  ;;  %v5672_v6 = vld [vmem:[#allocation10] ss:$8 sps:$4 sm:$0xff] (!%p4428_p3)   ;;  %3842 = vmatprep.subr.bf16.mxu0 (!%p4428_p3), %v5670_v3  ;;  %4955 = vmatprep.subr.bf16.mxu1 (!%p4428_p3), %v5670_v3  ;;  %v3672_v3 = vlaneseq (!%p4428_p3) }
 0x601   : > { %3843 = vmatpush1.bf16.msra.mxu0 (!%p4428_p3), %v5672_v6  ;;  %4971 = vmatpush1.bf16.msra.mxu1 (!%p4428_p3), %v5672_v6 }
 0x602   : > { %v3554_v16 = vmul.f32 %v5649_v46, %v3490_v5  ;;  %v4765_v57 = vpop.f32.mrb[140].mxu1  ;;  %v3109_v55 = vpop.xlane.xlu0 %3108  ;;  %v3673_v6 = vshrl.u32 (!%p4428_p3), %v3672_v3, 7 }
 0x603   : > { %v4877_v17 = vpop.f32.mrb[140].mxu0  ;;  %v4766_v26 = vpop.f32.mrb[141].mxu1  ;;  %5666 = vrcp.f32 %v3109_v55  ;;  %v5696_v55 = vld [vmem:[#allocation10 + $0x80] ss:$8 sps:$4 sm:$0xff] (!%p4428_p3)  }
 0x604   : > { %v3576_v30 = vpack.c.bf16 %v3554_v16, %v3553_v47  ;;  %v4767_v31 = vadd.f32 %v4766_v26, %v4765_v57  ;;  %v4878_v48 = vpop.f32.mrb[141].mxu0  ;;  %v4768_v29 = vpop.f32.mrb[142].mxu1  ;;  %5668 = vrcp.f32 %v3114_v41  ;;  %v5700_v41 = vld [vmem:[#allocation10 + $0xa4] ss:$8 sps:$4 sm:$0xff] (!%p4428_p3)  }
 0x605   : > { %v4879_v12 = vadd.f32 %v4878_v48, %v4877_v17  ;;  %v4880_v23 = vpop.f32.mrb[142].mxu0  ;;  %v4769_v40 = vpop.f32.mrb[143].mxu1 }
 0x606   : > { %3596 = vst [vmem:[%s7524_s21 + $0xa0] sm:$0xff] %v3576_v30  ;;  %v4770_v28 = vadd.f32 %v4769_v40, %v4768_v29  ;;  %v4881_v27 = vpop.f32.mrb[143].mxu0  ;;  %v5661_v46 = vpop.eup %5660 }
 0x607   : > { %v3495_v18 = vadd.f32 %v4879_v12, %v4767_v31  ;;  %v4882_v11 = vadd.f32 %v4881_v27, %v4880_v23 }
 0x609   : > { %v3498_v52 = vadd.f32 %v4882_v11, %v4770_v28  ;;  %v3555_v32 = vmul.f32 %v5651_v53, %v3495_v18  ;;  %v5663_v11 = vpop.eup %5662 }
 0x60b   : > { %v3556_v22 = vmul.f32 %v5653_v61, %v3498_v52  ;;  %v4771_v2 = vpop.f32.mrb[144].mxu1  ;;  %v4883_v49 = vpop.f32.mrb[144].mxu0 }
 0x60c   : > { %v4772_v36 = vpop.f32.mrb[145].mxu1  ;;  %v4884_v43 = vpop.f32.mrb[145].mxu0 }
 0x60d   : > { %v3577_v42 = vpack.c.bf16 %v3556_v22, %v3555_v32  ;;  %v4773_v20 = vadd.f32 %v4772_v36, %v4771_v2  ;;  %v4885_v10 = vadd.f32 %v4884_v43, %v4883_v49  ;;  %v4774_v62 = vpop.f32.mrb[146].mxu1  ;;  %v4886_v14 = vpop.f32.mrb[146].mxu0 }
 0x60e   : > { %v4775_v19 = vpop.f32.mrb[147].mxu1  ;;  %v4887_v25 = vpop.f32.mrb[147].mxu0 }
 0x60f   : > { %3597 = vst [vmem:[%s7524_s21 + $0xb0] sm:$0xff] %v3577_v42  ;;  %v3503_v39 = vadd.f32 %v4885_v10, %v4773_v20  ;;  %v4776_v37 = vadd.f32 %v4775_v19, %v4774_v62  ;;  %v4888_v33 = vadd.f32 %v4887_v25, %v4886_v14  ;;  %v5665_v52 = vpop.eup %5664 }
 0x611   : > { %v3506_v54 = vadd.f32 %v4888_v33, %v4776_v37  ;;  %v3557_v0 = vmul.f32 %v5655_v34, %v3503_v39  ;;  %v5667_v39 = vpop.eup %5666 }
 0x612   : > { %v5669_v33 = vpop.eup %5668 }
 0x613   : > { %v3558_v51 = vmul.f32 %v5657_v1, %v3506_v54  ;;  %v4777_v50 = vpop.f32.mrb[148].mxu1 }
 0x614   : > { %v4889_v4 = vpop.f32.mrb[148].mxu0  ;;  %v4778_v44 = vpop.f32.mrb[149].mxu1 }
 0x615   : > { %v3578_v63 = vpack.c.bf16 %v3558_v51, %v3557_v0  ;;  %v4779_v9 = vadd.f32 %v4778_v44, %v4777_v50  ;;  %v4890_v45 = vpop.f32.mrb[149].mxu0  ;;  %v4780_v59 = vpop.f32.mrb[150].mxu1  ;;  %v5673_v0 = vld [vmem:[#allocation10 + $0x14] ss:$8 sps:$4 sm:$0xff] (!%p4428_p3)   ;;  %v5675_v51 = vld [vmem:[#allocation10 + $0x10] ss:$8 sps:$4 sm:$0xff] (!%p4428_p3)  }
 0x616   : > { %v4891_v58 = vadd.f32 %v4890_v45, %v4889_v4  ;;  %v4892_v21 = vpop.f32.mrb[150].mxu0  ;;  %v4781_v56 = vpop.f32.mrb[151].mxu1  ;;  %3844 = vmatprep.subr.bf16.mxu0 (!%p4428_p3), %v5673_v0  ;;  %4956 = vmatprep.subr.bf16.mxu1 (!%p4428_p3), %v5673_v0  ;;  %v5676_v50 = vld [vmem:[#allocation10 + $0x24] ss:$8 sps:$4 sm:$0xff] (!%p4428_p3)   ;;  %v5678_v4 = vld [vmem:[#allocation10 + $0x20] ss:$8 sps:$4 sm:$0xff] (!%p4428_p3)  }
 0x617   : > { %3598 = vst [vmem:[%s7524_s21 + $0xc0] sm:$0xff] %v3578_v63  ;;  %v4782_v60 = vadd.f32 %v4781_v56, %v4780_v59  ;;  %v4893_v7 = vpop.f32.mrb[151].mxu0  ;;  %3845 = vmatpush1.bf16.msra.mxu0 (!%p4428_p3), %v5675_v51  ;;  %4972 = vmatpush1.bf16.msra.mxu1 (!%p4428_p3), %v5675_v51  ;;  %v5679_v44 = vld [vmem:[#allocation10 + $0x34] ss:$8 sps:$4 sm:$0xff] (!%p4428_p3)   ;;  %v5681_v63 = vld [vmem:[#allocation10 + $0x30] ss:$8 sps:$4 sm:$0xff] (!%p4428_p3)  }
 0x618   : > { %v3511_v15 = vadd.f32 %v4891_v58, %v4779_v9  ;;  %v4894_v24 = vadd.f32 %v4893_v7, %v4892_v21  ;;  %3846 = vmatprep.subr.bf16.mxu0 (!%p4428_p3), %v5676_v50  ;;  %4957 = vmatprep.subr.bf16.mxu1 (!%p4428_p3), %v5676_v50  ;;  %v5682_v9 = vld [vmem:[#allocation10 + $0x44] ss:$8 sps:$4 sm:$0xff] (!%p4428_p3)   ;;  %v5684_v45 = vld [vmem:[#allocation10 + $0x40] ss:$8 sps:$4 sm:$0xff] (!%p4428_p3)   ;;  %v5685_v59 = vld [vmem:[#allocation10 + $0x54] ss:$8 sps:$4 sm:$0xff] (!%p4428_p3)  }
 0x619   : > { %v5687_v58 = vld [vmem:[#allocation10 + $0x50] ss:$8 sps:$4 sm:$0xff] (!%p4428_p3)   ;;  %v5688_v21 = vld [vmem:[#allocation10 + $0x64] ss:$8 sps:$4 sm:$0xff] (!%p4428_p3)   ;;  %v5690_v7 = vld [vmem:[#allocation10 + $0x60] ss:$8 sps:$4 sm:$0xff] (!%p4428_p3)  }
 0x61a   : > { %v3514_v5 = vadd.f32 %v4894_v24, %v4782_v60  ;;  %v3559_v47 = vmul.f32 %v5659_v13, %v3511_v15  ;;  %v5691_v15 = vld [vmem:[#allocation10 + $0x74] ss:$8 sps:$4 sm:$0xff] (!%p4428_p3)   ;;  %v5693_v24 = vld [vmem:[#allocation10 + $0x70] ss:$8 sps:$4 sm:$0xff] (!%p4428_p3)   ;;  %v5694_v13 = vld [vmem:[#allocation10 + $0x84] ss:$8 sps:$4 sm:$0xff] (!%p4428_p3)  }
 0x61b   : > { %v4783_v38 = vpop.f32.mrb[152].mxu1  ;;  %3847 = vmatpush1.bf16.msra.mxu0 (!%p4428_p3), %v5678_v4  ;;  %4973 = vmatpush1.bf16.msra.mxu1 (!%p4428_p3), %v5678_v4  ;;  %v3674_v0 = vsub.s32 (!%p4428_p3), 0, %v3673_v6  ;;  %v3670_v51 = vld [vmem:[%s8051_s6] sm:$0x3] (!%p4428_p3)  ;;  %v3678_v50 = vsub.s32 (!%p4428_p3), 1, %v3673_v6 }
 0x61c   : > { %v3560_v16 = vmul.f32 %v5661_v46, %v3514_v5  ;;  %v4895_v57 = vpop.f32.mrb[152].mxu0  ;;  %v4784_v17 = vpop.f32.mrb[153].mxu1  ;;  %3848 = vmatprep.subr.bf16.mxu0 (!%p4428_p3), %v5679_v44  ;;  %4958 = vmatprep.subr.bf16.mxu1 (!%p4428_p3), %v5679_v44  ;;  %v5697_v5 = vld [vmem:[#allocation10 + $0x94] ss:$8 sps:$4 sm:$0xff] (!%p4428_p3)   ;;  %v5699_v46 = vld [vmem:[#allocation10 + $0x90] ss:$8 sps:$4 sm:$0xff] (!%p4428_p3)  }
 0x61d   : > { %v4785_v26 = vadd.f32 %v4784_v17, %v4783_v38  ;;  %v4896_v30 = vpop.f32.mrb[153].mxu0  ;;  %v4786_v31 = vpop.f32.mrb[154].mxu1  ;;  %v5702_v38 = vld [vmem:[#allocation10 + $0xa0] ss:$8 sps:$4 sm:$0xff] (!%p4428_p3)   ;;  %v7546_v4 = vrot.slane (!%p4428_p3), %v3670_v51, %v3674_v0  ;;  %v7548_v44 = vrot.slane (!%p4428_p3), %v3670_v51, %v3678_v50 }
 0x61e   : > { %v3579_v48 = vpack.c.bf16 %v3560_v16, %v3559_v47  ;;  %v4897_v29 = vadd.f32 %v4896_v30, %v4895_v57  ;;  %v4898_v12 = vpop.f32.mrb[154].mxu0  ;;  %v4787_v23 = vpop.f32.mrb[155].mxu1  ;;  %v5703_v47 = vld [vmem:[#allocation10 + $0xb4] ss:$8 sps:$4 sm:$0xff] (!%p4428_p3)   ;;  %v5705_v16 = vld [vmem:[#allocation10 + $0xb0] ss:$8 sps:$4 sm:$0xff] (!%p4428_p3)  }
 0x61f   : > { %v4788_v40 = vadd.f32 %v4787_v23, %v4786_v31  ;;  %v4899_v28 = vpop.f32.mrb[155].mxu0  ;;  %3849 = vmatpush1.bf16.msra.mxu0 (!%p4428_p3), %v5681_v63  ;;  %4974 = vmatpush1.bf16.msra.mxu1 (!%p4428_p3), %v5681_v63  ;;  %v5706_v57 = vld [vmem:[#allocation10 + $0xc4] ss:$8 sps:$4 sm:$0xff] (!%p4428_p3)   ;;  %v5708_v17 = vld [vmem:[#allocation10 + $0xc0] ss:$8 sps:$4 sm:$0xff] (!%p4428_p3)  }
 0x620   : > { %3599 = vst [vmem:[%s7524_s21 + $0xd0] sm:$0xff] %v3579_v48  ;;  %v3519_v27 = vadd.f32 %v4897_v29, %v4785_v26  ;;  %v4900_v18 = vadd.f32 %v4899_v28, %v4898_v12  ;;  %3850 = vmatprep.subr.bf16.mxu0 (!%p4428_p3), %v5682_v9  ;;  %4959 = vmatprep.subr.bf16.mxu1 (!%p4428_p3), %v5682_v9  ;;  %v5709_v26 = vld [vmem:[#allocation10 + $0xd4] ss:$8 sps:$4 sm:$0xff] (!%p4428_p3)   ;;  %v5711_v30 = vld [vmem:[#allocation10 + $0xd0] ss:$8 sps:$4 sm:$0xff] (!%p4428_p3)  }
 0x621   : > { %v5712_v31 = vld [vmem:[#allocation10 + $0xe4] ss:$8 sps:$4 sm:$0xff] (!%p4428_p3)   ;;  %v5714_v48 = vld [vmem:[#allocation10 + $0xe0] ss:$8 sps:$4 sm:$0xff] (!%p4428_p3)   ;;  %v5715_v29 = vld [vmem:[#allocation10 + $0xf4] ss:$8 sps:$4 sm:$0xff] (!%p4428_p3)  }
 0x622   : > { %v3522_v53 = vadd.f32 %v4900_v18, %v4788_v40  ;;  %v3561_v35 = vmul.f32 %v5663_v11, %v3519_v27  ;;  %v5717_v12 = vld [vmem:[#allocation10 + $0xf0] ss:$8 sps:$4 sm:$0xff] (!%p4428_p3)  }
 0x623   : > { %v4789_v61 = vpop.f32.mrb[156].mxu1  ;;  %3851 = vmatpush1.bf16.msra.mxu0 (!%p4428_p3), %v5684_v45  ;;  %4975 = vmatpush1.bf16.msra.mxu1 (!%p4428_p3), %v5684_v45 }
 0x624   : > { %v3562_v8 = vmul.f32 %v5665_v52, %v3522_v53  ;;  %v4901_v32 = vpop.f32.mrb[156].mxu0  ;;  %v4790_v22 = vpop.f32.mrb[157].mxu1  ;;  %3852 = vmatprep.subr.bf16.mxu0 (!%p4428_p3), %v5685_v59  ;;  %4960 = vmatprep.subr.bf16.mxu1 (!%p4428_p3), %v5685_v59 }
 0x625   : > { %v4791_v2 = vadd.f32 %v4790_v22, %v4789_v61  ;;  %v4902_v49 = vpop.f32.mrb[157].mxu0  ;;  %v4792_v36 = vpop.f32.mrb[158].mxu1 }
 0x626   : > { %v3580_v43 = vpack.c.bf16 %v3562_v8, %v3561_v35  ;;  %v4903_v42 = vadd.f32 %v4902_v49, %v4901_v32  ;;  %v4904_v20 = vpop.f32.mrb[158].mxu0  ;;  %v4793_v10 = vpop.f32.mrb[159].mxu1 }
 0x627   : > { %v4794_v62 = vadd.f32 %v4793_v10, %v4792_v36  ;;  %v4905_v14 = vpop.f32.mrb[159].mxu0  ;;  %3853 = vmatpush1.bf16.msra.mxu0 (!%p4428_p3), %v5687_v58  ;;  %4976 = vmatpush1.bf16.msra.mxu1 (!%p4428_p3), %v5687_v58 }
 0x628   : > { %3600 = vst [vmem:[%s7524_s21 + $0xe0] sm:$0xff] %v3580_v43  ;;  %v3527_v19 = vadd.f32 %v4903_v42, %v4791_v2  ;;  %v4906_v25 = vadd.f32 %v4905_v14, %v4904_v20  ;;  %3854 = vmatprep.subr.bf16.mxu0 (!%p4428_p3), %v5688_v21  ;;  %4961 = vmatprep.subr.bf16.mxu1 (!%p4428_p3), %v5688_v21 }
 0x62a   : > { %v3530_v37 = vadd.f32 %v4906_v25, %v4794_v62  ;;  %v3563_v34 = vmul.f32 %v5667_v39, %v3527_v19  ;;  %3605 = sbr.rel (%p4428_p3) target bundleno = 1892 (0x764), region = 72 }
 0x62b   : > { %3855 = vmatpush1.bf16.msra.mxu0 (!%p4428_p3), %v5690_v7  ;;  %4977 = vmatpush1.bf16.msra.mxu1 (!%p4428_p3), %v5690_v7 }
 0x62c   : > { %v3564_v54 = vmul.f32 %v5669_v33, %v3530_v37  ;;  %3856 = vmatprep.subr.bf16.mxu0 (!%p4428_p3), %v5691_v15  ;;  %4962 = vmatprep.subr.bf16.mxu1 (!%p4428_p3), %v5691_v15 }
 0x62e   : > { %v3581_v1 = vpack.c.bf16 %v3564_v54, %v3563_v34 }
 0x62f   : > { %3857 = vmatpush1.bf16.msra.mxu0 (!%p4428_p3), %v5693_v24  ;;  %4978 = vmatpush1.bf16.msra.mxu1 (!%p4428_p3), %v5693_v24 }
 0x630   : > { %3601 = vst [vmem:[%s7524_s21 + $0xf0] sm:$0xff] %v3581_v1  ;;  %3858 = vmatprep.subr.bf16.mxu0 (!%p4428_p3), %v5694_v13  ;;  %4963 = vmatprep.subr.bf16.mxu1 (!%p4428_p3), %v5694_v13 }
 0x633   : > { %3859 = vmatpush1.bf16.msra.mxu0 %v5696_v55  ;;  %4979 = vmatpush1.bf16.msra.mxu1 %v5696_v55 }
 0x634   : > { %3860 = vmatprep.subr.bf16.mxu0 %v5697_v5  ;;  %4964 = vmatprep.subr.bf16.mxu1 %v5697_v5 }
 0x637   : > { %v3607_v56 = vld [vmem:[#allocation3 + $0x8] sm:$0xff]  ;;  %3861 = vmatpush1.bf16.msra.mxu0 %v5699_v46  ;;  %4980 = vmatpush1.bf16.msra.mxu1 %v5699_v46  ;;  %v3606_v23 = vld [vmem:[#allocation3] sm:$0xff]  ;;  %v3609_v28 = vld [vmem:[#allocation3 + $0x18] sm:$0xff] }
 0x638   : > { %v3623_v60 = vld [vmem:[#allocation3 + $0x88] sm:$0xff]  ;;  %3874 = vmatprep.mubr.bf16.mxu0 %v3607_v56  ;;  %3862 = vmatprep.subr.bf16.mxu0 %v5700_v41  ;;  %v3622_v40 = vld [vmem:[#allocation3 + $0x80] sm:$0xff]  ;;  %v3625_v27 = vld [vmem:[#allocation3 + $0x98] sm:$0xff] }
 0x639   : > { %3954 = vmatprep.mubr.bf16.mxu1 %v3623_v60  ;;  %4965 = vmatprep.subr.bf16.mxu1 %v5700_v41  ;;  %v3608_v18 = vld [vmem:[#allocation3 + $0x10] sm:$0xff]  ;;  %v3611_v53 = vld [vmem:[#allocation3 + $0x28] sm:$0xff]  ;;  %v3610_v61 = vld [vmem:[#allocation3 + $0x20] sm:$0xff] }
 0x63a   : > { %v3624_v11 = vld [vmem:[#allocation3 + $0x90] sm:$0xff]  ;;  %v3627_v52 = vld [vmem:[#allocation3 + $0xa8] sm:$0xff]  ;;  %v3626_v35 = vld [vmem:[#allocation3 + $0xa0] sm:$0xff] }
 0x63b   : > { %3863 = vmatpush1.bf16.msra.mxu0 %v5702_v38  ;;  %4981 = vmatpush1.bf16.msra.mxu1 %v5702_v38  ;;  %v3613_v8 = vld [vmem:[#allocation3 + $0x38] sm:$0xff]  ;;  %v3612_v22 = vld [vmem:[#allocation3 + $0x30] sm:$0xff]  ;;  %v3615_v49 = vld [vmem:[#allocation3 + $0x48] sm:$0xff] }
 0x63c   : > { %3864 = vmatprep.subr.bf16.mxu0 %v5703_v47  ;;  %4966 = vmatprep.subr.bf16.mxu1 %v5703_v47  ;;  %v3629_v32 = vld [vmem:[#allocation3 + $0xb8] sm:$0xff]  ;;  %v3628_v2 = vld [vmem:[#allocation3 + $0xb0] sm:$0xff]  ;;  %v3631_v36 = vld [vmem:[#allocation3 + $0xc8] sm:$0xff] }
 0x63d   : > { %v3614_v43 = vld [vmem:[#allocation3 + $0x40] sm:$0xff]  ;;  %v3617_v20 = vld [vmem:[#allocation3 + $0x58] sm:$0xff]  ;;  %v3616_v62 = vld [vmem:[#allocation3 + $0x50] sm:$0xff] }
 0x63e   : > { %v3630_v42 = vld [vmem:[#allocation3 + $0xc0] sm:$0xff]  ;;  %v3633_v10 = vld [vmem:[#allocation3 + $0xd8] sm:$0xff]  ;;  %v3632_v14 = vld [vmem:[#allocation3 + $0xd0] sm:$0xff] }
 0x63f   : > { %3865 = vmatpush1.bf16.msra.mxu0 %v5705_v16  ;;  %4982 = vmatpush1.bf16.msra.mxu1 %v5705_v16  ;;  %v3619_v19 = vld [vmem:[#allocation3 + $0x68] sm:$0xff]  ;;  %v3618_v39 = vld [vmem:[#allocation3 + $0x60] sm:$0xff]  ;;  %v3621_v33 = vld [vmem:[#allocation3 + $0x78] sm:$0xff] }
 0x640   : > { %3866 = vmatprep.subr.bf16.mxu0 %v5706_v57  ;;  %4967 = vmatprep.subr.bf16.mxu1 %v5706_v57  ;;  %v3635_v25 = vld [vmem:[#allocation3 + $0xe8] sm:$0xff]  ;;  %v3634_v37 = vld [vmem:[#allocation3 + $0xe0] sm:$0xff]  ;;  %v3637_v34 = vld [vmem:[#allocation3 + $0xf8] sm:$0xff] }
 0x641   : > { %v3620_v54 = vld [vmem:[#allocation3 + $0x70] sm:$0xff] }
 0x642   : > { %v3636_v1 = vld [vmem:[#allocation3 + $0xf0] sm:$0xff] }
 0x643   : > { %3867 = vmatpush1.bf16.msra.mxu0 %v5708_v17  ;;  %4983 = vmatpush1.bf16.msra.mxu1 %v5708_v17 }
 0x644   : > { %3868 = vmatprep.subr.bf16.mxu0 %v5709_v26  ;;  %4968 = vmatprep.subr.bf16.mxu1 %v5709_v26 }
 0x647   : > { %3869 = vmatpush1.bf16.msra.mxu0 %v5711_v30  ;;  %4984 = vmatpush1.bf16.msra.mxu1 %v5711_v30 }
 0x648   : > { %3870 = vmatprep.subr.bf16.mxu0 %v5712_v31  ;;  %4969 = vmatprep.subr.bf16.mxu1 %v5712_v31 }
 0x64b   : > { %3871 = vmatpush1.bf16.msra.mxu0 %v5714_v48  ;;  %4985 = vmatpush1.bf16.msra.mxu1 %v5714_v48 }
 0x64c   : > { %3872 = vmatprep.subr.bf16.mxu0 %v5715_v29  ;;  %4970 = vmatprep.subr.bf16.mxu1 %v5715_v29 }
 0x64f   : > { %3873 = vmatpush1.bf16.msra.mxu0 %v5717_v12  ;;  %4986 = vmatpush1.bf16.msra.mxu1 %v5717_v12 }
 0x652   : > { %3875 = vmatmul.mubr.bf16.vlgmr.msra.gmra.mrb[0].mxu0 %v3606_v23  ;;  %3955 = vmatmul.mubr.bf16.vlgmr.msra.gmra.mrb[0].mxu1 %v3622_v40 }
 0x653   : > { %3884 = vmatprep.mubr.bf16.mxu0 %v3609_v28  ;;  %3964 = vmatprep.mubr.bf16.mxu1 %v3625_v27 }
 0x65a   : > { %3885 = vmatmul.mubr.bf16.gmra.mrb[4].mxu0 %v3608_v18  ;;  %3965 = vmatmul.mubr.bf16.gmra.mrb[4].mxu1 %v3624_v11 }
 0x65b   : > { %3894 = vmatprep.mubr.bf16.mxu0 %v3611_v53  ;;  %3974 = vmatprep.mubr.bf16.mxu1 %v3627_v52 }
 0x662   : > { %3895 = vmatmul.mubr.bf16.gmra.mrb[8].mxu0 %v3610_v61  ;;  %3975 = vmatmul.mubr.bf16.gmra.mrb[8].mxu1 %v3626_v35 }
 0x663   : > { %3904 = vmatprep.mubr.bf16.mxu0 %v3613_v8  ;;  %3984 = vmatprep.mubr.bf16.mxu1 %v3629_v32 }
 0x66a   : > { %3905 = vmatmul.mubr.bf16.gmra.mrb[12].mxu0 %v3612_v22  ;;  %3985 = vmatmul.mubr.bf16.gmra.mrb[12].mxu1 %v3628_v2 }
 0x66b   : > { %3914 = vmatprep.mubr.bf16.mxu0 %v3615_v49  ;;  %3994 = vmatprep.mubr.bf16.mxu1 %v3631_v36 }
 0x672   : > { %3915 = vmatmul.mubr.bf16.gmra.mrb[16].mxu0 %v3614_v43  ;;  %3995 = vmatmul.mubr.bf16.gmra.mrb[16].mxu1 %v3630_v42 }
 0x673   : > { %3924 = vmatprep.mubr.bf16.mxu0 %v3617_v20  ;;  %4004 = vmatprep.mubr.bf16.mxu1 %v3633_v10 }
 0x67a   : > { %3925 = vmatmul.mubr.bf16.gmra.mrb[20].mxu0 %v3616_v62  ;;  %4005 = vmatmul.mubr.bf16.gmra.mrb[20].mxu1 %v3632_v14 }
 0x67b   : > { %3934 = vmatprep.mubr.bf16.mxu0 %v3619_v19  ;;  %4014 = vmatprep.mubr.bf16.mxu1 %v3635_v25 }
 0x682   : > { %3935 = vmatmul.mubr.bf16.gmra.mrb[24].mxu0 %v3618_v39  ;;  %4015 = vmatmul.mubr.bf16.gmra.mrb[24].mxu1 %v3634_v37 }
 0x683   : > { %3944 = vmatprep.mubr.bf16.mxu0 %v3621_v33  ;;  %4024 = vmatprep.mubr.bf16.mxu1 %v3637_v34 }
 0x68a   : > { %3945 = vmatmul.mubr.bf16.gmra.mrb[28].mxu0 %v3620_v54  ;;  %4025 = vmatmul.mubr.bf16.gmra.mrb[28].mxu1 %v3636_v1 }
 0x725   : > { %v3876_v63 = vpop.f32.mrb[0].mxu0  ;;  %v3956_v9 = vpop.f32.mrb[0].mxu1 }
 0x726   : > { %v3877_v45 = vadd.f32 %v3876_v63, %v7546_v4  ;;  %v3957_v59 = vadd.f32 %v3956_v9, %v7546_v4  ;;  %v3878_v58 = vpop.f32.mrb[1].mxu0  ;;  %v3958_v21 = vpop.f32.mrb[1].mxu1 }
 0x727   : > { %v3879_v56 = vadd.f32 %v3878_v58, %v7548_v44  ;;  %v3959_v60 = vadd.f32 %v3958_v21, %v7548_v44  ;;  %v3880_v7 = vpop.f32.mrb[2].mxu0  ;;  %v3960_v15 = vpop.f32.mrb[2].mxu1 }
 0x728   : > { %4035 = vst [vmem:[%s6307_s15] sm:$0xff] %v3877_v45  ;;  %4067 = vst [vmem:[%s6307_s15 + $0x100] sm:$0xff] %v3957_v59  ;;  %v3881_v24 = vadd.f32 %v3880_v7, %v7546_v4  ;;  %v3961_v13 = vadd.f32 %v3960_v15, %v7546_v4  ;;  %v3882_v55 = vpop.f32.mrb[3].mxu0  ;;  %v3962_v5 = vpop.f32.mrb[3].mxu1 }
 0x729   : > { %4036 = vst [vmem:[%s6307_s15 + $0x8] sm:$0xff] %v3879_v56  ;;  %4068 = vst [vmem:[%s6307_s15 + $0x108] sm:$0xff] %v3959_v60  ;;  %v3883_v46 = vadd.f32 %v3882_v55, %v7548_v44  ;;  %v3963_v41 = vadd.f32 %v3962_v5, %v7548_v44 }
 0x72a   : > { %4037 = vst [vmem:[%s6307_s15 + $0x10] sm:$0xff] %v3881_v24  ;;  %4069 = vst [vmem:[%s6307_s15 + $0x110] sm:$0xff] %v3961_v13 }
 0x72b   : > { %4038 = vst [vmem:[%s6307_s15 + $0x18] sm:$0xff] %v3883_v46  ;;  %4070 = vst [vmem:[%s6307_s15 + $0x118] sm:$0xff] %v3963_v41 }
 0x72d   : > { %v3886_v38 = vpop.f32.mrb[4].mxu0  ;;  %v3966_v47 = vpop.f32.mrb[4].mxu1 }
 0x72e   : > { %v3887_v16 = vadd.f32 %v3886_v38, %v7546_v4  ;;  %v3967_v57 = vadd.f32 %v3966_v47, %v7546_v4  ;;  %v3888_v17 = vpop.f32.mrb[5].mxu0  ;;  %v3968_v26 = vpop.f32.mrb[5].mxu1 }
 0x72f   : > { %v3889_v30 = vadd.f32 %v3888_v17, %v7548_v44  ;;  %v3969_v31 = vadd.f32 %v3968_v26, %v7548_v44  ;;  %v3890_v48 = vpop.f32.mrb[6].mxu0  ;;  %v3970_v29 = vpop.f32.mrb[6].mxu1 }
 0x730   : > { %4039 = vst [vmem:[%s6307_s15 + $0x20] sm:$0xff] %v3887_v16  ;;  %4071 = vst [vmem:[%s6307_s15 + $0x120] sm:$0xff] %v3967_v57  ;;  %v3891_v12 = vadd.f32 %v3890_v48, %v7546_v4  ;;  %v3971_v23 = vadd.f32 %v3970_v29, %v7546_v4  ;;  %v3892_v40 = vpop.f32.mrb[7].mxu0  ;;  %v3972_v28 = vpop.f32.mrb[7].mxu1 }
 0x731   : > { %4040 = vst [vmem:[%s6307_s15 + $0x28] sm:$0xff] %v3889_v30  ;;  %4072 = vst [vmem:[%s6307_s15 + $0x128] sm:$0xff] %v3969_v31  ;;  %v3893_v27 = vadd.f32 %v3892_v40, %v7548_v44  ;;  %v3973_v18 = vadd.f32 %v3972_v28, %v7548_v44 }
 0x732   : > { %4041 = vst [vmem:[%s6307_s15 + $0x30] sm:$0xff] %v3891_v12  ;;  %4073 = vst [vmem:[%s6307_s15 + $0x130] sm:$0xff] %v3971_v23 }
 0x733   : > { %4042 = vst [vmem:[%s6307_s15 + $0x38] sm:$0xff] %v3893_v27  ;;  %4074 = vst [vmem:[%s6307_s15 + $0x138] sm:$0xff] %v3973_v18 }
 0x735   : > { %v3896_v11 = vpop.f32.mrb[8].mxu0  ;;  %v3976_v53 = vpop.f32.mrb[8].mxu1 }
 0x736   : > { %v3897_v52 = vadd.f32 %v3896_v11, %v7546_v4  ;;  %v3977_v61 = vadd.f32 %v3976_v53, %v7546_v4  ;;  %v3898_v35 = vpop.f32.mrb[9].mxu0  ;;  %v3978_v8 = vpop.f32.mrb[9].mxu1 }
 0x737   : > { %v3899_v32 = vadd.f32 %v3898_v35, %v7548_v44  ;;  %v3979_v22 = vadd.f32 %v3978_v8, %v7548_v44  ;;  %v3900_v2 = vpop.f32.mrb[10].mxu0  ;;  %v3980_v49 = vpop.f32.mrb[10].mxu1 }
 0x738   : > { %4043 = vst [vmem:[%s6307_s15 + $0x40] sm:$0xff] %v3897_v52  ;;  %4075 = vst [vmem:[%s6307_s15 + $0x140] sm:$0xff] %v3977_v61  ;;  %v3901_v36 = vadd.f32 %v3900_v2, %v7546_v4  ;;  %v3981_v43 = vadd.f32 %v3980_v49, %v7546_v4  ;;  %v3902_v42 = vpop.f32.mrb[11].mxu0  ;;  %v3982_v20 = vpop.f32.mrb[11].mxu1 }
 0x739   : > { %4044 = vst [vmem:[%s6307_s15 + $0x48] sm:$0xff] %v3899_v32  ;;  %4076 = vst [vmem:[%s6307_s15 + $0x148] sm:$0xff] %v3979_v22  ;;  %v3903_v10 = vadd.f32 %v3902_v42, %v7548_v44  ;;  %v3983_v62 = vadd.f32 %v3982_v20, %v7548_v44 }
 0x73a   : > { %4045 = vst [vmem:[%s6307_s15 + $0x50] sm:$0xff] %v3901_v36  ;;  %4077 = vst [vmem:[%s6307_s15 + $0x150] sm:$0xff] %v3981_v43 }
 0x73b   : > { %4046 = vst [vmem:[%s6307_s15 + $0x58] sm:$0xff] %v3903_v10  ;;  %4078 = vst [vmem:[%s6307_s15 + $0x158] sm:$0xff] %v3983_v62 }
 0x73d   : > { %v3906_v14 = vpop.f32.mrb[12].mxu0  ;;  %v3986_v19 = vpop.f32.mrb[12].mxu1 }
 0x73e   : > { %v3907_v25 = vadd.f32 %v3906_v14, %v7546_v4  ;;  %v3987_v39 = vadd.f32 %v3986_v19, %v7546_v4  ;;  %v3908_v37 = vpop.f32.mrb[13].mxu0  ;;  %v3988_v33 = vpop.f32.mrb[13].mxu1 }
 0x73f   : > { %v3909_v34 = vadd.f32 %v3908_v37, %v7548_v44  ;;  %v3989_v54 = vadd.f32 %v3988_v33, %v7548_v44  ;;  %v3910_v1 = vpop.f32.mrb[14].mxu0  ;;  %v3990_v3 = vpop.f32.mrb[14].mxu1 }
 0x740   : > { %4047 = vst [vmem:[%s6307_s15 + $0x60] sm:$0xff] %v3907_v25  ;;  %4079 = vst [vmem:[%s6307_s15 + $0x160] sm:$0xff] %v3987_v39  ;;  %v3911_v6 = vadd.f32 %v3910_v1, %v7546_v4  ;;  %v3991_v0 = vadd.f32 %v3990_v3, %v7546_v4  ;;  %v3912_v51 = vpop.f32.mrb[15].mxu0  ;;  %v3992_v50 = vpop.f32.mrb[15].mxu1 }
 0x741   : > { %4048 = vst [vmem:[%s6307_s15 + $0x68] sm:$0xff] %v3909_v34  ;;  %4080 = vst [vmem:[%s6307_s15 + $0x168] sm:$0xff] %v3989_v54  ;;  %v3913_v63 = vadd.f32 %v3912_v51, %v7548_v44  ;;  %v3993_v9 = vadd.f32 %v3992_v50, %v7548_v44 }
 0x742   : > { %4049 = vst [vmem:[%s6307_s15 + $0x70] sm:$0xff] %v3911_v6  ;;  %4081 = vst [vmem:[%s6307_s15 + $0x170] sm:$0xff] %v3991_v0 }
 0x743   : > { %4050 = vst [vmem:[%s6307_s15 + $0x78] sm:$0xff] %v3913_v63  ;;  %4082 = vst [vmem:[%s6307_s15 + $0x178] sm:$0xff] %v3993_v9 }
 0x745   : > { %v3916_v45 = vpop.f32.mrb[16].mxu0  ;;  %v3996_v59 = vpop.f32.mrb[16].mxu1 }
 0x746   : > { %v3917_v58 = vadd.f32 %v3916_v45, %v7546_v4  ;;  %v3997_v21 = vadd.f32 %v3996_v59, %v7546_v4  ;;  %v3918_v56 = vpop.f32.mrb[17].mxu0  ;;  %v3998_v60 = vpop.f32.mrb[17].mxu1 }
 0x747   : > { %v3919_v7 = vadd.f32 %v3918_v56, %v7548_v44  ;;  %v3999_v15 = vadd.f32 %v3998_v60, %v7548_v44  ;;  %v3920_v24 = vpop.f32.mrb[18].mxu0  ;;  %v4000_v13 = vpop.f32.mrb[18].mxu1 }
 0x748   : > { %4051 = vst [vmem:[%s6307_s15 + $0x80] sm:$0xff] %v3917_v58  ;;  %4083 = vst [vmem:[%s6307_s15 + $0x180] sm:$0xff] %v3997_v21  ;;  %v3921_v55 = vadd.f32 %v3920_v24, %v7546_v4  ;;  %v4001_v5 = vadd.f32 %v4000_v13, %v7546_v4  ;;  %v3922_v46 = vpop.f32.mrb[19].mxu0  ;;  %v4002_v41 = vpop.f32.mrb[19].mxu1 }
 0x749   : > { %4052 = vst [vmem:[%s6307_s15 + $0x88] sm:$0xff] %v3919_v7  ;;  %4084 = vst [vmem:[%s6307_s15 + $0x188] sm:$0xff] %v3999_v15  ;;  %v3923_v38 = vadd.f32 %v3922_v46, %v7548_v44  ;;  %v4003_v47 = vadd.f32 %v4002_v41, %v7548_v44 }
 0x74a   : > { %4053 = vst [vmem:[%s6307_s15 + $0x90] sm:$0xff] %v3921_v55  ;;  %4085 = vst [vmem:[%s6307_s15 + $0x190] sm:$0xff] %v4001_v5 }
 0x74b   : > { %4054 = vst [vmem:[%s6307_s15 + $0x98] sm:$0xff] %v3923_v38  ;;  %4086 = vst [vmem:[%s6307_s15 + $0x198] sm:$0xff] %v4003_v47 }
 0x74d   : > { %v3926_v16 = vpop.f32.mrb[20].mxu0  ;;  %v4006_v57 = vpop.f32.mrb[20].mxu1 }
 0x74e   : > { %v3927_v17 = vadd.f32 %v3926_v16, %v7546_v4  ;;  %v4007_v26 = vadd.f32 %v4006_v57, %v7546_v4  ;;  %v3928_v30 = vpop.f32.mrb[21].mxu0  ;;  %v4008_v31 = vpop.f32.mrb[21].mxu1 }
 0x74f   : > { %v3929_v48 = vadd.f32 %v3928_v30, %v7548_v44  ;;  %v4009_v29 = vadd.f32 %v4008_v31, %v7548_v44  ;;  %v3930_v12 = vpop.f32.mrb[22].mxu0  ;;  %v4010_v23 = vpop.f32.mrb[22].mxu1 }
 0x750   : > { %4055 = vst [vmem:[%s6307_s15 + $0xa0] sm:$0xff] %v3927_v17  ;;  %4087 = vst [vmem:[%s6307_s15 + $0x1a0] sm:$0xff] %v4007_v26  ;;  %v3931_v40 = vadd.f32 %v3930_v12, %v7546_v4  ;;  %v4011_v28 = vadd.f32 %v4010_v23, %v7546_v4  ;;  %v3932_v27 = vpop.f32.mrb[23].mxu0  ;;  %v4012_v18 = vpop.f32.mrb[23].mxu1 }
 0x751   : > { %4056 = vst [vmem:[%s6307_s15 + $0xa8] sm:$0xff] %v3929_v48  ;;  %4088 = vst [vmem:[%s6307_s15 + $0x1a8] sm:$0xff] %v4009_v29  ;;  %v3933_v11 = vadd.f32 %v3932_v27, %v7548_v44  ;;  %v4013_v53 = vadd.f32 %v4012_v18, %v7548_v44 }
 0x752   : > { %4057 = vst [vmem:[%s6307_s15 + $0xb0] sm:$0xff] %v3931_v40  ;;  %4089 = vst [vmem:[%s6307_s15 + $0x1b0] sm:$0xff] %v4011_v28 }
 0x753   : > { %4058 = vst [vmem:[%s6307_s15 + $0xb8] sm:$0xff] %v3933_v11  ;;  %4090 = vst [vmem:[%s6307_s15 + $0x1b8] sm:$0xff] %v4013_v53 }
 0x755   : > { %v3936_v52 = vpop.f32.mrb[24].mxu0  ;;  %v4016_v61 = vpop.f32.mrb[24].mxu1 }
 0x756   : > { %v3937_v35 = vadd.f32 %v3936_v52, %v7546_v4  ;;  %v4017_v8 = vadd.f32 %v4016_v61, %v7546_v4  ;;  %v3938_v32 = vpop.f32.mrb[25].mxu0  ;;  %v4018_v22 = vpop.f32.mrb[25].mxu1 }
 0x757   : > { %v3939_v2 = vadd.f32 %v3938_v32, %v7548_v44  ;;  %v4019_v49 = vadd.f32 %v4018_v22, %v7548_v44  ;;  %v3940_v36 = vpop.f32.mrb[26].mxu0  ;;  %v4020_v43 = vpop.f32.mrb[26].mxu1 }
 0x758   : > { %4059 = vst [vmem:[%s6307_s15 + $0xc0] sm:$0xff] %v3937_v35  ;;  %4091 = vst [vmem:[%s6307_s15 + $0x1c0] sm:$0xff] %v4017_v8  ;;  %v3941_v42 = vadd.f32 %v3940_v36, %v7546_v4  ;;  %v4021_v20 = vadd.f32 %v4020_v43, %v7546_v4  ;;  %v3942_v10 = vpop.f32.mrb[27].mxu0  ;;  %v4022_v62 = vpop.f32.mrb[27].mxu1 }
 0x759   : > { %4060 = vst [vmem:[%s6307_s15 + $0xc8] sm:$0xff] %v3939_v2  ;;  %4092 = vst [vmem:[%s6307_s15 + $0x1c8] sm:$0xff] %v4019_v49  ;;  %v3943_v14 = vadd.f32 %v3942_v10, %v7548_v44  ;;  %v4023_v19 = vadd.f32 %v4022_v62, %v7548_v44 }
 0x75a   : > { %4061 = vst [vmem:[%s6307_s15 + $0xd0] sm:$0xff] %v3941_v42  ;;  %4093 = vst [vmem:[%s6307_s15 + $0x1d0] sm:$0xff] %v4021_v20 }
 0x75b   : > { %4062 = vst [vmem:[%s6307_s15 + $0xd8] sm:$0xff] %v3943_v14  ;;  %4094 = vst [vmem:[%s6307_s15 + $0x1d8] sm:$0xff] %v4023_v19 }
 0x75d   : > { %v3946_v25 = vpop.f32.mrb[28].mxu0  ;;  %v4026_v39 = vpop.f32.mrb[28].mxu1 }
 0x75e   : > { %v3947_v37 = vadd.f32 %v3946_v25, %v7546_v4  ;;  %v4027_v33 = vadd.f32 %v4026_v39, %v7546_v4  ;;  %v3948_v34 = vpop.f32.mrb[29].mxu0  ;;  %v4028_v54 = vpop.f32.mrb[29].mxu1 }
 0x75f   : > { %v3949_v1 = vadd.f32 %v3948_v34, %v7548_v44  ;;  %v4029_v3 = vadd.f32 %v4028_v54, %v7548_v44  ;;  %v3950_v6 = vpop.f32.mrb[30].mxu0  ;;  %v4030_v0 = vpop.f32.mrb[30].mxu1 }
 0x760   : > { %4063 = vst [vmem:[%s6307_s15 + $0xe0] sm:$0xff] %v3947_v37  ;;  %4095 = vst [vmem:[%s6307_s15 + $0x1e0] sm:$0xff] %v4027_v33  ;;  %v3951_v51 = vadd.f32 %v3950_v6, %v7546_v4  ;;  %v4031_v50 = vadd.f32 %v4030_v0, %v7546_v4  ;;  %v3952_v63 = vpop.f32.mrb[31].mxu0  ;;  %v4032_v9 = vpop.f32.mrb[31].mxu1 }
 0x761   : > { %4064 = vst [vmem:[%s6307_s15 + $0xe8] sm:$0xff] %v3949_v1  ;;  %4096 = vst [vmem:[%s6307_s15 + $0x1e8] sm:$0xff] %v4029_v3  ;;  %v3953_v45 = vadd.f32 %v3952_v63, %v7548_v44  ;;  %v4033_v59 = vadd.f32 %v4032_v9, %v7548_v44 }
 0x762   : > { %4065 = vst [vmem:[%s6307_s15 + $0xf0] sm:$0xff] %v3951_v51  ;;  %4097 = vst [vmem:[%s6307_s15 + $0x1f0] sm:$0xff] %v4031_v50 }
 0x763   : > { %4066 = vst [vmem:[%s6307_s15 + $0xf8] sm:$0xff] %v3953_v45  ;;  %4098 = vst [vmem:[%s6307_s15 + $0x1f8] sm:$0xff] %v4033_v59 }
 0x764 PF: > { %s8052_s23 = sld [smem:[#allocation19_spill]]  ;;  %s8053_s20 = sld [smem:[#allocation20_spill]] }
 0x765   : > { %s4474_s16 = sshll.u32 %s5958_s8, 6  ;;  %s4116_s4 = sshll.u32 %s6307_s15, 4  ;;  %s7681_s4 = int_to_ptr.vmem [resolvable:$true] %s4116_s4 }
 0x766   : > { %s8054_s21 = sld [smem:[#allocation105_spill]]  ;;  %s7690_s18 = scalar_lea.sflag [#allocation6], %s359_s2 }
 0x767   : > { %s5832_s6 = scalar_lea.vmem %s7681_s4, 8192  ;;  %s5988_s8 = smov [#allocation12]  }
 0x768   : > { %p5833_p7 = scmp.ne.s32.totalorder %s7681_s4, %s5832_s6  ;;  %s5836_s15 = sshll.u32 %s5988_s8, 4  ;;  %s5837_s15 = int_to_ptr.vmem [resolvable:$false] %s5836_s15 }
 0x769   : > { %p5839_p4 = scmp.lt.s32.totalorder %s7681_s4, %s5837_s15 }
 0x76a   : > { %s4464_s3 = sshll.u32 %s8052_s23, 7  ;;  %p8055_p9 = scmp.ne.s32.totalorder %s8053_s20, 0 }
 0x76b   : > { %s4113_s1 = sadd.s32 %s4474_s16, %s4464_s3  ;;  %s5838_s23 = scalar_lea.vmem %s5837_s15, 16384 }
 0x76c   : > { %s4465_s9 = sshll.u32 %s4113_s1, 7  ;;  %p5834_p13 = pnand %p5833_p7, %p8055_p9 }
 0x76d   : > { %s7686_s19 = scalar_lea.hbm %s8054_s21, %s4465_s9  ;;  %p5840_p6 = scmp.lt.s32.totalorder %s5838_s23, %s5832_s6 }
 0x76e   : > { %p5835_p11 = pneg %p5834_p13 }
 0x76f   : > { %p5841_p10 = por %p5840_p6, %p5839_p4 }
 0x771   : > { %p5842_p2 = pnand %p5841_p10, %p5835_p11 }
 0x773   : > { %5845 = shalt.err (!%p5842_p2)
}
 0x774   : > { %s5846_s2 = scalar_lea.hbm %s7686_s19, 8192  ;;  %s5850_s1 = scalar_lea.hbm %s8054_s21, 32768 }
 0x775   : > { %p5847_p0 = scmp.ne.s32.totalorder %s7686_s19, %s5846_s2  ;;  %p5851_p1 = scmp.lt.u32.totalorder %s7686_s19, %s8054_s21 }
 0x776   : > { %p5852_p5 = scmp.lt.u32.totalorder %s5850_s1, %s5846_s2  ;;  %p5854_p7 = scmp.lt.u32.totalorder %s5846_s2, %s7686_s19 }
 0x777   : > { %p5848_p8 = pnand %p5847_p0, %p8055_p9 }
 0x778   : > { %p5853_p3 = por %p5852_p5, %p5851_p1 }
 0x779   : > { %p5849_p12 = pneg %p5848_p8 }
 0x77a   : > { %p5855_p13 = por %p5854_p7, %p5853_p3 }
 0x77c   : > { %p5856_p11 = pnand %p5855_p13, %p5849_p12 }
 0x77e   : > { %5859 = shalt.err (!%p5856_p11)
}
 0x77f   : > { %s5989_s7 = smov 256   ;;  %s5990_s6 = smov 16  }
 0x780   : > { %5001 = dma.vmem_to_hbm [thread:$0]  (%p8055_p9), %s7681_s4, 8192, %s7686_s19, %s7690_s18, %s5989_s7, %s5989_s7, %s5990_s6  }
 0x781 PF: > { %s8056_s8 = sld [smem:[#allocation17_spill]]  ;;  %s8057_s15 = sld [smem:[#allocation21_spill]] }
 0x782   : > { %p5028_p4 = scmp.ge.s32.totalorder %s5978_s13, 2 }
 0x787   : > { %s4131_s23 = sand.u32 1, %s8056_s8   ;;  %p8058_p6 = scmp.ne.s32.totalorder %s8057_s15, 0 }
 0x788   : > { %s4132_s2 = scalar_lea.sflag [#allocation6], %s4131_s23 }
 0x789   : > { %p5018_p10 = pnand %p5028_p4, %p8058_p6 }
 0x78b   : > { %5925 = dma.done.wait (!%p5018_p10), %s4132_s2, 8192  }
 0x78c   : > { %5927 = vsyncadd (!%p5018_p10), %s4132_s2, 4294959104  ;;  %s25_s13 = sadd.s32 1, %s5978_s13   ;;  %s8060_s20 = smov %s8075_s27 }
 0x78d   : > { %p7719_p2 = scmp.ge.s32.totalorder %s25_s13, 10   ;;  %s8061_s4 = smov %s8083_s30 }
 0x78e   : > { %s8062_s24 = smov %s5934_s25  ;;  %s8063_s25 = smov %s5938_s26 }
 0x78f   : > { %s8064_s26 = smov %s6254_s17  ;;  %s8065_s27 = smov %s5946_s28 }
 0x790   : > { %s8066_s28 = smov %s5950_s29  ;;  %s8067_s29 = smov %s6249_s14 }
 0x791   : > { %s8068_s30 = smov %s5966_s10  ;;  %s8069_s8 = smov %s5970_s11 }
 0x792   : > { %s8070_s9 = smov %s5974_s12  ;;  %s8071_s10 = smov %s8060_s20 }
 0x793   : > { %s8072_s11 = smov %s8079_s22  ;;  %s8073_s12 = smov %s8061_s4 }
 0x794   :  { %24 = sbr.rel (!%p7719_p2) target bundleno = 19 (0x13), region = 121 }
 0x79b   :  { %4137 = vsyncpa [#allocation5], 1 }
 0x79c   :  { %4139 = vsyncpa [#allocation5 + $0x1], 1 }
 0x79d   :  { %4140 = vsyncpa [#allocation8], 1 }
 0x79e   :  { %4141 = vsyncpa [#allocation11], 1 }
 0x79f   :  { %4142 = vsyncpa [#allocation6], 1 }
 0x7a0   :  { %4144 = vsyncpa [#allocation6 + $0x1], 1 }

</bundles_post_ra>
